<compile_context>
chip_gen: v7x
topology: tpu7x:2x2x1
jax: 0.10.0
libtpu: 0.0.40
codegen_flags: <defaults>
</compile_context>

<pallas_src>
import functools

import jax
import jax.numpy as jnp
from jax.experimental import pallas as pl
from jax.experimental.pallas import tpu as pltpu

TILE_M = 512   # spatial-position rows per matmul tile
TILE_K = 512   # reduction (Cin*16) tile; layers with K not divisible use full K


# ----------------------------------------------------------------------------
# Pallas kernel A: tiled conv-as-matmul (+ bias, + optional activation,
#                  + optional per-instance channel sum / sumsq accumulation)
# ----------------------------------------------------------------------------
def _conv_matmul_kernel(x_ref, w_ref, b_ref, y_ref, *rest,
                        ohw, tm, do_stats, activation):
    # x_ref: (1, tm, tk) bf16 patches   w_ref: (tk, Cout) bf16   b_ref: (1, Cout) f32
    # y_ref: (1, tm, Cout)
    # rest = (ssum_ref, ssq_ref, acc_ref) if do_stats else (acc_ref,)
    if do_stats:
        ssum_ref, ssq_ref, acc_ref = rest
    else:
        (acc_ref,) = rest

    m = pl.program_id(1)
    k = pl.program_id(2)

    @pl.when(k == 0)
    def _init():
        acc_ref[...] = jnp.zeros_like(acc_ref)

    acc_ref[...] += jnp.dot(x_ref[0], w_ref[...],
                            preferred_element_type=jnp.float32)

    @pl.when(k == pl.num_programs(2) - 1)
    def _finalize():
        y = acc_ref[...] + b_ref[...]                      # f32 [tm, Cout]
        if do_stats:
            # Raw conv output; norm + LeakyReLU happen in the second pass.
            y_ref[0] = y.astype(y_ref.dtype)
            # Mask rows past OHW (padded last M tile) before accumulating stats.
            row = jax.lax.broadcasted_iota(jnp.int32, (tm, 1), 0) + m * tm
            ym = jnp.where(row < ohw, y, 0.0)
            s1 = jnp.sum(ym, axis=0, keepdims=True)        # [1, Cout]
            s2 = jnp.sum(ym * ym, axis=0, keepdims=True)   # [1, Cout]

            @pl.when(m == 0)
            def _():
                ssum_ref[0] = s1
                ssq_ref[0] = s2

            @pl.when(m != 0)
            def _():
                ssum_ref[0] = ssum_ref[0] + s1
                ssq_ref[0] = ssq_ref[0] + s2
        else:
            if activation == "leaky":
                y = jnp.where(y > 0.0, y, 0.2 * y)         # LeakyReLU(0.2)
            elif activation == "sigmoid":
                y = jax.nn.sigmoid(y)
            y_ref[0] = y.astype(y_ref.dtype)


def conv_matmul_pallas(patches, w, b, *, do_stats, activation, out_dtype):
    """patches: [N, OHW, K] bf16, w: [K, Cout] bf16, b: [1, Cout] f32."""
    N, OHW, K = patches.shape
    Cout = w.shape[1]
    tm = min(TILE_M, OHW)
    tk = TILE_K if K % TILE_K == 0 else K
    assert K % tk == 0
    nm = pl.cdiv(OHW, tm)
    nk = K // tk

    kernel = functools.partial(_conv_matmul_kernel, ohw=OHW, tm=tm,
                               do_stats=do_stats, activation=activation)

    in_specs = [
        pl.BlockSpec((1, tm, tk), lambda n, m, k: (n, m, k)),
        pl.BlockSpec((tk, Cout), lambda n, m, k: (k, 0)),
        pl.BlockSpec((1, Cout), lambda n, m, k: (0, 0)),
    ]
    y_shape = jax.ShapeDtypeStruct((N, OHW, Cout), out_dtype)
    y_spec = pl.BlockSpec((1, tm, Cout), lambda n, m, k: (n, m, 0))

    if do_stats:
        stat_shape = jax.ShapeDtypeStruct((N, 1, Cout), jnp.float32)
        stat_spec = pl.BlockSpec((1, 1, Cout), lambda n, m, k: (n, 0, 0))
        out_shape = (y_shape, stat_shape, stat_shape)
        out_specs = (y_spec, stat_spec, stat_spec)
        dims = ("parallel", "arbitrary", "arbitrary")   # stats accumulate over m, k
    else:
        out_shape = y_shape
        out_specs = y_spec
        dims = ("parallel", "parallel", "arbitrary")    # only k is a reduction

    return pl.pallas_call(
        kernel,
        out_shape=out_shape,
        grid_spec=pltpu.PrefetchScalarGridSpec(
            num_scalar_prefetch=0,
            grid=(N, nm, nk),
            in_specs=in_specs,
            out_specs=out_specs,
            scratch_shapes=[pltpu.VMEM((tm, Cout), jnp.float32)],
        ),
        compiler_params=pltpu.CompilerParams(dimension_semantics=dims),
    )(patches, w, b)


# ----------------------------------------------------------------------------
# Pallas kernel B: InstanceNorm2d (affine=False, eps=1e-5) + LeakyReLU(0.2)
# ----------------------------------------------------------------------------
def _instnorm_lrelu_kernel(y_ref, ssum_ref, ssq_ref, o_ref, *, ohw):
    y = y_ref[0]                              # [tm, C] f32
    inv_n = 1.0 / float(ohw)
    mean = ssum_ref[0] * inv_n                # [1, C]
    var = jnp.maximum(ssq_ref[0] * inv_n - mean * mean, 0.0)  # biased variance
    yn = (y - mean) * jax.lax.rsqrt(var + 1e-5)
    o_ref[0] = jnp.where(yn > 0.0, yn, 0.2 * yn).astype(o_ref.dtype)


def instance_norm_lrelu_pallas(y, ssum, ssq, *, out_dtype):
    N, OHW, C = y.shape
    tm = min(TILE_M, OHW)
    nm = pl.cdiv(OHW, tm)
    kernel = functools.partial(_instnorm_lrelu_kernel, ohw=OHW)
    return pl.pallas_call(
        kernel,
        out_shape=jax.ShapeDtypeStruct((N, OHW, C), out_dtype),
        grid_spec=pltpu.PrefetchScalarGridSpec(
            num_scalar_prefetch=0,
            grid=(N, nm),
            in_specs=[
                pl.BlockSpec((1, tm, C), lambda n, m: (n, m, 0)),
                pl.BlockSpec((1, 1, C), lambda n, m: (n, 0, 0)),
                pl.BlockSpec((1, 1, C), lambda n, m: (n, 0, 0)),
            ],
            out_specs=pl.BlockSpec((1, tm, C), lambda n, m: (n, m, 0)),
        ),
        compiler_params=pltpu.CompilerParams(
            dimension_semantics=("parallel", "parallel")),
    )(y, ssum, ssq)


# ----------------------------------------------------------------------------
# JAX glue: reflect padding + channel-last im2col (no transposes)
# ----------------------------------------------------------------------------
def _im2col_reflect_nhwc(x, stride):
    """x: [N, H, W, C] -> patches [N, OH*OW, 16*C], 4x4 kernel, reflect pad 1."""
    # TODO(synk): form the 16 taps inside the matmul kernel (strided pl.ds over a
    # DMA'd padded-row VMEM buffer) to avoid this 16x HBM expansion of activations.
    xp = jnp.pad(x, ((0, 0), (1, 1), (1, 1), (0, 0)), mode="reflect")
    N, Hp, Wp, C = xp.shape
    OH = (Hp - 4) // stride + 1
    OW = (Wp - 4) // stride + 1
    taps = []
    for kh in range(4):
        for kw in range(4):
            taps.append(xp[:, kh:kh + stride * OH:stride,
                           kw:kw + stride * OW:stride, :])
    p = jnp.stack(taps, axis=3)                    # [N, OH, OW, 16, C]
    p = p.reshape(N, OH * OW, 16 * C)              # (kh, kw, c) flattened, free reshape
    return p, OH, OW


# ----------------------------------------------------------------------------
# Parameter construction (deterministic, synthetic)
# ----------------------------------------------------------------------------
def init_discriminator_params(key, in_channels=3, features=(64, 128, 256, 512)):
    """[(w_mat [Cin*16, Cout] bf16, b [1, Cout] f32), ...] per torch layer.

    Weights are flattened in (kh, kw, cin) order to match the NHWC im2col.
    The final 1-channel conv is zero-padded to 128 output channels so the
    kernel's output stores stay lane-dense; extras are sliced off in forward.
    """
    chans = [in_channels] + list(features) + [1]
    params = []
    for i in range(len(chans) - 1):
        cin, cout = chans[i], chans[i + 1]
        key, kw_key, kb_key = jax.random.split(key, 3)
        w4 = jax.random.normal(kw_key, (cout, cin, 4, 4), jnp.float32) * (
            0.1 / jnp.sqrt(cin * 16.0))
        b = jax.random.normal(kb_key, (cout,), jnp.float32) * 0.01
        w_mat = jnp.transpose(w4, (2, 3, 1, 0)).reshape(cin * 16, cout)
        if cout == 1:   # final conv: pad Cout 1 -> 128 (lane-dense MXU/store path)
            w_mat = jnp.pad(w_mat, ((0, 0), (0, 127)))
            b = jnp.pad(b, ((0, 127),))
        params.append((w_mat.astype(jnp.bfloat16),
                       b.reshape(1, -1).astype(jnp.float32)))
    return params


# ----------------------------------------------------------------------------
# Forward pass
# ----------------------------------------------------------------------------
def discriminator_forward(x, params):
    """x: [N, Cin, H, W] (NCHW) -> [N, 1, H', W'], sigmoid patch scores."""
    #  initial   : conv s=2, no norm, leaky     (batch folded into M)
    #  Block 128 : conv s=2, instancenorm, leaky (two-pass norm)
    #  Block 256 : conv s=2, instancenorm, leaky
    #  Block 512 : conv s=1, instancenorm, leaky
    #  final     : conv s=1, no norm, sigmoid   (Cout padded 1->128, batch folded)
    strides = [2, 2, 2, 1, 1]
    norms = [False, True, True, True, False]
    acts = ["leaky", None, None, None, "sigmoid"]

    N = x.shape[0]
    h = jnp.transpose(x, (0, 2, 3, 1)).astype(jnp.bfloat16)   # NHWC, bf16 matmul operand
    n_layers = len(params)
    for li, ((w, b), s, dn, act) in enumerate(zip(params, strides, norms, acts)):
        patches, OH, OW = _im2col_reflect_nhwc(h, s)          # [N, OHW, K] bf16
        OHW = OH * OW
        Cout = w.shape[1]
        if dn:
            y, ssum, ssq = conv_matmul_pallas(
                patches, w, b, do_stats=True, activation=None,
                out_dtype=jnp.float32)
            out = instance_norm_lrelu_pallas(y, ssum, ssq, out_dtype=jnp.bfloat16)
            h = out.reshape(N, OH, OW, Cout)
        else:
            is_last = li == n_layers - 1
            folded = patches.reshape(1, N * OHW, patches.shape[2])
            out = conv_matmul_pallas(
                folded, w, b, do_stats=False, activation=act,
                out_dtype=jnp.float32 if is_last else jnp.bfloat16)
            out = out.reshape(N, OHW, Cout)
            if is_last:
                out = out[..., :1].reshape(N, OH, OW, 1)      # drop padded channels
                return jnp.transpose(out, (0, 3, 1, 2))       # back to NCHW
            h = out.reshape(N, OH, OW, Cout)
    return h


if __name__ == "__main__":
    key = jax.random.PRNGKey(0)
    k_x, k_p = jax.random.split(key)

    # Small-but-valid input: reflect-pad(1) of the 4x4/stride-1 layers requires
    # spatial >= 2 at every stage, so 32x32 is the smallest clean power of two.
    N, C, H, W = 2, 3, 32, 32
    x = jax.random.normal(k_x, (N, C, H, W), jnp.float32)

    params = init_discriminator_params(k_p, in_channels=C)

    fwd = jax.jit(discriminator_forward)
    y = fwd(x, params)
    y = jax.block_until_ready(y)

    assert y.shape == (N, 1, 2, 2), y.shape
    assert bool(jnp.all(jnp.isfinite(y)))
    assert bool(jnp.all((y >= 0.0) & (y <= 1.0)))
    print("KERNEL_OK")
</pallas_src>

<mosaic_0001>
module attributes {stable_mosaic.version = 11 : i64} {
  func.func @_conv_matmul_kernel(%arg0: i32, %arg1: i32, %arg2: i32, %arg3: memref<1x512x48xbf16, #tpu.memory_space<vmem>>, %arg4: memref<48x64xbf16, #tpu.memory_space<vmem>>, %arg5: memref<1x64xf32, #tpu.memory_space<vmem>>, %arg6: memref<1x512x64xbf16, #tpu.memory_space<vmem>>, %arg7: memref<512x64xf32, #tpu.memory_space<vmem>>) attributes {dimension_semantics = [#tpu.dimension_semantics<parallel>, #tpu.dimension_semantics<parallel>, #tpu.dimension_semantics<arbitrary>], iteration_bounds = array<i64: 1, 1, 1>, scalar_prefetch = 0 : i64, scratch_operands = 1 : i64, tpu.core_type = #tpu.core_type<tc>, window_params = [{transform_indices = @transform_0, window_bounds = array<i64: 1, 512, 48>}, {transform_indices = @transform_1, window_bounds = array<i64: 48, 64>}, {pipeline_mode = #tpu.pipeline_mode<synchronous>, transform_indices = @transform_2, window_bounds = array<i64: 1, 64>}, {transform_indices = @transform_3, window_bounds = array<i64: 1, 512, 64>}]} {
    %c0_i32 = arith.constant 0 : i32
    %0 = arith.cmpi eq, %arg2, %c0_i32 : i32
    %1 = arith.extui %0 : i1 to i32
    %c0_i32_0 = arith.constant 0 : i32
    %2 = arith.cmpi ne, %1, %c0_i32_0 : i32
    scf.if %2 {
      %cst_11 = arith.constant 0.000000e+00 : f32
      %13 = vector.broadcast %cst_11 : f32 to vector<512x64xf32>
      %c0_12 = arith.constant 0 : index
      %c0_13 = arith.constant 0 : index
      %14 = vector.load %arg7[%c0_12, %c0_13] : memref<512x64xf32, #tpu.memory_space<vmem>>, vector<512x64xf32>
      tpu.vector_store %arg7[%c0_12, %c0_13], %13 {strides = array<i32>} : memref<512x64xf32, #tpu.memory_space<vmem>>, vector<512x64xf32>,
    } else {
    }
    %c0 = arith.constant 0 : index
    %c0_1 = arith.constant 0 : index
    %3 = vector.load %arg7[%c0, %c0_1] : memref<512x64xf32, #tpu.memory_space<vmem>>, vector<512x64xf32>
    %c0_2 = arith.constant 0 : index
    %c0_3 = arith.constant 0 : index
    %c0_4 = arith.constant 0 : index
    %4 = vector.load %arg3[%c0_2, %c0_3, %c0_4] : memref<1x512x48xbf16, #tpu.memory_space<vmem>>, vector<1x512x48xbf16>
    %5 = vector.shape_cast %4 : vector<1x512x48xbf16> to vector<512x48xbf16>
    %c0_5 = arith.constant 0 : index
    %c0_6 = arith.constant 0 : index
    %6 = vector.load %arg4[%c0_5, %c0_6] : memref<48x64xbf16, #tpu.memory_space<vmem>>, vector<48x64xbf16>
    %cst = arith.constant dense<0.000000e+00> : vector<512x64xf32>
    %7 = tpu.matmul %5, %6, %cst {dimension_numbers = #tpu.dot_dimension_numbers<[1], [0], [0], [1], [0, 0, 1, 1], [], []>} : vector<512x48xbf16>, vector<48x64xbf16>, vector<512x64xf32> -> vector<512x64xf32>
    %8 = arith.addf %3, %7 : vector<512x64xf32>
    %c0_7 = arith.constant 0 : index
    %c0_8 = arith.constant 0 : index
    %9 = vector.load %arg7[%c0_7, %c0_8] : memref<512x64xf32, #tpu.memory_space<vmem>>, vector<512x64xf32>
    tpu.vector_store %arg7[%c0_7, %c0_8], %8 {strides = array<i32>} : memref<512x64xf32, #tpu.memory_space<vmem>>, vector<512x64xf32>,
    %c0_i32_9 = arith.constant 0 : i32
    %10 = arith.cmpi eq, %arg2, %c0_i32_9 : i32
    %11 = arith.extui %10 : i1 to i32
    %c0_i32_10 = arith.constant 0 : i32
    %12 = arith.cmpi ne, %11, %c0_i32_10 : i32
    scf.if %12 {
      %c0_11 = arith.constant 0 : index
      %c0_12 = arith.constant 0 : index
      %13 = vector.load %arg7[%c0_11, %c0_12] : memref<512x64xf32, #tpu.memory_space<vmem>>, vector<512x64xf32>
      %c0_13 = arith.constant 0 : index
      %c0_14 = arith.constant 0 : index
      %14 = vector.load %arg5[%c0_13, %c0_14] : memref<1x64xf32, #tpu.memory_space<vmem>>, vector<1x64xf32>
      %15 = vector.broadcast %14 : vector<1x64xf32> to vector<512x64xf32>
      %16 = arith.addf %13, %15 : vector<512x64xf32>
      %cst_15 = arith.constant 0.000000e+00 : f32
      %17 = vector.broadcast %cst_15 : f32 to vector<512x64xf32>
      %18 = arith.cmpf ogt, %16, %17 : vector<512x64xf32>
      %cst_16 = arith.constant 2.000000e-01 : f32
      %19 = vector.broadcast %cst_16 : f32 to vector<512x64xf32>
      %20 = arith.mulf %19, %16 : vector<512x64xf32>
      %21 = arith.select %18, %16, %20 : vector<512x64xi1>, vector<512x64xf32>
      %22 = arith.truncf %21 : vector<512x64xf32> to vector<512x64xbf16>
      %c0_17 = arith.constant 0 : index
      %c0_18 = arith.constant 0 : index
      %c0_19 = arith.constant 0 : index
      %23 = vector.load %arg6[%c0_17, %c0_18, %c0_19] : memref<1x512x64xbf16, #tpu.memory_space<vmem>>, vector<1x512x64xbf16>
      %24 = vector.shape_cast %23 : vector<1x512x64xbf16> to vector<512x64xbf16>
      %25 = vector.shape_cast %22 : vector<512x64xbf16> to vector<1x512x64xbf16>
      tpu.vector_store %arg6[%c0_17, %c0_18, %c0_19], %25 {strides = array<i32>} : memref<1x512x64xbf16, #tpu.memory_space<vmem>>, vector<1x512x64xbf16>,
    } else {
    }
    return
  }
  func.func @transform_0(%arg0: i32, %arg1: i32, %arg2: i32) -> (i32, i32, i32) {
    %c0_i32 = arith.constant 0 : i32
    return %arg0, %arg1, %arg2 : i32, i32, i32
  }
  func.func @transform_1(%arg0: i32, %arg1: i32, %arg2: i32) -> (i32, i32) {
    %c0_i32 = arith.constant 0 : i32
    %c0_i32_0 = arith.constant 0 : i32
    return %arg2, %c0_i32 : i32, i32
  }
  func.func @transform_2(%arg0: i32, %arg1: i32, %arg2: i32) -> (i32, i32) {
    %c0_i32 = arith.constant 0 : i32
    %c0_i32_0 = arith.constant 0 : i32
    %c0_i32_1 = arith.constant 0 : i32
    return %c0_i32, %c0_i32_0 : i32, i32
  }
  func.func @transform_3(%arg0: i32, %arg1: i32, %arg2: i32) -> (i32, i32, i32) {
    %c0_i32 = arith.constant 0 : i32
    %c0_i32_0 = arith.constant 0 : i32
    return %arg0, %arg1, %c0_i32 : i32, i32, i32
  }
}

module attributes {stable_mosaic.version = 11 : i64} {
  func.func @_conv_matmul_kernel(%arg0: i32, %arg1: i32, %arg2: i32, %arg3: memref<1x64x512xbf16, #tpu.memory_space<vmem>>, %arg4: memref<512x128xbf16, #tpu.memory_space<vmem>>, %arg5: memref<1x128xf32, #tpu.memory_space<vmem>>, %arg6: memref<1x64x128xf32, #tpu.memory_space<vmem>>, %arg7: memref<1x1x128xf32, #tpu.memory_space<vmem>>, %arg8: memref<1x1x128xf32, #tpu.memory_space<vmem>>, %arg9: memref<64x128xf32, #tpu.memory_space<vmem>>) attributes {dimension_semantics = [#tpu.dimension_semantics<parallel>, #tpu.dimension_semantics<arbitrary>, #tpu.dimension_semantics<arbitrary>], iteration_bounds = array<i64: 2, 1, 2>, scalar_prefetch = 0 : i64, scratch_operands = 1 : i64, tpu.core_type = #tpu.core_type<tc>, window_params = [{transform_indices = @transform_0, window_bounds = array<i64: 1, 64, 512>}, {transform_indices = @transform_1, window_bounds = array<i64: 512, 128>}, {pipeline_mode = #tpu.pipeline_mode<synchronous>, transform_indices = @transform_2, window_bounds = array<i64: 1, 128>}, {transform_indices = @transform_3, window_bounds = array<i64: 1, 64, 128>}, {transform_indices = @transform_4, window_bounds = array<i64: 1, 1, 128>}, {transform_indices = @transform_5, window_bounds = array<i64: 1, 1, 128>}]} {
    %c0_i32 = arith.constant 0 : i32
    %0 = arith.cmpi eq, %arg2, %c0_i32 : i32
    %1 = arith.extui %0 : i1 to i32
    %c0_i32_0 = arith.constant 0 : i32
    %2 = arith.cmpi ne, %1, %c0_i32_0 : i32
    scf.if %2 {
      %cst_10 = arith.constant 0.000000e+00 : f32
      %13 = vector.broadcast %cst_10 : f32 to vector<64x128xf32>
      %c0_11 = arith.constant 0 : index
      %c0_12 = arith.constant 0 : index
      %14 = vector.load %arg9[%c0_11, %c0_12] : memref<64x128xf32, #tpu.memory_space<vmem>>, vector<64x128xf32>
      tpu.vector_store %arg9[%c0_11, %c0_12], %13 {strides = array<i32>} : memref<64x128xf32, #tpu.memory_space<vmem>>, vector<64x128xf32>,
    } else {
    }
    %c0 = arith.constant 0 : index
    %c0_1 = arith.constant 0 : index
    %3 = vector.load %arg9[%c0, %c0_1] : memref<64x128xf32, #tpu.memory_space<vmem>>, vector<64x128xf32>
    %c0_2 = arith.constant 0 : index
    %c0_3 = arith.constant 0 : index
    %c0_4 = arith.constant 0 : index
    %4 = vector.load %arg3[%c0_2, %c0_3, %c0_4] : memref<1x64x512xbf16, #tpu.memory_space<vmem>>, vector<1x64x512xbf16>
    %5 = vector.shape_cast %4 : vector<1x64x512xbf16> to vector<64x512xbf16>
    %c0_5 = arith.constant 0 : index
    %c0_6 = arith.constant 0 : index
    %6 = vector.load %arg4[%c0_5, %c0_6] : memref<512x128xbf16, #tpu.memory_space<vmem>>, vector<512x128xbf16>
    %cst = arith.constant dense<0.000000e+00> : vector<64x128xf32>
    %7 = tpu.matmul %5, %6, %cst {dimension_numbers = #tpu.dot_dimension_numbers<[1], [0], [0], [1], [0, 0, 1, 1], [], []>} : vector<64x512xbf16>, vector<512x128xbf16>, vector<64x128xf32> -> vector<64x128xf32>
    %8 = arith.addf %3, %7 : vector<64x128xf32>
    %c0_7 = arith.constant 0 : index
    %c0_8 = arith.constant 0 : index
    %9 = vector.load %arg9[%c0_7, %c0_8] : memref<64x128xf32, #tpu.memory_space<vmem>>, vector<64x128xf32>
    tpu.vector_store %arg9[%c0_7, %c0_8], %8 {strides = array<i32>} : memref<64x128xf32, #tpu.memory_space<vmem>>, vector<64x128xf32>,
    %c1_i32 = arith.constant 1 : i32
    %10 = arith.cmpi eq, %arg2, %c1_i32 : i32
    %11 = arith.extui %10 : i1 to i32
    %c0_i32_9 = arith.constant 0 : i32
    %12 = arith.cmpi ne, %11, %c0_i32_9 : i32
    scf.if %12 {
      %c0_10 = arith.constant 0 : index
      %c0_11 = arith.constant 0 : index
      %13 = vector.load %arg9[%c0_10, %c0_11] : memref<64x128xf32, #tpu.memory_space<vmem>>, vector<64x128xf32>
      %c0_12 = arith.constant 0 : index
      %c0_13 = arith.constant 0 : index
      %14 = vector.load %arg5[%c0_12, %c0_13] : memref<1x128xf32, #tpu.memory_space<vmem>>, vector<1x128xf32>
      %15 = vector.broadcast %14 : vector<1x128xf32> to vector<64x128xf32>
      %16 = arith.addf %13, %15 : vector<64x128xf32>
      %c0_14 = arith.constant 0 : index
      %c0_15 = arith.constant 0 : index
      %c0_16 = arith.constant 0 : index
      %17 = vector.load %arg6[%c0_14, %c0_15, %c0_16] : memref<1x64x128xf32, #tpu.memory_space<vmem>>, vector<1x64x128xf32>
      %18 = vector.shape_cast %17 : vector<1x64x128xf32> to vector<64x128xf32>
      %19 = vector.shape_cast %16 : vector<64x128xf32> to vector<1x64x128xf32>
      tpu.vector_store %arg6[%c0_14, %c0_15, %c0_16], %19 {strides = array<i32>} : memref<1x64x128xf32, #tpu.memory_space<vmem>>, vector<1x64x128xf32>,
      %20 = tpu.iota {dimensions = array<i32: 0>} : vector<64x1xi32>
      %c64_i32 = arith.constant 64 : i32
      %21 = arith.muli %arg1, %c64_i32 : i32
      %22 = vector.broadcast %21 : i32 to vector<64x1xi32>
      %23 = arith.addi %20, %22 : vector<64x1xi32>
      %c64_i32_17 = arith.constant 64 : i32
      %24 = vector.broadcast %c64_i32_17 : i32 to vector<64x1xi32>
      %25 = arith.cmpi slt, %23, %24 : vector<64x1xi32>
      %cst_18 = arith.constant 0.000000e+00 : f32
      %26 = vector.shape_cast %25 : vector<64x1xi1> to vector<64x1xi1>
      %27 = vector.broadcast %26 : vector<64x1xi1> to vector<64x128xi1>
      %28 = vector.broadcast %cst_18 : f32 to vector<64x128xf32>
      %29 = arith.select %27, %16, %28 : vector<64x128xi1>, vector<64x128xf32>
      %cst_19 = arith.constant dense<0.000000e+00> : vector<128xf32>
      %30 = vector.multi_reduction <add>, %29, %cst_19 [0] : vector<64x128xf32> to vector<128xf32>
      %31 = vector.shape_cast %30 : vector<128xf32> to vector<1x128xf32>
      %32 = arith.mulf %29, %29 : vector<64x128xf32>
      %cst_20 = arith.constant dense<0.000000e+00> : vector<128xf32>
      %33 = vector.multi_reduction <add>, %32, %cst_20 [0] : vector<64x128xf32> to vector<128xf32>
      %34 = vector.shape_cast %33 : vector<128xf32> to vector<1x128xf32>
      %c0_i32_21 = arith.constant 0 : i32
      %35 = arith.cmpi eq, %arg1, %c0_i32_21 : i32
      %36 = arith.extui %35 : i1 to i32
      %c0_i32_22 = arith.constant 0 : i32
      %37 = arith.cmpi ne, %36, %c0_i32_22 : i32
      scf.if %37 {
        %c0_25 = arith.constant 0 : index
        %c0_26 = arith.constant 0 : index
        %c0_27 = arith.constant 0 : index
        %41 = vector.load %arg7[%c0_25, %c0_26, %c0_27] : memref<1x1x128xf32, #tpu.memory_space<vmem>>, vector<1x1x128xf32>
        %42 = vector.shape_cast %41 : vector<1x1x128xf32> to vector<1x128xf32>
        %43 = vector.shape_cast %31 : vector<1x128xf32> to vector<1x1x128xf32>
        tpu.vector_store %arg7[%c0_25, %c0_26, %c0_27], %43 {strides = array<i32>} : memref<1x1x128xf32, #tpu.memory_space<vmem>>, vector<1x1x128xf32>,
        %c0_28 = arith.constant 0 : index
        %c0_29 = arith.constant 0 : index
        %c0_30 = arith.constant 0 : index
        %44 = vector.load %arg8[%c0_28, %c0_29, %c0_30] : memref<1x1x128xf32, #tpu.memory_space<vmem>>, vector<1x1x128xf32>
        %45 = vector.shape_cast %44 : vector<1x1x128xf32> to vector<1x128xf32>
        %46 = vector.shape_cast %34 : vector<1x128xf32> to vector<1x1x128xf32>
        tpu.vector_store %arg8[%c0_28, %c0_29, %c0_30], %46 {strides = array<i32>} : memref<1x1x128xf32, #tpu.memory_space<vmem>>, vector<1x1x128xf32>,
      } else {
      }
      %c0_i32_23 = arith.constant 0 : i32
      %38 = arith.cmpi ne, %arg1, %c0_i32_23 : i32
      %39 = arith.extui %38 : i1 to i32
      %c0_i32_24 = arith.constant 0 : i32
      %40 = arith.cmpi ne, %39, %c0_i32_24 : i32
      scf.if %40 {
        %c0_25 = arith.constant 0 : index
        %c0_26 = arith.constant 0 : index
        %c0_27 = arith.constant 0 : index
        %41 = vector.load %arg7[%c0_25, %c0_26, %c0_27] : memref<1x1x128xf32, #tpu.memory_space<vmem>>, vector<1x1x128xf32>
        %42 = vector.shape_cast %41 : vector<1x1x128xf32> to vector<1x128xf32>
        %43 = arith.addf %42, %31 : vector<1x128xf32>
        %c0_28 = arith.constant 0 : index
        %c0_29 = arith.constant 0 : index
        %c0_30 = arith.constant 0 : index
        %44 = vector.load %arg7[%c0_28, %c0_29, %c0_30] : memref<1x1x128xf32, #tpu.memory_space<vmem>>, vector<1x1x128xf32>
        %45 = vector.shape_cast %44 : vector<1x1x128xf32> to vector<1x128xf32>
        %46 = vector.shape_cast %43 : vector<1x128xf32> to vector<1x1x128xf32>
        tpu.vector_store %arg7[%c0_28, %c0_29, %c0_30], %46 {strides = array<i32>} : memref<1x1x128xf32, #tpu.memory_space<vmem>>, vector<1x1x128xf32>,
        %c0_31 = arith.constant 0 : index
        %c0_32 = arith.constant 0 : index
        %c0_33 = arith.constant 0 : index
        %47 = vector.load %arg8[%c0_31, %c0_32, %c0_33] : memref<1x1x128xf32, #tpu.memory_space<vmem>>, vector<1x1x128xf32>
        %48 = vector.shape_cast %47 : vector<1x1x128xf32> to vector<1x128xf32>
        %49 = arith.addf %48, %34 : vector<1x128xf32>
        %c0_34 = arith.constant 0 : index
        %c0_35 = arith.constant 0 : index
        %c0_36 = arith.constant 0 : index
        %50 = vector.load %arg8[%c0_34, %c0_35, %c0_36] : memref<1x1x128xf32, #tpu.memory_space<vmem>>, vector<1x1x128xf32>
        %51 = vector.shape_cast %50 : vector<1x1x128xf32> to vector<1x128xf32>
        %52 = vector.shape_cast %49 : vector<1x128xf32> to vector<1x1x128xf32>
        tpu.vector_store %arg8[%c0_34, %c0_35, %c0_36], %52 {strides = array<i32>} : memref<1x1x128xf32, #tpu.memory_space<vmem>>, vector<1x1x128xf32>,
      } else {
      }
    } else {
    }
    return
  }
  func.func @transform_0(%arg0: i32, %arg1: i32, %arg2: i32) -> (i32, i32, i32) {
    %c0_i32 = arith.constant 0 : i32
    return %arg0, %arg1, %arg2 : i32, i32, i32
  }
  func.func @transform_1(%arg0: i32, %arg1: i32, %arg2: i32) -> (i32, i32) {
    %c0_i32 = arith.constant 0 : i32
    %c0_i32_0 = arith.constant 0 : i32
    return %arg2, %c0_i32 : i32, i32
  }
  func.func @transform_2(%arg0: i32, %arg1: i32, %arg2: i32) -> (i32, i32) {
    %c0_i32 = arith.constant 0 : i32
    %c0_i32_0 = arith.constant 0 : i32
    %c0_i32_1 = arith.constant 0 : i32
    return %c0_i32, %c0_i32_0 : i32, i32
  }
  func.func @transform_3(%arg0: i32, %arg1: i32, %arg2: i32) -> (i32, i32, i32) {
    %c0_i32 = arith.constant 0 : i32
    %c0_i32_0 = arith.constant 0 : i32
    return %arg0, %arg1, %c0_i32 : i32, i32, i32
  }
  func.func @transform_4(%arg0: i32, %arg1: i32, %arg2: i32) -> (i32, i32, i32) {
    %c0_i32 = arith.constant 0 : i32
    %c0_i32_0 = arith.constant 0 : i32
    %c0_i32_1 = arith.constant 0 : i32
    return %arg0, %c0_i32, %c0_i32_0 : i32, i32, i32
  }
  func.func @transform_5(%arg0: i32, %arg1: i32, %arg2: i32) -> (i32, i32, i32) {
    %c0_i32 = arith.constant 0 : i32
    %c0_i32_0 = arith.constant 0 : i32
    %c0_i32_1 = arith.constant 0 : i32
    return %arg0, %c0_i32, %c0_i32_0 : i32, i32, i32
  }
}

module attributes {stable_mosaic.version = 11 : i64} {
  func.func @_instnorm_lrelu_kernel(%arg0: i32, %arg1: i32, %arg2: memref<1x64x128xf32, #tpu.memory_space<vmem>>, %arg3: memref<1x1x128xf32, #tpu.memory_space<vmem>>, %arg4: memref<1x1x128xf32, #tpu.memory_space<vmem>>, %arg5: memref<1x64x128xbf16, #tpu.memory_space<vmem>>) attributes {dimension_semantics = [#tpu.dimension_semantics<parallel>, #tpu.dimension_semantics<parallel>], iteration_bounds = array<i64: 2, 1>, scalar_prefetch = 0 : i64, scratch_operands = 0 : i64, tpu.core_type = #tpu.core_type<tc>, window_params = [{transform_indices = @transform_0, window_bounds = array<i64: 1, 64, 128>}, {transform_indices = @transform_1, window_bounds = array<i64: 1, 1, 128>}, {transform_indices = @transform_2, window_bounds = array<i64: 1, 1, 128>}, {transform_indices = @transform_3, window_bounds = array<i64: 1, 64, 128>}]} {
    %c0 = arith.constant 0 : index
    %c0_0 = arith.constant 0 : index
    %c0_1 = arith.constant 0 : index
    %0 = vector.load %arg2[%c0, %c0_0, %c0_1] : memref<1x64x128xf32, #tpu.memory_space<vmem>>, vector<1x64x128xf32>
    %1 = vector.shape_cast %0 : vector<1x64x128xf32> to vector<64x128xf32>
    %c0_2 = arith.constant 0 : index
    %c0_3 = arith.constant 0 : index
    %c0_4 = arith.constant 0 : index
    %2 = vector.load %arg3[%c0_2, %c0_3, %c0_4] : memref<1x1x128xf32, #tpu.memory_space<vmem>>, vector<1x1x128xf32>
    %3 = vector.shape_cast %2 : vector<1x1x128xf32> to vector<1x128xf32>
    %cst = arith.constant 1.562500e-02 : f32
    %4 = vector.broadcast %cst : f32 to vector<1x128xf32>
    %5 = arith.mulf %3, %4 : vector<1x128xf32>
    %c0_5 = arith.constant 0 : index
    %c0_6 = arith.constant 0 : index
    %c0_7 = arith.constant 0 : index
    %6 = vector.load %arg4[%c0_5, %c0_6, %c0_7] : memref<1x1x128xf32, #tpu.memory_space<vmem>>, vector<1x1x128xf32>
    %7 = vector.shape_cast %6 : vector<1x1x128xf32> to vector<1x128xf32>
    %cst_8 = arith.constant 1.562500e-02 : f32
    %8 = vector.broadcast %cst_8 : f32 to vector<1x128xf32>
    %9 = arith.mulf %7, %8 : vector<1x128xf32>
    %10 = arith.mulf %5, %5 : vector<1x128xf32>
    %11 = arith.subf %9, %10 : vector<1x128xf32>
    %cst_9 = arith.constant 0.000000e+00 : f32
    %12 = vector.broadcast %cst_9 : f32 to vector<1x128xf32>
    %13 = arith.maximumf %11, %12 : vector<1x128xf32>
    %14 = vector.broadcast %5 : vector<1x128xf32> to vector<64x128xf32>
    %15 = arith.subf %1, %14 : vector<64x128xf32>
    %cst_10 = arith.constant 9.99999974E-6 : f32
    %16 = vector.broadcast %cst_10 : f32 to vector<1x128xf32>
    %17 = arith.addf %13, %16 : vector<1x128xf32>
    %18 = math.rsqrt %17 : vector<1x128xf32>
    %19 = vector.broadcast %18 : vector<1x128xf32> to vector<64x128xf32>
    %20 = arith.mulf %15, %19 : vector<64x128xf32>
    %cst_11 = arith.constant 0.000000e+00 : f32
    %21 = vector.broadcast %cst_11 : f32 to vector<64x128xf32>
    %22 = arith.cmpf ogt, %20, %21 : vector<64x128xf32>
    %cst_12 = arith.constant 2.000000e-01 : f32
    %23 = vector.broadcast %cst_12 : f32 to vector<64x128xf32>
    %24 = arith.mulf %23, %20 : vector<64x128xf32>
    %25 = arith.select %22, %20, %24 : vector<64x128xi1>, vector<64x128xf32>
    %26 = arith.truncf %25 : vector<64x128xf32> to vector<64x128xbf16>
    %c0_13 = arith.constant 0 : index
    %c0_14 = arith.constant 0 : index
    %c0_15 = arith.constant 0 : index
    %27 = vector.load %arg5[%c0_13, %c0_14, %c0_15] : memref<1x64x128xbf16, #tpu.memory_space<vmem>>, vector<1x64x128xbf16>
    %28 = vector.shape_cast %27 : vector<1x64x128xbf16> to vector<64x128xbf16>
    %29 = vector.shape_cast %26 : vector<64x128xbf16> to vector<1x64x128xbf16>
    tpu.vector_store %arg5[%c0_13, %c0_14, %c0_15], %29 {strides = array<i32>} : memref<1x64x128xbf16, #tpu.memory_space<vmem>>, vector<1x64x128xbf16>,
    return
  }
  func.func @transform_0(%arg0: i32, %arg1: i32) -> (i32, i32, i32) {
    %c0_i32 = arith.constant 0 : i32
    %c0_i32_0 = arith.constant 0 : i32
    return %arg0, %arg1, %c0_i32 : i32, i32, i32
  }
  func.func @transform_1(%arg0: i32, %arg1: i32) -> (i32, i32, i32) {
    %c0_i32 = arith.constant 0 : i32
    %c0_i32_0 = arith.constant 0 : i32
    %c0_i32_1 = arith.constant 0 : i32
    return %arg0, %c0_i32, %c0_i32_0 : i32, i32, i32
  }
  func.func @transform_2(%arg0: i32, %arg1: i32) -> (i32, i32, i32) {
    %c0_i32 = arith.constant 0 : i32
    %c0_i32_0 = arith.constant 0 : i32
    %c0_i32_1 = arith.constant 0 : i32
    return %arg0, %c0_i32, %c0_i32_0 : i32, i32, i32
  }
  func.func @transform_3(%arg0: i32, %arg1: i32) -> (i32, i32, i32) {
    %c0_i32 = arith.constant 0 : i32
    %c0_i32_0 = arith.constant 0 : i32
    return %arg0, %arg1, %c0_i32 : i32, i32, i32
  }
}

module attributes {stable_mosaic.version = 11 : i64} {
  func.func @_conv_matmul_kernel(%arg0: i32, %arg1: i32, %arg2: i32, %arg3: memref<1x16x512xbf16, #tpu.memory_space<vmem>>, %arg4: memref<512x256xbf16, #tpu.memory_space<vmem>>, %arg5: memref<1x256xf32, #tpu.memory_space<vmem>>, %arg6: memref<1x16x256xf32, #tpu.memory_space<vmem>>, %arg7: memref<1x1x256xf32, #tpu.memory_space<vmem>>, %arg8: memref<1x1x256xf32, #tpu.memory_space<vmem>>, %arg9: memref<16x256xf32, #tpu.memory_space<vmem>>) attributes {dimension_semantics = [#tpu.dimension_semantics<parallel>, #tpu.dimension_semantics<arbitrary>, #tpu.dimension_semantics<arbitrary>], iteration_bounds = array<i64: 2, 1, 4>, scalar_prefetch = 0 : i64, scratch_operands = 1 : i64, tpu.core_type = #tpu.core_type<tc>, window_params = [{transform_indices = @transform_0, window_bounds = array<i64: 1, 16, 512>}, {transform_indices = @transform_1, window_bounds = array<i64: 512, 256>}, {pipeline_mode = #tpu.pipeline_mode<synchronous>, transform_indices = @transform_2, window_bounds = array<i64: 1, 256>}, {transform_indices = @transform_3, window_bounds = array<i64: 1, 16, 256>}, {transform_indices = @transform_4, window_bounds = array<i64: 1, 1, 256>}, {transform_indices = @transform_5, window_bounds = array<i64: 1, 1, 256>}]} {
    %c0_i32 = arith.constant 0 : i32
    %0 = arith.cmpi eq, %arg2, %c0_i32 : i32
    %1 = arith.extui %0 : i1 to i32
    %c0_i32_0 = arith.constant 0 : i32
    %2 = arith.cmpi ne, %1, %c0_i32_0 : i32
    scf.if %2 {
      %cst_10 = arith.constant 0.000000e+00 : f32
      %13 = vector.broadcast %cst_10 : f32 to vector<16x256xf32>
      %c0_11 = arith.constant 0 : index
      %c0_12 = arith.constant 0 : index
      %14 = vector.load %arg9[%c0_11, %c0_12] : memref<16x256xf32, #tpu.memory_space<vmem>>, vector<16x256xf32>
      tpu.vector_store %arg9[%c0_11, %c0_12], %13 {strides = array<i32>} : memref<16x256xf32, #tpu.memory_space<vmem>>, vector<16x256xf32>,
    } else {
    }
    %c0 = arith.constant 0 : index
    %c0_1 = arith.constant 0 : index
    %3 = vector.load %arg9[%c0, %c0_1] : memref<16x256xf32, #tpu.memory_space<vmem>>, vector<16x256xf32>
    %c0_2 = arith.constant 0 : index
    %c0_3 = arith.constant 0 : index
    %c0_4 = arith.constant 0 : index
    %4 = vector.load %arg3[%c0_2, %c0_3, %c0_4] : memref<1x16x512xbf16, #tpu.memory_space<vmem>>, vector<1x16x512xbf16>
    %5 = vector.shape_cast %4 : vector<1x16x512xbf16> to vector<16x512xbf16>
    %c0_5 = arith.constant 0 : index
    %c0_6 = arith.constant 0 : index
    %6 = vector.load %arg4[%c0_5, %c0_6] : memref<512x256xbf16, #tpu.memory_space<vmem>>, vector<512x256xbf16>
    %cst = arith.constant dense<0.000000e+00> : vector<16x256xf32>
    %7 = tpu.matmul %5, %6, %cst {dimension_numbers = #tpu.dot_dimension_numbers<[1], [0], [0], [1], [0, 0, 1, 1], [], []>} : vector<16x512xbf16>, vector<512x256xbf16>, vector<16x256xf32> -> vector<16x256xf32>
    %8 = arith.addf %3, %7 : vector<16x256xf32>
    %c0_7 = arith.constant 0 : index
    %c0_8 = arith.constant 0 : index
    %9 = vector.load %arg9[%c0_7, %c0_8] : memref<16x256xf32, #tpu.memory_space<vmem>>, vector<16x256xf32>
    tpu.vector_store %arg9[%c0_7, %c0_8], %8 {strides = array<i32>} : memref<16x256xf32, #tpu.memory_space<vmem>>, vector<16x256xf32>,
    %c3_i32 = arith.constant 3 : i32
    %10 = arith.cmpi eq, %arg2, %c3_i32 : i32
    %11 = arith.extui %10 : i1 to i32
    %c0_i32_9 = arith.constant 0 : i32
    %12 = arith.cmpi ne, %11, %c0_i32_9 : i32
    scf.if %12 {
      %c0_10 = arith.constant 0 : index
      %c0_11 = arith.constant 0 : index
      %13 = vector.load %arg9[%c0_10, %c0_11] : memref<16x256xf32, #tpu.memory_space<vmem>>, vector<16x256xf32>
      %c0_12 = arith.constant 0 : index
      %c0_13 = arith.constant 0 : index
      %14 = vector.load %arg5[%c0_12, %c0_13] : memref<1x256xf32, #tpu.memory_space<vmem>>, vector<1x256xf32>
      %15 = vector.broadcast %14 : vector<1x256xf32> to vector<16x256xf32>
      %16 = arith.addf %13, %15 : vector<16x256xf32>
      %c0_14 = arith.constant 0 : index
      %c0_15 = arith.constant 0 : index
      %c0_16 = arith.constant 0 : index
      %17 = vector.load %arg6[%c0_14, %c0_15, %c0_16] : memref<1x16x256xf32, #tpu.memory_space<vmem>>, vector<1x16x256xf32>
      %18 = vector.shape_cast %17 : vector<1x16x256xf32> to vector<16x256xf32>
      %19 = vector.shape_cast %16 : vector<16x256xf32> to vector<1x16x256xf32>
      tpu.vector_store %arg6[%c0_14, %c0_15, %c0_16], %19 {strides = array<i32>} : memref<1x16x256xf32, #tpu.memory_space<vmem>>, vector<1x16x256xf32>,
      %20 = tpu.iota {dimensions = array<i32: 0>} : vector<16x1xi32>
      %c16_i32 = arith.constant 16 : i32
      %21 = arith.muli %arg1, %c16_i32 : i32
      %22 = vector.broadcast %21 : i32 to vector<16x1xi32>
      %23 = arith.addi %20, %22 : vector<16x1xi32>
      %c16_i32_17 = arith.constant 16 : i32
      %24 = vector.broadcast %c16_i32_17 : i32 to vector<16x1xi32>
      %25 = arith.cmpi slt, %23, %24 : vector<16x1xi32>
      %cst_18 = arith.constant 0.000000e+00 : f32
      %26 = vector.shape_cast %25 : vector<16x1xi1> to vector<16x1xi1>
      %27 = vector.broadcast %26 : vector<16x1xi1> to vector<16x256xi1>
      %28 = vector.broadcast %cst_18 : f32 to vector<16x256xf32>
      %29 = arith.select %27, %16, %28 : vector<16x256xi1>, vector<16x256xf32>
      %cst_19 = arith.constant dense<0.000000e+00> : vector<256xf32>
      %30 = vector.multi_reduction <add>, %29, %cst_19 [0] : vector<16x256xf32> to vector<256xf32>
      %31 = vector.shape_cast %30 : vector<256xf32> to vector<1x256xf32>
      %32 = arith.mulf %29, %29 : vector<16x256xf32>
      %cst_20 = arith.constant dense<0.000000e+00> : vector<256xf32>
      %33 = vector.multi_reduction <add>, %32, %cst_20 [0] : vector<16x256xf32> to vector<256xf32>
      %34 = vector.shape_cast %33 : vector<256xf32> to vector<1x256xf32>
      %c0_i32_21 = arith.constant 0 : i32
      %35 = arith.cmpi eq, %arg1, %c0_i32_21 : i32
      %36 = arith.extui %35 : i1 to i32
      %c0_i32_22 = arith.constant 0 : i32
      %37 = arith.cmpi ne, %36, %c0_i32_22 : i32
      scf.if %37 {
        %c0_25 = arith.constant 0 : index
        %c0_26 = arith.constant 0 : index
        %c0_27 = arith.constant 0 : index
        %41 = vector.load %arg7[%c0_25, %c0_26, %c0_27] : memref<1x1x256xf32, #tpu.memory_space<vmem>>, vector<1x1x256xf32>
        %42 = vector.shape_cast %41 : vector<1x1x256xf32> to vector<1x256xf32>
        %43 = vector.shape_cast %31 : vector<1x256xf32> to vector<1x1x256xf32>
        tpu.vector_store %arg7[%c0_25, %c0_26, %c0_27], %43 {strides = array<i32>} : memref<1x1x256xf32, #tpu.memory_space<vmem>>, vector<1x1x256xf32>,
        %c0_28 = arith.constant 0 : index
        %c0_29 = arith.constant 0 : index
        %c0_30 = arith.constant 0 : index
        %44 = vector.load %arg8[%c0_28, %c0_29, %c0_30] : memref<1x1x256xf32, #tpu.memory_space<vmem>>, vector<1x1x256xf32>
        %45 = vector.shape_cast %44 : vector<1x1x256xf32> to vector<1x256xf32>
        %46 = vector.shape_cast %34 : vector<1x256xf32> to vector<1x1x256xf32>
        tpu.vector_store %arg8[%c0_28, %c0_29, %c0_30], %46 {strides = array<i32>} : memref<1x1x256xf32, #tpu.memory_space<vmem>>, vector<1x1x256xf32>,
      } else {
      }
      %c0_i32_23 = arith.constant 0 : i32
      %38 = arith.cmpi ne, %arg1, %c0_i32_23 : i32
      %39 = arith.extui %38 : i1 to i32
      %c0_i32_24 = arith.constant 0 : i32
      %40 = arith.cmpi ne, %39, %c0_i32_24 : i32
      scf.if %40 {
        %c0_25 = arith.constant 0 : index
        %c0_26 = arith.constant 0 : index
        %c0_27 = arith.constant 0 : index
        %41 = vector.load %arg7[%c0_25, %c0_26, %c0_27] : memref<1x1x256xf32, #tpu.memory_space<vmem>>, vector<1x1x256xf32>
        %42 = vector.shape_cast %41 : vector<1x1x256xf32> to vector<1x256xf32>
        %43 = arith.addf %42, %31 : vector<1x256xf32>
        %c0_28 = arith.constant 0 : index
        %c0_29 = arith.constant 0 : index
        %c0_30 = arith.constant 0 : index
        %44 = vector.load %arg7[%c0_28, %c0_29, %c0_30] : memref<1x1x256xf32, #tpu.memory_space<vmem>>, vector<1x1x256xf32>
        %45 = vector.shape_cast %44 : vector<1x1x256xf32> to vector<1x256xf32>
        %46 = vector.shape_cast %43 : vector<1x256xf32> to vector<1x1x256xf32>
        tpu.vector_store %arg7[%c0_28, %c0_29, %c0_30], %46 {strides = array<i32>} : memref<1x1x256xf32, #tpu.memory_space<vmem>>, vector<1x1x256xf32>,
        %c0_31 = arith.constant 0 : index
        %c0_32 = arith.constant 0 : index
        %c0_33 = arith.constant 0 : index
        %47 = vector.load %arg8[%c0_31, %c0_32, %c0_33] : memref<1x1x256xf32, #tpu.memory_space<vmem>>, vector<1x1x256xf32>
        %48 = vector.shape_cast %47 : vector<1x1x256xf32> to vector<1x256xf32>
        %49 = arith.addf %48, %34 : vector<1x256xf32>
        %c0_34 = arith.constant 0 : index
        %c0_35 = arith.constant 0 : index
        %c0_36 = arith.constant 0 : index
        %50 = vector.load %arg8[%c0_34, %c0_35, %c0_36] : memref<1x1x256xf32, #tpu.memory_space<vmem>>, vector<1x1x256xf32>
        %51 = vector.shape_cast %50 : vector<1x1x256xf32> to vector<1x256xf32>
        %52 = vector.shape_cast %49 : vector<1x256xf32> to vector<1x1x256xf32>
        tpu.vector_store %arg8[%c0_34, %c0_35, %c0_36], %52 {strides = array<i32>} : memref<1x1x256xf32, #tpu.memory_space<vmem>>, vector<1x1x256xf32>,
      } else {
      }
    } else {
    }
    return
  }
  func.func @transform_0(%arg0: i32, %arg1: i32, %arg2: i32) -> (i32, i32, i32) {
    %c0_i32 = arith.constant 0 : i32
    return %arg0, %arg1, %arg2 : i32, i32, i32
  }
  func.func @transform_1(%arg0: i32, %arg1: i32, %arg2: i32) -> (i32, i32) {
    %c0_i32 = arith.constant 0 : i32
    %c0_i32_0 = arith.constant 0 : i32
    return %arg2, %c0_i32 : i32, i32
  }
  func.func @transform_2(%arg0: i32, %arg1: i32, %arg2: i32) -> (i32, i32) {
    %c0_i32 = arith.constant 0 : i32
    %c0_i32_0 = arith.constant 0 : i32
    %c0_i32_1 = arith.constant 0 : i32
    return %c0_i32, %c0_i32_0 : i32, i32
  }
  func.func @transform_3(%arg0: i32, %arg1: i32, %arg2: i32) -> (i32, i32, i32) {
    %c0_i32 = arith.constant 0 : i32
    %c0_i32_0 = arith.constant 0 : i32
    return %arg0, %arg1, %c0_i32 : i32, i32, i32
  }
  func.func @transform_4(%arg0: i32, %arg1: i32, %arg2: i32) -> (i32, i32, i32) {
    %c0_i32 = arith.constant 0 : i32
    %c0_i32_0 = arith.constant 0 : i32
    %c0_i32_1 = arith.constant 0 : i32
    return %arg0, %c0_i32, %c0_i32_0 : i32, i32, i32
  }
  func.func @transform_5(%arg0: i32, %arg1: i32, %arg2: i32) -> (i32, i32, i32) {
    %c0_i32 = arith.constant 0 : i32
    %c0_i32_0 = arith.constant 0 : i32
    %c0_i32_1 = arith.constant 0 : i32
    return %arg0, %c0_i32, %c0_i32_0 : i32, i32, i32
  }
}

module attributes {stable_mosaic.version = 11 : i64} {
  func.func @_instnorm_lrelu_kernel(%arg0: i32, %arg1: i32, %arg2: memref<1x16x256xf32, #tpu.memory_space<vmem>>, %arg3: memref<1x1x256xf32, #tpu.memory_space<vmem>>, %arg4: memref<1x1x256xf32, #tpu.memory_space<vmem>>, %arg5: memref<1x16x256xbf16, #tpu.memory_space<vmem>>) attributes {dimension_semantics = [#tpu.dimension_semantics<parallel>, #tpu.dimension_semantics<parallel>], iteration_bounds = array<i64: 2, 1>, scalar_prefetch = 0 : i64, scratch_operands = 0 : i64, tpu.core_type = #tpu.core_type<tc>, window_params = [{transform_indices = @transform_0, window_bounds = array<i64: 1, 16, 256>}, {transform_indices = @transform_1, window_bounds = array<i64: 1, 1, 256>}, {transform_indices = @transform_2, window_bounds = array<i64: 1, 1, 256>}, {transform_indices = @transform_3, window_bounds = array<i64: 1, 16, 256>}]} {
    %c0 = arith.constant 0 : index
    %c0_0 = arith.constant 0 : index
    %c0_1 = arith.constant 0 : index
    %0 = vector.load %arg2[%c0, %c0_0, %c0_1] : memref<1x16x256xf32, #tpu.memory_space<vmem>>, vector<1x16x256xf32>
    %1 = vector.shape_cast %0 : vector<1x16x256xf32> to vector<16x256xf32>
    %c0_2 = arith.constant 0 : index
    %c0_3 = arith.constant 0 : index
    %c0_4 = arith.constant 0 : index
    %2 = vector.load %arg3[%c0_2, %c0_3, %c0_4] : memref<1x1x256xf32, #tpu.memory_space<vmem>>, vector<1x1x256xf32>
    %3 = vector.shape_cast %2 : vector<1x1x256xf32> to vector<1x256xf32>
    %cst = arith.constant 6.250000e-02 : f32
    %4 = vector.broadcast %cst : f32 to vector<1x256xf32>
    %5 = arith.mulf %3, %4 : vector<1x256xf32>
    %c0_5 = arith.constant 0 : index
    %c0_6 = arith.constant 0 : index
    %c0_7 = arith.constant 0 : index
    %6 = vector.load %arg4[%c0_5, %c0_6, %c0_7] : memref<1x1x256xf32, #tpu.memory_space<vmem>>, vector<1x1x256xf32>
    %7 = vector.shape_cast %6 : vector<1x1x256xf32> to vector<1x256xf32>
    %cst_8 = arith.constant 6.250000e-02 : f32
    %8 = vector.broadcast %cst_8 : f32 to vector<1x256xf32>
    %9 = arith.mulf %7, %8 : vector<1x256xf32>
    %10 = arith.mulf %5, %5 : vector<1x256xf32>
    %11 = arith.subf %9, %10 : vector<1x256xf32>
    %cst_9 = arith.constant 0.000000e+00 : f32
    %12 = vector.broadcast %cst_9 : f32 to vector<1x256xf32>
    %13 = arith.maximumf %11, %12 : vector<1x256xf32>
    %14 = vector.broadcast %5 : vector<1x256xf32> to vector<16x256xf32>
    %15 = arith.subf %1, %14 : vector<16x256xf32>
    %cst_10 = arith.constant 9.99999974E-6 : f32
    %16 = vector.broadcast %cst_10 : f32 to vector<1x256xf32>
    %17 = arith.addf %13, %16 : vector<1x256xf32>
    %18 = math.rsqrt %17 : vector<1x256xf32>
    %19 = vector.broadcast %18 : vector<1x256xf32> to vector<16x256xf32>
    %20 = arith.mulf %15, %19 : vector<16x256xf32>
    %cst_11 = arith.constant 0.000000e+00 : f32
    %21 = vector.broadcast %cst_11 : f32 to vector<16x256xf32>
    %22 = arith.cmpf ogt, %20, %21 : vector<16x256xf32>
    %cst_12 = arith.constant 2.000000e-01 : f32
    %23 = vector.broadcast %cst_12 : f32 to vector<16x256xf32>
    %24 = arith.mulf %23, %20 : vector<16x256xf32>
    %25 = arith.select %22, %20, %24 : vector<16x256xi1>, vector<16x256xf32>
    %26 = arith.truncf %25 : vector<16x256xf32> to vector<16x256xbf16>
    %c0_13 = arith.constant 0 : index
    %c0_14 = arith.constant 0 : index
    %c0_15 = arith.constant 0 : index
    %27 = vector.load %arg5[%c0_13, %c0_14, %c0_15] : memref<1x16x256xbf16, #tpu.memory_space<vmem>>, vector<1x16x256xbf16>
    %28 = vector.shape_cast %27 : vector<1x16x256xbf16> to vector<16x256xbf16>
    %29 = vector.shape_cast %26 : vector<16x256xbf16> to vector<1x16x256xbf16>
    tpu.vector_store %arg5[%c0_13, %c0_14, %c0_15], %29 {strides = array<i32>} : memref<1x16x256xbf16, #tpu.memory_space<vmem>>, vector<1x16x256xbf16>,
    return
  }
  func.func @transform_0(%arg0: i32, %arg1: i32) -> (i32, i32, i32) {
    %c0_i32 = arith.constant 0 : i32
    %c0_i32_0 = arith.constant 0 : i32
    return %arg0, %arg1, %c0_i32 : i32, i32, i32
  }
  func.func @transform_1(%arg0: i32, %arg1: i32) -> (i32, i32, i32) {
    %c0_i32 = arith.constant 0 : i32
    %c0_i32_0 = arith.constant 0 : i32
    %c0_i32_1 = arith.constant 0 : i32
    return %arg0, %c0_i32, %c0_i32_0 : i32, i32, i32
  }
  func.func @transform_2(%arg0: i32, %arg1: i32) -> (i32, i32, i32) {
    %c0_i32 = arith.constant 0 : i32
    %c0_i32_0 = arith.constant 0 : i32
    %c0_i32_1 = arith.constant 0 : i32
    return %arg0, %c0_i32, %c0_i32_0 : i32, i32, i32
  }
  func.func @transform_3(%arg0: i32, %arg1: i32) -> (i32, i32, i32) {
    %c0_i32 = arith.constant 0 : i32
    %c0_i32_0 = arith.constant 0 : i32
    return %arg0, %arg1, %c0_i32 : i32, i32, i32
  }
}

module attributes {stable_mosaic.version = 11 : i64} {
  func.func @_conv_matmul_kernel(%arg0: i32, %arg1: i32, %arg2: i32, %arg3: memref<1x9x512xbf16, #tpu.memory_space<vmem>>, %arg4: memref<512x512xbf16, #tpu.memory_space<vmem>>, %arg5: memref<1x512xf32, #tpu.memory_space<vmem>>, %arg6: memref<1x9x512xf32, #tpu.memory_space<vmem>>, %arg7: memref<1x1x512xf32, #tpu.memory_space<vmem>>, %arg8: memref<1x1x512xf32, #tpu.memory_space<vmem>>, %arg9: memref<9x512xf32, #tpu.memory_space<vmem>>) attributes {dimension_semantics = [#tpu.dimension_semantics<parallel>, #tpu.dimension_semantics<arbitrary>, #tpu.dimension_semantics<arbitrary>], iteration_bounds = array<i64: 2, 1, 8>, scalar_prefetch = 0 : i64, scratch_operands = 1 : i64, tpu.core_type = #tpu.core_type<tc>, window_params = [{transform_indices = @transform_0, window_bounds = array<i64: 1, 9, 512>}, {transform_indices = @transform_1, window_bounds = array<i64: 512, 512>}, {pipeline_mode = #tpu.pipeline_mode<synchronous>, transform_indices = @transform_2, window_bounds = array<i64: 1, 512>}, {transform_indices = @transform_3, window_bounds = array<i64: 1, 9, 512>}, {transform_indices = @transform_4, window_bounds = array<i64: 1, 1, 512>}, {transform_indices = @transform_5, window_bounds = array<i64: 1, 1, 512>}]} {
    %c0_i32 = arith.constant 0 : i32
    %0 = arith.cmpi eq, %arg2, %c0_i32 : i32
    %1 = arith.extui %0 : i1 to i32
    %c0_i32_0 = arith.constant 0 : i32
    %2 = arith.cmpi ne, %1, %c0_i32_0 : i32
    scf.if %2 {
      %cst_10 = arith.constant 0.000000e+00 : f32
      %13 = vector.broadcast %cst_10 : f32 to vector<9x512xf32>
      %c0_11 = arith.constant 0 : index
      %c0_12 = arith.constant 0 : index
      %14 = vector.load %arg9[%c0_11, %c0_12] : memref<9x512xf32, #tpu.memory_space<vmem>>, vector<9x512xf32>
      tpu.vector_store %arg9[%c0_11, %c0_12], %13 {strides = array<i32>} : memref<9x512xf32, #tpu.memory_space<vmem>>, vector<9x512xf32>,
    } else {
    }
    %c0 = arith.constant 0 : index
    %c0_1 = arith.constant 0 : index
    %3 = vector.load %arg9[%c0, %c0_1] : memref<9x512xf32, #tpu.memory_space<vmem>>, vector<9x512xf32>
    %c0_2 = arith.constant 0 : index
    %c0_3 = arith.constant 0 : index
    %c0_4 = arith.constant 0 : index
    %4 = vector.load %arg3[%c0_2, %c0_3, %c0_4] : memref<1x9x512xbf16, #tpu.memory_space<vmem>>, vector<1x9x512xbf16>
    %5 = vector.shape_cast %4 : vector<1x9x512xbf16> to vector<9x512xbf16>
    %c0_5 = arith.constant 0 : index
    %c0_6 = arith.constant 0 : index
    %6 = vector.load %arg4[%c0_5, %c0_6] : memref<512x512xbf16, #tpu.memory_space<vmem>>, vector<512x512xbf16>
    %cst = arith.constant dense<0.000000e+00> : vector<9x512xf32>
    %7 = tpu.matmul %5, %6, %cst {dimension_numbers = #tpu.dot_dimension_numbers<[1], [0], [0], [1], [0, 0, 1, 1], [], []>} : vector<9x512xbf16>, vector<512x512xbf16>, vector<9x512xf32> -> vector<9x512xf32>
    %8 = arith.addf %3, %7 : vector<9x512xf32>
    %c0_7 = arith.constant 0 : index
    %c0_8 = arith.constant 0 : index
    %9 = vector.load %arg9[%c0_7, %c0_8] : memref<9x512xf32, #tpu.memory_space<vmem>>, vector<9x512xf32>
    tpu.vector_store %arg9[%c0_7, %c0_8], %8 {strides = array<i32>} : memref<9x512xf32, #tpu.memory_space<vmem>>, vector<9x512xf32>,
    %c7_i32 = arith.constant 7 : i32
    %10 = arith.cmpi eq, %arg2, %c7_i32 : i32
    %11 = arith.extui %10 : i1 to i32
    %c0_i32_9 = arith.constant 0 : i32
    %12 = arith.cmpi ne, %11, %c0_i32_9 : i32
    scf.if %12 {
      %c0_10 = arith.constant 0 : index
      %c0_11 = arith.constant 0 : index
      %13 = vector.load %arg9[%c0_10, %c0_11] : memref<9x512xf32, #tpu.memory_space<vmem>>, vector<9x512xf32>
      %c0_12 = arith.constant 0 : index
      %c0_13 = arith.constant 0 : index
      %14 = vector.load %arg5[%c0_12, %c0_13] : memref<1x512xf32, #tpu.memory_space<vmem>>, vector<1x512xf32>
      %15 = vector.broadcast %14 : vector<1x512xf32> to vector<9x512xf32>
      %16 = arith.addf %13, %15 : vector<9x512xf32>
      %c0_14 = arith.constant 0 : index
      %c0_15 = arith.constant 0 : index
      %c0_16 = arith.constant 0 : index
      %17 = vector.load %arg6[%c0_14, %c0_15, %c0_16] : memref<1x9x512xf32, #tpu.memory_space<vmem>>, vector<1x9x512xf32>
      %18 = vector.shape_cast %17 : vector<1x9x512xf32> to vector<9x512xf32>
      %19 = vector.shape_cast %16 : vector<9x512xf32> to vector<1x9x512xf32>
      tpu.vector_store %arg6[%c0_14, %c0_15, %c0_16], %19 {strides = array<i32>} : memref<1x9x512xf32, #tpu.memory_space<vmem>>, vector<1x9x512xf32>,
      %20 = tpu.iota {dimensions = array<i32: 0>} : vector<9x1xi32>
      %c9_i32 = arith.constant 9 : i32
      %21 = arith.muli %arg1, %c9_i32 : i32
      %22 = vector.broadcast %21 : i32 to vector<9x1xi32>
      %23 = arith.addi %20, %22 : vector<9x1xi32>
      %c9_i32_17 = arith.constant 9 : i32
      %24 = vector.broadcast %c9_i32_17 : i32 to vector<9x1xi32>
      %25 = arith.cmpi slt, %23, %24 : vector<9x1xi32>
      %cst_18 = arith.constant 0.000000e+00 : f32
      %26 = vector.shape_cast %25 : vector<9x1xi1> to vector<9x1xi1>
      %27 = vector.broadcast %26 : vector<9x1xi1> to vector<9x512xi1>
      %28 = vector.broadcast %cst_18 : f32 to vector<9x512xf32>
      %29 = arith.select %27, %16, %28 : vector<9x512xi1>, vector<9x512xf32>
      %cst_19 = arith.constant dense<0.000000e+00> : vector<512xf32>
      %30 = vector.multi_reduction <add>, %29, %cst_19 [0] : vector<9x512xf32> to vector<512xf32>
      %31 = vector.shape_cast %30 : vector<512xf32> to vector<1x512xf32>
      %32 = arith.mulf %29, %29 : vector<9x512xf32>
      %cst_20 = arith.constant dense<0.000000e+00> : vector<512xf32>
      %33 = vector.multi_reduction <add>, %32, %cst_20 [0] : vector<9x512xf32> to vector<512xf32>
      %34 = vector.shape_cast %33 : vector<512xf32> to vector<1x512xf32>
      %c0_i32_21 = arith.constant 0 : i32
      %35 = arith.cmpi eq, %arg1, %c0_i32_21 : i32
      %36 = arith.extui %35 : i1 to i32
      %c0_i32_22 = arith.constant 0 : i32
      %37 = arith.cmpi ne, %36, %c0_i32_22 : i32
      scf.if %37 {
        %c0_25 = arith.constant 0 : index
        %c0_26 = arith.constant 0 : index
        %c0_27 = arith.constant 0 : index
        %41 = vector.load %arg7[%c0_25, %c0_26, %c0_27] : memref<1x1x512xf32, #tpu.memory_space<vmem>>, vector<1x1x512xf32>
        %42 = vector.shape_cast %41 : vector<1x1x512xf32> to vector<1x512xf32>
        %43 = vector.shape_cast %31 : vector<1x512xf32> to vector<1x1x512xf32>
        tpu.vector_store %arg7[%c0_25, %c0_26, %c0_27], %43 {strides = array<i32>} : memref<1x1x512xf32, #tpu.memory_space<vmem>>, vector<1x1x512xf32>,
        %c0_28 = arith.constant 0 : index
        %c0_29 = arith.constant 0 : index
        %c0_30 = arith.constant 0 : index
        %44 = vector.load %arg8[%c0_28, %c0_29, %c0_30] : memref<1x1x512xf32, #tpu.memory_space<vmem>>, vector<1x1x512xf32>
        %45 = vector.shape_cast %44 : vector<1x1x512xf32> to vector<1x512xf32>
        %46 = vector.shape_cast %34 : vector<1x512xf32> to vector<1x1x512xf32>
        tpu.vector_store %arg8[%c0_28, %c0_29, %c0_30], %46 {strides = array<i32>} : memref<1x1x512xf32, #tpu.memory_space<vmem>>, vector<1x1x512xf32>,
      } else {
      }
      %c0_i32_23 = arith.constant 0 : i32
      %38 = arith.cmpi ne, %arg1, %c0_i32_23 : i32
      %39 = arith.extui %38 : i1 to i32
      %c0_i32_24 = arith.constant 0 : i32
      %40 = arith.cmpi ne, %39, %c0_i32_24 : i32
      scf.if %40 {
        %c0_25 = arith.constant 0 : index
        %c0_26 = arith.constant 0 : index
        %c0_27 = arith.constant 0 : index
        %41 = vector.load %arg7[%c0_25, %c0_26, %c0_27] : memref<1x1x512xf32, #tpu.memory_space<vmem>>, vector<1x1x512xf32>
        %42 = vector.shape_cast %41 : vector<1x1x512xf32> to vector<1x512xf32>
        %43 = arith.addf %42, %31 : vector<1x512xf32>
        %c0_28 = arith.constant 0 : index
        %c0_29 = arith.constant 0 : index
        %c0_30 = arith.constant 0 : index
        %44 = vector.load %arg7[%c0_28, %c0_29, %c0_30] : memref<1x1x512xf32, #tpu.memory_space<vmem>>, vector<1x1x512xf32>
        %45 = vector.shape_cast %44 : vector<1x1x512xf32> to vector<1x512xf32>
        %46 = vector.shape_cast %43 : vector<1x512xf32> to vector<1x1x512xf32>
        tpu.vector_store %arg7[%c0_28, %c0_29, %c0_30], %46 {strides = array<i32>} : memref<1x1x512xf32, #tpu.memory_space<vmem>>, vector<1x1x512xf32>,
        %c0_31 = arith.constant 0 : index
        %c0_32 = arith.constant 0 : index
        %c0_33 = arith.constant 0 : index
        %47 = vector.load %arg8[%c0_31, %c0_32, %c0_33] : memref<1x1x512xf32, #tpu.memory_space<vmem>>, vector<1x1x512xf32>
        %48 = vector.shape_cast %47 : vector<1x1x512xf32> to vector<1x512xf32>
        %49 = arith.addf %48, %34 : vector<1x512xf32>
        %c0_34 = arith.constant 0 : index
        %c0_35 = arith.constant 0 : index
        %c0_36 = arith.constant 0 : index
        %50 = vector.load %arg8[%c0_34, %c0_35, %c0_36] : memref<1x1x512xf32, #tpu.memory_space<vmem>>, vector<1x1x512xf32>
        %51 = vector.shape_cast %50 : vector<1x1x512xf32> to vector<1x512xf32>
        %52 = vector.shape_cast %49 : vector<1x512xf32> to vector<1x1x512xf32>
        tpu.vector_store %arg8[%c0_34, %c0_35, %c0_36], %52 {strides = array<i32>} : memref<1x1x512xf32, #tpu.memory_space<vmem>>, vector<1x1x512xf32>,
      } else {
      }
    } else {
    }
    return
  }
  func.func @transform_0(%arg0: i32, %arg1: i32, %arg2: i32) -> (i32, i32, i32) {
    %c0_i32 = arith.constant 0 : i32
    return %arg0, %arg1, %arg2 : i32, i32, i32
  }
  func.func @transform_1(%arg0: i32, %arg1: i32, %arg2: i32) -> (i32, i32) {
    %c0_i32 = arith.constant 0 : i32
    %c0_i32_0 = arith.constant 0 : i32
    return %arg2, %c0_i32 : i32, i32
  }
  func.func @transform_2(%arg0: i32, %arg1: i32, %arg2: i32) -> (i32, i32) {
    %c0_i32 = arith.constant 0 : i32
    %c0_i32_0 = arith.constant 0 : i32
    %c0_i32_1 = arith.constant 0 : i32
    return %c0_i32, %c0_i32_0 : i32, i32
  }
  func.func @transform_3(%arg0: i32, %arg1: i32, %arg2: i32) -> (i32, i32, i32) {
    %c0_i32 = arith.constant 0 : i32
    %c0_i32_0 = arith.constant 0 : i32
    return %arg0, %arg1, %c0_i32 : i32, i32, i32
  }
  func.func @transform_4(%arg0: i32, %arg1: i32, %arg2: i32) -> (i32, i32, i32) {
    %c0_i32 = arith.constant 0 : i32
    %c0_i32_0 = arith.constant 0 : i32
    %c0_i32_1 = arith.constant 0 : i32
    return %arg0, %c0_i32, %c0_i32_0 : i32, i32, i32
  }
  func.func @transform_5(%arg0: i32, %arg1: i32, %arg2: i32) -> (i32, i32, i32) {
    %c0_i32 = arith.constant 0 : i32
    %c0_i32_0 = arith.constant 0 : i32
    %c0_i32_1 = arith.constant 0 : i32
    return %arg0, %c0_i32, %c0_i32_0 : i32, i32, i32
  }
}

module attributes {stable_mosaic.version = 11 : i64} {
  func.func @_instnorm_lrelu_kernel(%arg0: i32, %arg1: i32, %arg2: memref<1x9x512xf32, #tpu.memory_space<vmem>>, %arg3: memref<1x1x512xf32, #tpu.memory_space<vmem>>, %arg4: memref<1x1x512xf32, #tpu.memory_space<vmem>>, %arg5: memref<1x9x512xbf16, #tpu.memory_space<vmem>>) attributes {dimension_semantics = [#tpu.dimension_semantics<parallel>, #tpu.dimension_semantics<parallel>], iteration_bounds = array<i64: 2, 1>, scalar_prefetch = 0 : i64, scratch_operands = 0 : i64, tpu.core_type = #tpu.core_type<tc>, window_params = [{transform_indices = @transform_0, window_bounds = array<i64: 1, 9, 512>}, {transform_indices = @transform_1, window_bounds = array<i64: 1, 1, 512>}, {transform_indices = @transform_2, window_bounds = array<i64: 1, 1, 512>}, {transform_indices = @transform_3, window_bounds = array<i64: 1, 9, 512>}]} {
    %c0 = arith.constant 0 : index
    %c0_0 = arith.constant 0 : index
    %c0_1 = arith.constant 0 : index
    %0 = vector.load %arg2[%c0, %c0_0, %c0_1] : memref<1x9x512xf32, #tpu.memory_space<vmem>>, vector<1x9x512xf32>
    %1 = vector.shape_cast %0 : vector<1x9x512xf32> to vector<9x512xf32>
    %c0_2 = arith.constant 0 : index
    %c0_3 = arith.constant 0 : index
    %c0_4 = arith.constant 0 : index
    %2 = vector.load %arg3[%c0_2, %c0_3, %c0_4] : memref<1x1x512xf32, #tpu.memory_space<vmem>>, vector<1x1x512xf32>
    %3 = vector.shape_cast %2 : vector<1x1x512xf32> to vector<1x512xf32>
    %cst = arith.constant 0.111111112 : f32
    %4 = vector.broadcast %cst : f32 to vector<1x512xf32>
    %5 = arith.mulf %3, %4 : vector<1x512xf32>
    %c0_5 = arith.constant 0 : index
    %c0_6 = arith.constant 0 : index
    %c0_7 = arith.constant 0 : index
    %6 = vector.load %arg4[%c0_5, %c0_6, %c0_7] : memref<1x1x512xf32, #tpu.memory_space<vmem>>, vector<1x1x512xf32>
    %7 = vector.shape_cast %6 : vector<1x1x512xf32> to vector<1x512xf32>
    %cst_8 = arith.constant 0.111111112 : f32
    %8 = vector.broadcast %cst_8 : f32 to vector<1x512xf32>
    %9 = arith.mulf %7, %8 : vector<1x512xf32>
    %10 = arith.mulf %5, %5 : vector<1x512xf32>
    %11 = arith.subf %9, %10 : vector<1x512xf32>
    %cst_9 = arith.constant 0.000000e+00 : f32
    %12 = vector.broadcast %cst_9 : f32 to vector<1x512xf32>
    %13 = arith.maximumf %11, %12 : vector<1x512xf32>
    %14 = vector.broadcast %5 : vector<1x512xf32> to vector<9x512xf32>
    %15 = arith.subf %1, %14 : vector<9x512xf32>
    %cst_10 = arith.constant 9.99999974E-6 : f32
    %16 = vector.broadcast %cst_10 : f32 to vector<1x512xf32>
    %17 = arith.addf %13, %16 : vector<1x512xf32>
    %18 = math.rsqrt %17 : vector<1x512xf32>
    %19 = vector.broadcast %18 : vector<1x512xf32> to vector<9x512xf32>
    %20 = arith.mulf %15, %19 : vector<9x512xf32>
    %cst_11 = arith.constant 0.000000e+00 : f32
    %21 = vector.broadcast %cst_11 : f32 to vector<9x512xf32>
    %22 = arith.cmpf ogt, %20, %21 : vector<9x512xf32>
    %cst_12 = arith.constant 2.000000e-01 : f32
    %23 = vector.broadcast %cst_12 : f32 to vector<9x512xf32>
    %24 = arith.mulf %23, %20 : vector<9x512xf32>
    %25 = arith.select %22, %20, %24 : vector<9x512xi1>, vector<9x512xf32>
    %26 = arith.truncf %25 : vector<9x512xf32> to vector<9x512xbf16>
    %c0_13 = arith.constant 0 : index
    %c0_14 = arith.constant 0 : index
    %c0_15 = arith.constant 0 : index
    %27 = vector.load %arg5[%c0_13, %c0_14, %c0_15] : memref<1x9x512xbf16, #tpu.memory_space<vmem>>, vector<1x9x512xbf16>
    %28 = vector.shape_cast %27 : vector<1x9x512xbf16> to vector<9x512xbf16>
    %29 = vector.shape_cast %26 : vector<9x512xbf16> to vector<1x9x512xbf16>
    tpu.vector_store %arg5[%c0_13, %c0_14, %c0_15], %29 {strides = array<i32>} : memref<1x9x512xbf16, #tpu.memory_space<vmem>>, vector<1x9x512xbf16>,
    return
  }
  func.func @transform_0(%arg0: i32, %arg1: i32) -> (i32, i32, i32) {
    %c0_i32 = arith.constant 0 : i32
    %c0_i32_0 = arith.constant 0 : i32
    return %arg0, %arg1, %c0_i32 : i32, i32, i32
  }
  func.func @transform_1(%arg0: i32, %arg1: i32) -> (i32, i32, i32) {
    %c0_i32 = arith.constant 0 : i32
    %c0_i32_0 = arith.constant 0 : i32
    %c0_i32_1 = arith.constant 0 : i32
    return %arg0, %c0_i32, %c0_i32_0 : i32, i32, i32
  }
  func.func @transform_2(%arg0: i32, %arg1: i32) -> (i32, i32, i32) {
    %c0_i32 = arith.constant 0 : i32
    %c0_i32_0 = arith.constant 0 : i32
    %c0_i32_1 = arith.constant 0 : i32
    return %arg0, %c0_i32, %c0_i32_0 : i32, i32, i32
  }
  func.func @transform_3(%arg0: i32, %arg1: i32) -> (i32, i32, i32) {
    %c0_i32 = arith.constant 0 : i32
    %c0_i32_0 = arith.constant 0 : i32
    return %arg0, %arg1, %c0_i32 : i32, i32, i32
  }
}

module attributes {stable_mosaic.version = 11 : i64} {
  func.func @_conv_matmul_kernel(%arg0: i32, %arg1: i32, %arg2: i32, %arg3: memref<1x8x512xbf16, #tpu.memory_space<vmem>>, %arg4: memref<512x128xbf16, #tpu.memory_space<vmem>>, %arg5: memref<1x128xf32, #tpu.memory_space<vmem>>, %arg6: memref<1x8x128xf32, #tpu.memory_space<vmem>>, %arg7: memref<8x128xf32, #tpu.memory_space<vmem>>) attributes {dimension_semantics = [#tpu.dimension_semantics<parallel>, #tpu.dimension_semantics<parallel>, #tpu.dimension_semantics<arbitrary>], iteration_bounds = array<i64: 1, 1, 16>, scalar_prefetch = 0 : i64, scratch_operands = 1 : i64, tpu.core_type = #tpu.core_type<tc>, window_params = [{transform_indices = @transform_0, window_bounds = array<i64: 1, 8, 512>}, {transform_indices = @transform_1, window_bounds = array<i64: 512, 128>}, {pipeline_mode = #tpu.pipeline_mode<synchronous>, transform_indices = @transform_2, window_bounds = array<i64: 1, 128>}, {transform_indices = @transform_3, window_bounds = array<i64: 1, 8, 128>}]} {
    %c0_i32 = arith.constant 0 : i32
    %0 = arith.cmpi eq, %arg2, %c0_i32 : i32
    %1 = arith.extui %0 : i1 to i32
    %c0_i32_0 = arith.constant 0 : i32
    %2 = arith.cmpi ne, %1, %c0_i32_0 : i32
    scf.if %2 {
      %cst_10 = arith.constant 0.000000e+00 : f32
      %13 = vector.broadcast %cst_10 : f32 to vector<8x128xf32>
      %c0_11 = arith.constant 0 : index
      %c0_12 = arith.constant 0 : index
      %14 = vector.load %arg7[%c0_11, %c0_12] : memref<8x128xf32, #tpu.memory_space<vmem>>, vector<8x128xf32>
      tpu.vector_store %arg7[%c0_11, %c0_12], %13 {strides = array<i32>} : memref<8x128xf32, #tpu.memory_space<vmem>>, vector<8x128xf32>,
    } else {
    }
    %c0 = arith.constant 0 : index
    %c0_1 = arith.constant 0 : index
    %3 = vector.load %arg7[%c0, %c0_1] : memref<8x128xf32, #tpu.memory_space<vmem>>, vector<8x128xf32>
    %c0_2 = arith.constant 0 : index
    %c0_3 = arith.constant 0 : index
    %c0_4 = arith.constant 0 : index
    %4 = vector.load %arg3[%c0_2, %c0_3, %c0_4] : memref<1x8x512xbf16, #tpu.memory_space<vmem>>, vector<1x8x512xbf16>
    %5 = vector.shape_cast %4 : vector<1x8x512xbf16> to vector<8x512xbf16>
    %c0_5 = arith.constant 0 : index
    %c0_6 = arith.constant 0 : index
    %6 = vector.load %arg4[%c0_5, %c0_6] : memref<512x128xbf16, #tpu.memory_space<vmem>>, vector<512x128xbf16>
    %cst = arith.constant dense<0.000000e+00> : vector<8x128xf32>
    %7 = tpu.matmul %5, %6, %cst {dimension_numbers = #tpu.dot_dimension_numbers<[1], [0], [0], [1], [0, 0, 1, 1], [], []>} : vector<8x512xbf16>, vector<512x128xbf16>, vector<8x128xf32> -> vector<8x128xf32>
    %8 = arith.addf %3, %7 : vector<8x128xf32>
    %c0_7 = arith.constant 0 : index
    %c0_8 = arith.constant 0 : index
    %9 = vector.load %arg7[%c0_7, %c0_8] : memref<8x128xf32, #tpu.memory_space<vmem>>, vector<8x128xf32>
    tpu.vector_store %arg7[%c0_7, %c0_8], %8 {strides = array<i32>} : memref<8x128xf32, #tpu.memory_space<vmem>>, vector<8x128xf32>,
    %c15_i32 = arith.constant 15 : i32
    %10 = arith.cmpi eq, %arg2, %c15_i32 : i32
    %11 = arith.extui %10 : i1 to i32
    %c0_i32_9 = arith.constant 0 : i32
    %12 = arith.cmpi ne, %11, %c0_i32_9 : i32
    scf.if %12 {
      %c0_10 = arith.constant 0 : index
      %c0_11 = arith.constant 0 : index
      %13 = vector.load %arg7[%c0_10, %c0_11] : memref<8x128xf32, #tpu.memory_space<vmem>>, vector<8x128xf32>
      %c0_12 = arith.constant 0 : index
      %c0_13 = arith.constant 0 : index
      %14 = vector.load %arg5[%c0_12, %c0_13] : memref<1x128xf32, #tpu.memory_space<vmem>>, vector<1x128xf32>
      %15 = vector.broadcast %14 : vector<1x128xf32> to vector<8x128xf32>
      %16 = arith.addf %13, %15 : vector<8x128xf32>
      %17 = arith.negf %16 : vector<8x128xf32>
      %18 = math.exp %17 : vector<8x128xf32>
      %cst_14 = arith.constant 1.000000e+00 : f32
      %19 = vector.broadcast %cst_14 : f32 to vector<8x128xf32>
      %20 = arith.addf %19, %18 : vector<8x128xf32>
      %21 = arith.divf %19, %20 : vector<8x128xf32>
      %c0_15 = arith.constant 0 : index
      %c0_16 = arith.constant 0 : index
      %c0_17 = arith.constant 0 : index
      %22 = vector.load %arg6[%c0_15, %c0_16, %c0_17] : memref<1x8x128xf32, #tpu.memory_space<vmem>>, vector<1x8x128xf32>
      %23 = vector.shape_cast %22 : vector<1x8x128xf32> to vector<8x128xf32>
      %24 = vector.shape_cast %21 : vector<8x128xf32> to vector<1x8x128xf32>
      tpu.vector_store %arg6[%c0_15, %c0_16, %c0_17], %24 {strides = array<i32>} : memref<1x8x128xf32, #tpu.memory_space<vmem>>, vector<1x8x128xf32>,
    } else {
    }
    return
  }
  func.func @transform_0(%arg0: i32, %arg1: i32, %arg2: i32) -> (i32, i32, i32) {
    %c0_i32 = arith.constant 0 : i32
    return %arg0, %arg1, %arg2 : i32, i32, i32
  }
  func.func @transform_1(%arg0: i32, %arg1: i32, %arg2: i32) -> (i32, i32) {
    %c0_i32 = arith.constant 0 : i32
    %c0_i32_0 = arith.constant 0 : i32
    return %arg2, %c0_i32 : i32, i32
  }
  func.func @transform_2(%arg0: i32, %arg1: i32, %arg2: i32) -> (i32, i32) {
    %c0_i32 = arith.constant 0 : i32
    %c0_i32_0 = arith.constant 0 : i32
    %c0_i32_1 = arith.constant 0 : i32
    return %c0_i32, %c0_i32_0 : i32, i32
  }
  func.func @transform_3(%arg0: i32, %arg1: i32, %arg2: i32) -> (i32, i32, i32) {
    %c0_i32 = arith.constant 0 : i32
    %c0_i32_0 = arith.constant 0 : i32
    return %arg0, %arg1, %c0_i32 : i32, i32, i32
  }
}

</mosaic_0001>

<bundles_post_ra>
// kernel: discriminator_forward.8
= control target key start
LH: loop header
LB: loop body
LE: loop exit
PB: predicated region body
PF: predicated region fallthrough
CT: control target
= control target key end

     0   :  { %8 = vsyncpa [#allocation4], 0  ;;  %s2802_s0 = inlined_call_operand.vmem [shape: bf16[1,512,48], index: 0, kind: input, shape index: {}]   ;;  %s2803_s1 = inlined_call_operand.hbm [shape: bf16[48,64], index: 1, kind: input, shape index: {}]   ;;  %s2804_s2 = inlined_call_operand.hbm [shape: f32[1,64], index: 2, kind: input, shape index: {}]   ;;  %s2805_s3 = inlined_call_operand.vmem [shape: bf16[1,512,64], index: 3, kind: output, shape index: {}]  }
   0x1   :  { %9 = vsyncpa [#allocation6], 0  ;;  %s1990_s12 = smov [#allocation3]   ;;  %s1942_s16 = scalar_lea.hbm %s2803_s1, 384 }
   0x2   :  { %s17_s13 = sshll.u32 %s1990_s12, 4  ;;  %p1943_p0 = scmp.ne.s32.totalorder %s2803_s1, %s1942_s16  ;;  %s18_s13 = int_to_ptr.vmem [resolvable:$true] %s17_s13 }
   0x3   :  { %p1946_p1 = scmp.lt.u32.totalorder %s1942_s16, %s2803_s1 }
   0x5   :  { %p1948_p2 = pnand %p1946_p1, %p1943_p0 }
   0x7   :  { %1951 = shalt.err (!%p1948_p2)
}
   0x8   :  { %s1952_s21 = scalar_lea.vmem %s18_s13, 384  ;;  %p1957_p4 = scmp.lt.s32.totalorder %s18_s13, %s18_s13 }
   0x9   :  { %p1953_p3 = scmp.ne.s32.totalorder %s18_s13, %s1952_s21  ;;  %p1958_p5 = scmp.lt.s32.totalorder %s1952_s21, %s1952_s21 }
   0xb   :  { %p1959_p6 = por %p1958_p5, %p1957_p4 }
   0xd   :  { %p1960_p7 = pnand %p1959_p6, %p1953_p3 }
   0xf   :  { %1963 = shalt.err (!%p1960_p7)
}
  0x10   :  { %s1991_s22 = smov 64   ;;  %s1992_s23 = smov 4  }
  0x11   :  { %23 = dma.hbm_to_vmem [thread:$0]  %s2803_s1, 384, %s18_s13, [#allocation4], %s1991_s22, %s1991_s22, %s1992_s23  }
  0x12   :  { %s1993_s26 = smov [#allocation5]   ;;  %s1964_s30 = scalar_lea.hbm %s2804_s2, 16 }
  0x13   :  { %s30_s27 = sshll.u32 %s1993_s26, 4  ;;  %p1965_p8 = scmp.ne.s32.totalorder %s2804_s2, %s1964_s30  ;;  %s31_s27 = int_to_ptr.vmem [resolvable:$true] %s30_s27 }
  0x14   :  { %p1968_p9 = scmp.lt.u32.totalorder %s1964_s30, %s2804_s2 }
  0x16   :  { %p1970_p10 = pnand %p1968_p9, %p1965_p8 }
  0x18   :  { %1973 = shalt.err (!%p1970_p10)
}
  0x19   :  { %s1974_s8 = scalar_lea.vmem %s31_s27, 16  ;;  %s1978_s1 = scalar_lea.vmem %s31_s27, 32 }
  0x1a   :  { %p1975_p11 = scmp.ne.s32.totalorder %s31_s27, %s1974_s8  ;;  %p1979_p12 = scmp.lt.s32.totalorder %s31_s27, %s31_s27 }
  0x1b   :  { %p1980_p13 = scmp.lt.s32.totalorder %s1978_s1, %s1974_s8 }
  0x1d   :  { %p1981_p0 = por %p1980_p13, %p1979_p12 }
  0x1f   :  { %p1982_p1 = pnand %p1981_p0, %p1975_p11 }
  0x21   :  { %1985 = shalt.err (!%p1982_p1)
}
  0x22   :  { %33 = dma.hbm_to_vmem [thread:$0]  %s2804_s2, 16, %s31_s27, [#allocation6]  }
  0x23   :  { %1986 = dma.done.wait [#allocation4], 384  }
  0x24   :  { %1987 = vsyncadd [#allocation4], 4294966912 }
  0x25   :  { %1988 = dma.done.wait [#allocation6], 16  }
  0x26   :  { %1989 = vsyncadd [#allocation6], 4294967280  ;;  %vm45_vm0 = vcmask 523264   ;;  %v1994_v0 = vmov 0.0   ;;  %v1906_v1 = vld [vmem:[#allocation3] sm:$0xff]   ;;  %v1907_v2 = vld [vmem:[#allocation3 + $0x8] sm:$0xff]  }
  0x27   :  { %48 = vst.msk [vmem:[#allocation2 + $0x10] sm:$0xff] %vm45_vm0, %v1994_v0  ;;  %46 = vst.msk [vmem:[#allocation2] sm:$0xff] %vm45_vm0, %v1994_v0  ;;  %1825 = vmatprep.subr.bf16.mxu0 %v1906_v1  ;;  %1895 = vmatprep.subr.bf16.mxu1 %v1906_v1  ;;  %v1908_v3 = vld [vmem:[#allocation3 + $0x10] sm:$0xff]   ;;  %vm422_vm1 = vcmask 392192   ;;  %v1909_v4 = vld [vmem:[%s2802_s0] sm:$0xff]   ;;  %vm1523_vm2 = vcmask 519168  }
  0x28   :  { %47 = vst.msk [vmem:[#allocation2 + $0x8] sm:$0xff] %vm45_vm0, %v1994_v0  ;;  %49 = vst.msk [vmem:[#allocation2 + $0x18] sm:$0xff] %vm45_vm0, %v1994_v0  ;;  %1826 = vmatpush3.bf16.msra.mxu0 %v1906_v1  ;;  %1898 = vmatpush3.bf16.msra.mxu1 %v1906_v1  ;;  %v1910_v5 = vld [vmem:[%s2802_s0 + $0x80] sm:$0xff]   ;;  %v1911_v6 = vld [vmem:[%s2802_s0 + $0x8] sm:$0xff]  }
  0x29   :  { %50 = vst.msk [vmem:[#allocation2 + $0x20] sm:$0xff] %vm45_vm0, %v1994_v0  ;;  %51 = vst.msk [vmem:[#allocation2 + $0x28] sm:$0xff] %vm45_vm0, %v1994_v0  ;;  %1827 = vmatprep.subr.bf16.mxu0 %v1907_v2  ;;  %1896 = vmatprep.subr.bf16.mxu1 %v1907_v2  ;;  %v1912_v7 = vld [vmem:[%s2802_s0 + $0x88] sm:$0xff]   ;;  %v1913_v8 = vld [vmem:[%s2802_s0 + $0x10] sm:$0xff]  }
  0x2a   :  { %52 = vst.msk [vmem:[#allocation2 + $0x30] sm:$0xff] %vm45_vm0, %v1994_v0  ;;  %53 = vst.msk [vmem:[#allocation2 + $0x38] sm:$0xff] %vm45_vm0, %v1994_v0  ;;  %1831 = vmatprep.mubr.msk.bf16.mxu0 %vm422_vm1, %v1909_v4  ;;  %1863 = vmatprep.mubr.msk.bf16.mxu1 %vm422_vm1, %v1910_v5  ;;  %v1914_v9 = vld [vmem:[%s2802_s0 + $0x90] sm:$0xff]   ;;  %v1915_v10 = vld [vmem:[%s2802_s0 + $0x18] sm:$0xff]  }
  0x2b   :  { %54 = vst.msk [vmem:[#allocation2 + $0x40] sm:$0xff] %vm45_vm0, %v1994_v0  ;;  %55 = vst.msk [vmem:[#allocation2 + $0x48] sm:$0xff] %vm45_vm0, %v1994_v0  ;;  %v1916_v11 = vld [vmem:[%s2802_s0 + $0x98] sm:$0xff]   ;;  %v1917_v12 = vld [vmem:[%s2802_s0 + $0x20] sm:$0xff]  }
  0x2c   :  { %56 = vst.msk [vmem:[#allocation2 + $0x50] sm:$0xff] %vm45_vm0, %v1994_v0  ;;  %57 = vst.msk [vmem:[#allocation2 + $0x58] sm:$0xff] %vm45_vm0, %v1994_v0  ;;  %1828 = vmatpush3.bf16.msra.mxu0 %v1907_v2  ;;  %1899 = vmatpush3.bf16.msra.mxu1 %v1907_v2  ;;  %v1918_v13 = vld [vmem:[%s2802_s0 + $0xa0] sm:$0xff]   ;;  %v1919_v14 = vld [vmem:[%s2802_s0 + $0x28] sm:$0xff]  }
  0x2d   :  { %58 = vst.msk [vmem:[#allocation2 + $0x60] sm:$0xff] %vm45_vm0, %v1994_v0  ;;  %59 = vst.msk [vmem:[#allocation2 + $0x68] sm:$0xff] %vm45_vm0, %v1994_v0  ;;  %1829 = vmatprep.subr.bf16.mxu0 %v1908_v3  ;;  %1897 = vmatprep.subr.bf16.mxu1 %v1908_v3  ;;  %v1920_v15 = vld [vmem:[%s2802_s0 + $0xa8] sm:$0xff]   ;;  %v1921_v16 = vld [vmem:[%s2802_s0 + $0x30] sm:$0xff]  }
  0x2e   :  { %60 = vst.msk [vmem:[#allocation2 + $0x70] sm:$0xff] %vm45_vm0, %v1994_v0  ;;  %61 = vst.msk [vmem:[#allocation2 + $0x78] sm:$0xff] %vm45_vm0, %v1994_v0  ;;  %v1922_v17 = vld [vmem:[%s2802_s0 + $0xb0] sm:$0xff]   ;;  %v1923_v18 = vld [vmem:[%s2802_s0 + $0x38] sm:$0xff]  }
  0x2f   :  { %62 = vst.msk [vmem:[#allocation2 + $0x80] sm:$0xff] %vm45_vm0, %v1994_v0  ;;  %63 = vst.msk [vmem:[#allocation2 + $0x88] sm:$0xff] %vm45_vm0, %v1994_v0  ;;  %v1924_v19 = vld [vmem:[%s2802_s0 + $0xb8] sm:$0xff]   ;;  %v1925_v20 = vld [vmem:[%s2802_s0 + $0x40] sm:$0xff]  }
  0x30   :  { %64 = vst.msk [vmem:[#allocation2 + $0x90] sm:$0xff] %vm45_vm0, %v1994_v0  ;;  %65 = vst.msk [vmem:[#allocation2 + $0x98] sm:$0xff] %vm45_vm0, %v1994_v0  ;;  %1830 = vmatpush3.bf16.msra.mxu0 %v1908_v3  ;;  %1900 = vmatpush3.bf16.msra.mxu1 %v1908_v3  ;;  %v1926_v21 = vld [vmem:[%s2802_s0 + $0xc0] sm:$0xff]   ;;  %v1927_v22 = vld [vmem:[%s2802_s0 + $0x48] sm:$0xff]  }
  0x31   :  { %66 = vst.msk [vmem:[#allocation2 + $0xa0] sm:$0xff] %vm45_vm0, %v1994_v0  ;;  %67 = vst.msk [vmem:[#allocation2 + $0xa8] sm:$0xff] %vm45_vm0, %v1994_v0  ;;  %v1928_v23 = vld [vmem:[%s2802_s0 + $0xc8] sm:$0xff]   ;;  %v1929_v24 = vld [vmem:[%s2802_s0 + $0x50] sm:$0xff]  }
  0x32   :  { %68 = vst.msk [vmem:[#allocation2 + $0xb0] sm:$0xff] %vm45_vm0, %v1994_v0  ;;  %69 = vst.msk [vmem:[#allocation2 + $0xb8] sm:$0xff] %vm45_vm0, %v1994_v0  ;;  %v1930_v25 = vld [vmem:[%s2802_s0 + $0xd0] sm:$0xff]   ;;  %v1931_v26 = vld [vmem:[%s2802_s0 + $0x58] sm:$0xff]  }
  0x33   :  { %70 = vst.msk [vmem:[#allocation2 + $0xc0] sm:$0xff] %vm45_vm0, %v1994_v0  ;;  %71 = vst.msk [vmem:[#allocation2 + $0xc8] sm:$0xff] %vm45_vm0, %v1994_v0  ;;  %1832 = vmatmul.mubr.msk.bf16.vlgmr.msra.gmra.mrb[0].mxu0 %vm422_vm1, %v1911_v6  ;;  %1864 = vmatmul.mubr.msk.bf16.vlgmr.msra.gmra.mrb[0].mxu1 %vm422_vm1, %v1912_v7  ;;  %v1932_v27 = vld [vmem:[%s2802_s0 + $0xd8] sm:$0xff]   ;;  %v1933_v28 = vld [vmem:[%s2802_s0 + $0x60] sm:$0xff]  }
  0x34   :  { %72 = vst.msk [vmem:[#allocation2 + $0xd0] sm:$0xff] %vm45_vm0, %v1994_v0  ;;  %73 = vst.msk [vmem:[#allocation2 + $0xd8] sm:$0xff] %vm45_vm0, %v1994_v0  ;;  %1835 = vmatprep.mubr.msk.bf16.mxu0 %vm422_vm1, %v1913_v8  ;;  %1867 = vmatprep.mubr.msk.bf16.mxu1 %vm422_vm1, %v1914_v9  ;;  %v1934_v29 = vld [vmem:[%s2802_s0 + $0xe0] sm:$0xff]   ;;  %v1935_v30 = vld [vmem:[%s2802_s0 + $0x68] sm:$0xff]  }
  0x35   :  { %74 = vst.msk [vmem:[#allocation2 + $0xe0] sm:$0xff] %vm45_vm0, %v1994_v0  ;;  %75 = vst.msk [vmem:[#allocation2 + $0xe8] sm:$0xff] %vm45_vm0, %v1994_v0  ;;  %v1936_v31 = vld [vmem:[%s2802_s0 + $0xe8] sm:$0xff]   ;;  %v1937_v32 = vld [vmem:[%s2802_s0 + $0x70] sm:$0xff]  }
  0x36   :  { %76 = vst.msk [vmem:[#allocation2 + $0xf0] sm:$0xff] %vm45_vm0, %v1994_v0  ;;  %77 = vst.msk [vmem:[#allocation2 + $0xf8] sm:$0xff] %vm45_vm0, %v1994_v0  ;;  %v1938_v33 = vld [vmem:[%s2802_s0 + $0xf0] sm:$0xff]   ;;  %v1939_v34 = vld [vmem:[%s2802_s0 + $0x78] sm:$0xff]  }
  0x37   :  { %78 = vst.msk [vmem:[#allocation2 + $0x100] sm:$0xff] %vm45_vm0, %v1994_v0  ;;  %79 = vst.msk [vmem:[#allocation2 + $0x108] sm:$0xff] %vm45_vm0, %v1994_v0  ;;  %v1940_v35 = vld [vmem:[%s2802_s0 + $0xf8] sm:$0xff]   ;;  %v112_v36 = vld [vmem:[#allocation2 + $0x10] sm:$0xff] }
  0x38   :  { %80 = vst.msk [vmem:[#allocation2 + $0x110] sm:$0xff] %vm45_vm0, %v1994_v0  ;;  %81 = vst.msk [vmem:[#allocation2 + $0x118] sm:$0xff] %vm45_vm0, %v1994_v0  ;;  %v110_v38 = vld [vmem:[#allocation2] sm:$0xff]  ;;  %v113_v42 = vld [vmem:[#allocation2 + $0x18] sm:$0xff] }
  0x39   :  { %82 = vst.msk [vmem:[#allocation2 + $0x120] sm:$0xff] %vm45_vm0, %v1994_v0  ;;  %83 = vst.msk [vmem:[#allocation2 + $0x128] sm:$0xff] %vm45_vm0, %v1994_v0  ;;  %v111_v48 = vld [vmem:[#allocation2 + $0x8] sm:$0xff]  ;;  %v116_v60 = vld [vmem:[#allocation2 + $0x30] sm:$0xff] }
  0x3a   :  { %84 = vst.msk [vmem:[#allocation2 + $0x130] sm:$0xff] %vm45_vm0, %v1994_v0  ;;  %85 = vst.msk [vmem:[#allocation2 + $0x138] sm:$0xff] %vm45_vm0, %v1994_v0  ;;  %v114_v62 = vld [vmem:[#allocation2 + $0x20] sm:$0xff]  ;;  %v117_v3 = vld [vmem:[#allocation2 + $0x38] sm:$0xff] }
  0x3b   :  { %86 = vst.msk [vmem:[#allocation2 + $0x140] sm:$0xff] %vm45_vm0, %v1994_v0  ;;  %87 = vst.msk [vmem:[#allocation2 + $0x148] sm:$0xff] %vm45_vm0, %v1994_v0  ;;  %1836 = vmatmul.mubr.msk.bf16.gmra.mrb[4].mxu0 %vm422_vm1, %v1915_v10  ;;  %1868 = vmatmul.mubr.msk.bf16.gmra.mrb[4].mxu1 %vm422_vm1, %v1916_v11  ;;  %v115_v9 = vld [vmem:[#allocation2 + $0x28] sm:$0xff] }
  0x3c   :  { %88 = vst.msk [vmem:[#allocation2 + $0x150] sm:$0xff] %vm45_vm0, %v1994_v0  ;;  %89 = vst.msk [vmem:[#allocation2 + $0x158] sm:$0xff] %vm45_vm0, %v1994_v0  ;;  %1839 = vmatprep.mubr.msk.bf16.mxu0 %vm422_vm1, %v1917_v12  ;;  %1871 = vmatprep.mubr.msk.bf16.mxu1 %vm422_vm1, %v1918_v13 }
  0x3d   :  { %90 = vst.msk [vmem:[#allocation2 + $0x160] sm:$0xff] %vm45_vm0, %v1994_v0  ;;  %91 = vst.msk [vmem:[#allocation2 + $0x168] sm:$0xff] %vm45_vm0, %v1994_v0 }
  0x3e   :  { %92 = vst.msk [vmem:[#allocation2 + $0x170] sm:$0xff] %vm45_vm0, %v1994_v0  ;;  %93 = vst.msk [vmem:[#allocation2 + $0x178] sm:$0xff] %vm45_vm0, %v1994_v0  ;;  %v142_v39 = vld [vmem:[#allocation2 + $0x100] sm:$0xff]  ;;  %v143_v49 = vld [vmem:[#allocation2 + $0x108] sm:$0xff] }
  0x3f   :  { %94 = vst.msk [vmem:[#allocation2 + $0x180] sm:$0xff] %vm45_vm0, %v1994_v0  ;;  %95 = vst.msk [vmem:[#allocation2 + $0x188] sm:$0xff] %vm45_vm0, %v1994_v0  ;;  %v144_v37 = vld [vmem:[#allocation2 + $0x110] sm:$0xff]  ;;  %v145_v43 = vld [vmem:[#allocation2 + $0x118] sm:$0xff] }
  0x40   :  { %96 = vst.msk [vmem:[#allocation2 + $0x190] sm:$0xff] %vm45_vm0, %v1994_v0  ;;  %97 = vst.msk [vmem:[#allocation2 + $0x198] sm:$0xff] %vm45_vm0, %v1994_v0  ;;  %v146_v63 = vld [vmem:[#allocation2 + $0x120] sm:$0xff]  ;;  %v147_v10 = vld [vmem:[#allocation2 + $0x128] sm:$0xff] }
  0x41   :  { %98 = vst.msk [vmem:[#allocation2 + $0x1a0] sm:$0xff] %vm45_vm0, %v1994_v0  ;;  %99 = vst.msk [vmem:[#allocation2 + $0x1a8] sm:$0xff] %vm45_vm0, %v1994_v0  ;;  %v148_v61 = vld [vmem:[#allocation2 + $0x130] sm:$0xff]  ;;  %v149_v4 = vld [vmem:[#allocation2 + $0x138] sm:$0xff] }
  0x42   :  { %100 = vst.msk [vmem:[#allocation2 + $0x1b0] sm:$0xff] %vm45_vm0, %v1994_v0  ;;  %101 = vst.msk [vmem:[#allocation2 + $0x1b8] sm:$0xff] %vm45_vm0, %v1994_v0 }
  0x43   :  { %102 = vst.msk [vmem:[#allocation2 + $0x1c0] sm:$0xff] %vm45_vm0, %v1994_v0  ;;  %103 = vst.msk [vmem:[#allocation2 + $0x1c8] sm:$0xff] %vm45_vm0, %v1994_v0  ;;  %1840 = vmatmul.mubr.msk.bf16.gmra.mrb[8].mxu0 %vm422_vm1, %v1919_v14  ;;  %1872 = vmatmul.mubr.msk.bf16.gmra.mrb[8].mxu1 %vm422_vm1, %v1920_v15 }
  0x44   :  { %104 = vst.msk [vmem:[#allocation2 + $0x1d0] sm:$0xff] %vm45_vm0, %v1994_v0  ;;  %105 = vst.msk [vmem:[#allocation2 + $0x1d8] sm:$0xff] %vm45_vm0, %v1994_v0  ;;  %1843 = vmatprep.mubr.msk.bf16.mxu0 %vm422_vm1, %v1921_v16  ;;  %1875 = vmatprep.mubr.msk.bf16.mxu1 %vm422_vm1, %v1922_v17 }
  0x45   :  { %106 = vst.msk [vmem:[#allocation2 + $0x1e0] sm:$0xff] %vm45_vm0, %v1994_v0  ;;  %107 = vst.msk [vmem:[#allocation2 + $0x1e8] sm:$0xff] %vm45_vm0, %v1994_v0 }
  0x46   :  { %108 = vst.msk [vmem:[#allocation2 + $0x1f0] sm:$0xff] %vm45_vm0, %v1994_v0  ;;  %109 = vst.msk [vmem:[#allocation2 + $0x1f8] sm:$0xff] %vm45_vm0, %v1994_v0  ;;  %v2303_v0 = vld [vmem:[#allocation5] ss:$0 sm:$0xff] }
  0x4b   :  { %1844 = vmatmul.mubr.msk.bf16.gmra.mrb[12].mxu0 %vm422_vm1, %v1923_v18  ;;  %1876 = vmatmul.mubr.msk.bf16.gmra.mrb[12].mxu1 %vm422_vm1, %v1924_v19 }
  0x4c   :  { %1847 = vmatprep.mubr.msk.bf16.mxu0 %vm422_vm1, %v1925_v20  ;;  %1879 = vmatprep.mubr.msk.bf16.mxu1 %vm422_vm1, %v1926_v21 }
  0x53   :  { %1848 = vmatmul.mubr.msk.bf16.gmra.mrb[16].mxu0 %vm422_vm1, %v1927_v22  ;;  %1880 = vmatmul.mubr.msk.bf16.gmra.mrb[16].mxu1 %vm422_vm1, %v1928_v23 }
  0x54   :  { %1851 = vmatprep.mubr.msk.bf16.mxu0 %vm422_vm1, %v1929_v24  ;;  %1883 = vmatprep.mubr.msk.bf16.mxu1 %vm422_vm1, %v1930_v25 }
  0x5b   :  { %1852 = vmatmul.mubr.msk.bf16.gmra.mrb[20].mxu0 %vm422_vm1, %v1931_v26  ;;  %1884 = vmatmul.mubr.msk.bf16.gmra.mrb[20].mxu1 %vm422_vm1, %v1932_v27 }
  0x5c   :  { %1855 = vmatprep.mubr.msk.bf16.mxu0 %vm422_vm1, %v1933_v28  ;;  %1887 = vmatprep.mubr.msk.bf16.mxu1 %vm422_vm1, %v1934_v29 }
  0x63   :  { %1856 = vmatmul.mubr.msk.bf16.gmra.mrb[24].mxu0 %vm422_vm1, %v1935_v30  ;;  %1888 = vmatmul.mubr.msk.bf16.gmra.mrb[24].mxu1 %vm422_vm1, %v1936_v31 }
  0x64   :  { %1859 = vmatprep.mubr.msk.bf16.mxu0 %vm422_vm1, %v1937_v32  ;;  %1891 = vmatprep.mubr.msk.bf16.mxu1 %vm422_vm1, %v1938_v33 }
  0x6b   :  { %1860 = vmatmul.mubr.msk.bf16.gmra.mrb[28].mxu0 %vm422_vm1, %v1939_v34  ;;  %1892 = vmatmul.mubr.msk.bf16.gmra.mrb[28].mxu1 %vm422_vm1, %v1940_v35 }
 0x106   :  { %v1833_v40 = vpop.f32.mrb[0].mxu0  ;;  %v1865_v41 = vpop.f32.mrb[0].mxu1 }
 0x107   :  { %v810_v44 = vadd.f32 %v1833_v40, %v112_v36  ;;  %v842_v45 = vadd.f32 %v1865_v41, %v144_v37  ;;  %v553_v46 = vpop.f32.mrb[1].mxu0  ;;  %v681_v47 = vpop.f32.mrb[1].mxu1 }
 0x108   :  { %v808_v50 = vadd.f32 %v553_v46, %v110_v38  ;;  %v840_v51 = vadd.f32 %v681_v47, %v142_v39  ;;  %v1834_v52 = vpop.f32.mrb[2].mxu0  ;;  %v1866_v53 = vpop.f32.mrb[2].mxu1 }
 0x109   :  { %875 = vst.msk [vmem:[#allocation2 + $0x10] sm:$0xff] %vm45_vm0, %v810_v44  ;;  %907 = vst.msk [vmem:[#allocation2 + $0x110] sm:$0xff] %vm45_vm0, %v842_v45  ;;  %v811_v54 = vadd.f32 %v1834_v52, %v113_v42  ;;  %v843_v55 = vadd.f32 %v1866_v53, %v145_v43  ;;  %v556_v56 = vpop.f32.mrb[3].mxu0  ;;  %v684_v57 = vpop.f32.mrb[3].mxu1  ;;  %v120_v45 = vld [vmem:[#allocation2 + $0x50] sm:$0xff] }
 0x10a   :  { %873 = vst.msk [vmem:[#allocation2] sm:$0xff] %vm45_vm0, %v808_v50  ;;  %905 = vst.msk [vmem:[#allocation2 + $0x100] sm:$0xff] %vm45_vm0, %v840_v51  ;;  %v809_v58 = vadd.f32 %v556_v56, %v111_v48  ;;  %v841_v59 = vadd.f32 %v684_v57, %v143_v49 }
 0x10b   :  { %876 = vst.msk [vmem:[#allocation2 + $0x18] sm:$0xff] %vm45_vm0, %v811_v54  ;;  %908 = vst.msk [vmem:[#allocation2 + $0x118] sm:$0xff] %vm45_vm0, %v843_v55 }
 0x10c   :  { %874 = vst.msk [vmem:[#allocation2 + $0x8] sm:$0xff] %vm45_vm0, %v809_v58  ;;  %906 = vst.msk [vmem:[#allocation2 + $0x108] sm:$0xff] %vm45_vm0, %v841_v59 }
 0x10e   :  { %v1837_v1 = vpop.f32.mrb[4].mxu0  ;;  %v1869_v2 = vpop.f32.mrb[4].mxu1 }
 0x10f   :  { %v814_v5 = vadd.f32 %v1837_v1, %v116_v60  ;;  %v846_v6 = vadd.f32 %v1869_v2, %v148_v61  ;;  %v569_v7 = vpop.f32.mrb[5].mxu0  ;;  %v697_v8 = vpop.f32.mrb[5].mxu1 }
 0x110   :  { %v942_v11 = vld [vmem:[#allocation2 + $0x10] sm:$0xff]  ;;  %v812_v13 = vadd.f32 %v569_v7, %v114_v62  ;;  %v844_v14 = vadd.f32 %v697_v8, %v146_v63  ;;  %v1838_v15 = vpop.f32.mrb[6].mxu0  ;;  %v1870_v16 = vpop.f32.mrb[6].mxu1 }
 0x111   :  { %v974_v12 = vld [vmem:[#allocation2 + $0x110] sm:$0xff]  ;;  %v1013_v17 = vadd.f32 %v2303_v0, %v942_v11  ;;  %v940_v19 = vld [vmem:[#allocation2] sm:$0xff]  ;;  %879 = vst.msk [vmem:[#allocation2 + $0x30] sm:$0xff] %vm45_vm0, %v814_v5  ;;  %911 = vst.msk [vmem:[#allocation2 + $0x130] sm:$0xff] %vm45_vm0, %v846_v6  ;;  %v815_v21 = vadd.f32 %v1838_v15, %v117_v3  ;;  %v847_v22 = vadd.f32 %v1870_v16, %v149_v4  ;;  %v572_v23 = vpop.f32.mrb[7].mxu0  ;;  %v700_v24 = vpop.f32.mrb[7].mxu1 }
 0x112   :  { %v1045_v18 = vadd.f32 %v2303_v0, %v974_v12  ;;  %v972_v20 = vld [vmem:[#allocation2 + $0x100] sm:$0xff]  ;;  %v1011_v25 = vadd.f32 %v2303_v0, %v940_v19  ;;  %v943_v27 = vld [vmem:[#allocation2 + $0x18] sm:$0xff]  ;;  %877 = vst.msk [vmem:[#allocation2 + $0x20] sm:$0xff] %vm45_vm0, %v812_v13  ;;  %909 = vst.msk [vmem:[#allocation2 + $0x120] sm:$0xff] %vm45_vm0, %v844_v14  ;;  %v813_v29 = vadd.f32 %v572_v23, %v115_v9 }
 0x113   :  { %v1043_v26 = vadd.f32 %v2303_v0, %v972_v20  ;;  %v975_v28 = vld [vmem:[#allocation2 + $0x118] sm:$0xff]  ;;  %v845_v30 = vadd.f32 %v700_v24, %v147_v10  ;;  %vm1077_vm3 = vcmp.gt.f32.partialorder %v1013_v17, 0.0  ;;  %v1141_v31 = vmul.f32 0.2, %v1013_v17  ;;  %880 = vst.msk [vmem:[#allocation2 + $0x38] sm:$0xff] %vm45_vm0, %v815_v21  ;;  %912 = vst.msk [vmem:[#allocation2 + $0x138] sm:$0xff] %vm45_vm0, %v847_v22 }
 0x114   :  { %vm1109_vm4 = vcmp.gt.f32.partialorder %v1045_v18, 0.0  ;;  %v1173_v32 = vmul.f32 0.2, %v1045_v18  ;;  %vm1075_vm5 = vcmp.gt.f32.partialorder %v1011_v25, 0.0  ;;  %v1139_v33 = vmul.f32 0.2, %v1011_v25 }
 0x115   :  { %vm1107_vm6 = vcmp.gt.f32.partialorder %v1043_v26, 0.0  ;;  %v1171_v34 = vmul.f32 0.2, %v1043_v26  ;;  %878 = vst.msk [vmem:[#allocation2 + $0x28] sm:$0xff] %vm45_vm0, %v813_v29  ;;  %910 = vst.msk [vmem:[#allocation2 + $0x128] sm:$0xff] %vm45_vm0, %v845_v30  ;;  %v1205_v35 = vsel %vm1077_vm3, %v1013_v17, %v1141_v31  ;;  %v1014_v37 = vadd.f32 %v2303_v0, %v943_v27  ;;  %v941_v39 = vld [vmem:[#allocation2 + $0x8] sm:$0xff] }
 0x116   :  { %v1237_v36 = vsel %vm1109_vm4, %v1045_v18, %v1173_v32  ;;  %v1046_v38 = vadd.f32 %v2303_v0, %v975_v28  ;;  %v973_v40 = vld [vmem:[#allocation2 + $0x108] sm:$0xff]  ;;  %v1728_v41 = vpack.c.bf16 %v1205_v35, %v1205_v35  ;;  %v1203_v43 = vsel %vm1075_vm5, %v1011_v25, %v1139_v33  ;;  %v1841_v46 = vpop.f32.mrb[8].mxu0  ;;  %v2319_v47 = vpop.f32.mrb[8].mxu1  ;;  %v152_v30 = vld [vmem:[#allocation2 + $0x150] sm:$0xff] }
 0x117   :  { %v1760_v42 = vpack.c.bf16 %v1237_v36, %v1237_v36  ;;  %v1235_v44 = vsel %vm1107_vm6, %v1043_v26, %v1171_v34  ;;  %v1726_v48 = vpack.c.bf16 %v1203_v43, %v1203_v43  ;;  %vm1078_vm7 = vcmp.gt.f32.partialorder %v1014_v37, 0.0  ;;  %v2321_v51 = vpop.f32.mrb[9].mxu0  ;;  %v2323_v52 = vpop.f32.mrb[9].mxu1 }
 0x118   :  { %v1758_v49 = vpack.c.bf16 %v1235_v44, %v1235_v44  ;;  %v1142_v50 = vmul.f32 0.2, %v1014_v37  ;;  %1526 = vst.msk [vmem:[%s2805_s3 + $0x8] sm:$0xf] %vm1523_vm2, %v1728_v41  ;;  %vm1110_vm8 = vcmp.gt.f32.partialorder %v1046_v38, 0.0  ;;  %v1012_v54 = vadd.f32 %v2303_v0, %v941_v39  ;;  %v946_v56 = vld [vmem:[#allocation2 + $0x30] sm:$0xff] }
 0x119   :  { %1558 = vst.msk [vmem:[%s2805_s3 + $0x88] sm:$0xf] %vm1523_vm2, %v1760_v42  ;;  %v1174_v53 = vmul.f32 0.2, %v1046_v38  ;;  %v1044_v55 = vadd.f32 %v2303_v0, %v973_v40  ;;  %v978_v57 = vld [vmem:[#allocation2 + $0x130] sm:$0xff]  ;;  %v2335_v58 = vpop.f32.mrb[10].mxu0  ;;  %v1017_v60 = vadd.f32 %v2303_v0, %v946_v56  ;;  %v818_v62 = vadd.f32 %v1841_v46, %v120_v45 }
 0x11a   :  { %1524 = vst.msk [vmem:[%s2805_s3] sm:$0xf] %vm1523_vm2, %v1726_v48  ;;  %1556 = vst.msk [vmem:[%s2805_s3 + $0x80] sm:$0xf] %vm1523_vm2, %v1758_v49  ;;  %v1206_v59 = vsel %vm1078_vm7, %v1014_v37, %v1142_v50  ;;  %v1049_v61 = vadd.f32 %v2303_v0, %v978_v57  ;;  %v2347_v63 = vpop.f32.mrb[10].mxu1  ;;  %v2349_v1 = vpop.f32.mrb[11].mxu0  ;;  %v850_v46 = vadd.f32 %v2319_v47, %v152_v30 }
 0x11b   :  { %v1729_v2 = vpack.c.bf16 %v1206_v59, %v1206_v59  ;;  %v1238_v3 = vsel %vm1110_vm8, %v1046_v38, %v1174_v53  ;;  %vm1076_vm9 = vcmp.gt.f32.partialorder %v1012_v54, 0.0  ;;  %v1140_v4 = vmul.f32 0.2, %v1012_v54  ;;  %v944_v5 = vld [vmem:[#allocation2 + $0x20] sm:$0xff]  ;;  %v2352_v7 = vpop.f32.mrb[11].mxu1  ;;  %v947_v10 = vld [vmem:[#allocation2 + $0x38] sm:$0xff] }
 0x11c   :  { %v976_v6 = vld [vmem:[#allocation2 + $0x120] sm:$0xff]  ;;  %v1761_v8 = vpack.c.bf16 %v1238_v3, %v1238_v3  ;;  %vm1108_vm10 = vcmp.gt.f32.partialorder %v1044_v55, 0.0  ;;  %v1172_v9 = vmul.f32 0.2, %v1044_v55  ;;  %vm1081_vm11 = vcmp.gt.f32.partialorder %v1017_v60, 0.0  ;;  %883 = vst.msk [vmem:[#allocation2 + $0x50] sm:$0xff] %vm45_vm0, %v818_v62 }
 0x11d   :  { %1527 = vst.msk [vmem:[%s2805_s3 + $0xc] sm:$0xf] %vm1523_vm2, %v1729_v2  ;;  %v1204_v11 = vsel %vm1076_vm9, %v1012_v54, %v1140_v4  ;;  %v1145_v12 = vmul.f32 0.2, %v1017_v60  ;;  %vm1113_vm12 = vcmp.gt.f32.partialorder %v1049_v61, 0.0  ;;  %v1015_v16 = vadd.f32 %v2303_v0, %v944_v5  ;;  %v979_v22 = vld [vmem:[#allocation2 + $0x138] sm:$0xff] }
 0x11e   :  { %v1177_v13 = vmul.f32 0.2, %v1049_v61  ;;  %1559 = vst.msk [vmem:[%s2805_s3 + $0x8c] sm:$0xf] %vm1523_vm2, %v1761_v8  ;;  %v1727_v14 = vpack.c.bf16 %v1204_v11, %v1204_v11  ;;  %v1236_v15 = vsel %vm1108_vm10, %v1044_v55, %v1172_v9  ;;  %v1047_v17 = vadd.f32 %v2303_v0, %v976_v6  ;;  %v945_v23 = vld [vmem:[#allocation2 + $0x28] sm:$0xff]  ;;  %v2366_v25 = vpop.f32.mrb[12].mxu0 }
 0x11f   :  { %v1759_v18 = vpack.c.bf16 %v1236_v15, %v1236_v15  ;;  %v1209_v19 = vsel %vm1081_vm11, %v1017_v60, %v1145_v12  ;;  %v1018_v21 = vadd.f32 %v2303_v0, %v947_v10  ;;  %v977_v24 = vld [vmem:[#allocation2 + $0x128] sm:$0xff]  ;;  %v2368_v26 = vpop.f32.mrb[12].mxu1  ;;  %vm1079_vm13 = vcmp.gt.f32.partialorder %v1015_v16, 0.0  ;;  %v2374_v31 = vpop.f32.mrb[13].mxu0  ;;  %v118_v39 = vld [vmem:[#allocation2 + $0x40] sm:$0xff]  ;;  %v121_v49 = vld [vmem:[#allocation2 + $0x58] sm:$0xff] }
 0x120   :  { %v1241_v20 = vsel %vm1113_vm12, %v1049_v61, %v1177_v13  ;;  %1525 = vst.msk [vmem:[%s2805_s3 + $0x4] sm:$0xf] %vm1523_vm2, %v1727_v14  ;;  %v1732_v27 = vpack.c.bf16 %v1209_v19, %v1209_v19  ;;  %v1143_v29 = vmul.f32 0.2, %v1015_v16  ;;  %v2376_v32 = vpop.f32.mrb[13].mxu1  ;;  %vm1111_vm14 = vcmp.gt.f32.partialorder %v1047_v17, 0.0 }
 0x121   :  { %v1764_v28 = vpack.c.bf16 %v1241_v20, %v1241_v20  ;;  %1557 = vst.msk [vmem:[%s2805_s3 + $0x84] sm:$0xf] %vm1523_vm2, %v1759_v18  ;;  %v1175_v33 = vmul.f32 0.2, %v1047_v17  ;;  %vm1082_vm15 = vcmp.gt.f32.partialorder %v1018_v21, 0.0  ;;  %v1050_v36 = vadd.f32 %v2303_v0, %v979_v22  ;;  %v2393_v40 = vpop.f32.mrb[14].mxu0 }
 0x122   :  { %v1146_v34 = vmul.f32 0.2, %v1018_v21  ;;  %1530 = vst.msk [vmem:[%s2805_s3 + $0x18] sm:$0xf] %vm1523_vm2, %v1732_v27  ;;  %v1207_v35 = vsel %vm1079_vm13, %v1015_v16, %v1143_v29  ;;  %v1016_v37 = vadd.f32 %v2303_v0, %v945_v23  ;;  %v1048_v38 = vadd.f32 %v2303_v0, %v977_v24  ;;  %v2395_v41 = vpop.f32.mrb[14].mxu1  ;;  %v150_v48 = vld [vmem:[#allocation2 + $0x140] sm:$0xff] }
 0x123   :  { %1562 = vst.msk [vmem:[%s2805_s3 + $0x98] sm:$0xf] %vm1523_vm2, %v1764_v28  ;;  %v1730_v42 = vpack.c.bf16 %v1207_v35, %v1207_v35  ;;  %v1239_v43 = vsel %vm1111_vm14, %v1047_v17, %v1175_v33  ;;  %v950_v45 = vld [vmem:[#allocation2 + $0x50] sm:$0xff]  ;;  %v2398_v50 = vpop.f32.mrb[15].mxu0  ;;  %v2400_v53 = vpop.f32.mrb[15].mxu1  ;;  %vm1114_vm1 = vcmp.gt.f32.partialorder %v1050_v36, 0.0  ;;  %v816_v4 = vadd.f32 %v2321_v51, %v118_v39 }
 0x124   :  { %v1210_v44 = vsel %vm1082_vm15, %v1018_v21, %v1146_v34  ;;  %v1762_v54 = vpack.c.bf16 %v1239_v43, %v1239_v43  ;;  %v1178_v56 = vmul.f32 0.2, %v1050_v36  ;;  %v153_v57 = vld [vmem:[#allocation2 + $0x158] sm:$0xff]  ;;  %v119_v59 = vld [vmem:[#allocation2 + $0x48] sm:$0xff]  ;;  %v124_v61 = vld [vmem:[#allocation2 + $0x70] sm:$0xff]  ;;  %vm1080_vm3 = vcmp.gt.f32.partialorder %v1016_v37, 0.0 }
 0x125   :  { %v1733_v55 = vpack.c.bf16 %v1210_v44, %v1210_v44  ;;  %v151_v60 = vld [vmem:[#allocation2 + $0x148] sm:$0xff]  ;;  %1528 = vst.msk [vmem:[%s2805_s3 + $0x10] sm:$0xf] %vm1523_vm2, %v1730_v42  ;;  %v1144_v47 = vmul.f32 0.2, %v1016_v37  ;;  %vm1112_vm4 = vcmp.gt.f32.partialorder %v1048_v38, 0.0  ;;  %v1021_v3 = vadd.f32 %v2303_v0, %v950_v45 }
 0x126   :  { %v1176_v62 = vmul.f32 0.2, %v1048_v38  ;;  %915 = vst.msk [vmem:[#allocation2 + $0x150] sm:$0xff] %vm45_vm0, %v850_v46  ;;  %v1242_v2 = vsel %vm1114_vm1, %v1050_v36, %v1178_v56  ;;  %v848_v5 = vadd.f32 %v2323_v52, %v150_v48  ;;  %v156_v6 = vld [vmem:[#allocation2 + $0x170] sm:$0xff]  ;;  %v122_v8 = vld [vmem:[#allocation2 + $0x60] sm:$0xff]  ;;  %v819_v13 = vadd.f32 %v2335_v58, %v121_v49  ;;  %v125_v14 = vld [vmem:[#allocation2 + $0x78] sm:$0xff] }
 0x127   :  { %1560 = vst.msk [vmem:[%s2805_s3 + $0x90] sm:$0xf] %vm1523_vm2, %v1762_v54  ;;  %1531 = vst.msk [vmem:[%s2805_s3 + $0x1c] sm:$0xf] %vm1523_vm2, %v1733_v55  ;;  %v154_v9 = vld [vmem:[#allocation2 + $0x160] sm:$0xff]  ;;  %v1765_v10 = vpack.c.bf16 %v1242_v2, %v1242_v2  ;;  %v1208_v11 = vsel %vm1080_vm3, %v1016_v37, %v1144_v47  ;;  %v157_v15 = vld [vmem:[#allocation2 + $0x178] sm:$0xff]  ;;  %v851_v58 = vadd.f32 %v2347_v63, %v153_v57 }
 0x128   :  { %v1240_v12 = vsel %vm1112_vm4, %v1048_v38, %v1176_v62  ;;  %v123_v16 = vld [vmem:[#allocation2 + $0x68] sm:$0xff]  ;;  %v1849_v17 = vpop.f32.mrb[16].mxu0  ;;  %v1881_v18 = vpop.f32.mrb[16].mxu1  ;;  %v1731_v19 = vpack.c.bf16 %v1208_v11, %v1208_v11  ;;  %vm1085_vm5 = vcmp.gt.f32.partialorder %v1021_v3, 0.0  ;;  %v1149_v21 = vmul.f32 0.2, %v1021_v3 }
 0x129   :  { %v1763_v20 = vpack.c.bf16 %v1240_v12, %v1240_v12  ;;  %881 = vst.msk [vmem:[#allocation2 + $0x40] sm:$0xff] %vm45_vm0, %v816_v4  ;;  %913 = vst.msk [vmem:[#allocation2 + $0x140] sm:$0xff] %vm45_vm0, %v848_v5  ;;  %v155_v51 = vld [vmem:[#allocation2 + $0x168] sm:$0xff]  ;;  %v617_v52 = vpop.f32.mrb[17].mxu0  ;;  %v745_v22 = vpop.f32.mrb[17].mxu1  ;;  %v817_v23 = vadd.f32 %v2349_v1, %v119_v59  ;;  %v849_v24 = vadd.f32 %v2352_v7, %v151_v60  ;;  %v128_v28 = vld [vmem:[#allocation2 + $0x90] sm:$0xff] }
 0x12a   :  { %1563 = vst.msk [vmem:[%s2805_s3 + $0x9c] sm:$0xf] %vm1523_vm2, %v1765_v10  ;;  %v822_v27 = vadd.f32 %v2366_v25, %v124_v61  ;;  %v160_v29 = vld [vmem:[#allocation2 + $0x190] sm:$0xff]  ;;  %v126_v30 = vld [vmem:[#allocation2 + $0x80] sm:$0xff]  ;;  %v1850_v33 = vpop.f32.mrb[18].mxu0  ;;  %v1882_v34 = vpop.f32.mrb[18].mxu1  ;;  %v1213_v63 = vsel %vm1085_vm5, %v1021_v3, %v1149_v21  ;;  %v854_v1 = vadd.f32 %v2368_v26, %v156_v6  ;;  %v820_v7 = vadd.f32 %v2374_v31, %v122_v8 }
 0x12b   :  { %884 = vst.msk [vmem:[#allocation2 + $0x58] sm:$0xff] %vm45_vm0, %v819_v13  ;;  %v852_v25 = vadd.f32 %v2376_v32, %v154_v9  ;;  %v158_v35 = vld [vmem:[#allocation2 + $0x180] sm:$0xff]  ;;  %v129_v36 = vld [vmem:[#allocation2 + $0x98] sm:$0xff]  ;;  %v620_v38 = vpop.f32.mrb[19].mxu0  ;;  %v748_v39 = vpop.f32.mrb[19].mxu1  ;;  %v1736_v42 = vpack.c.bf16 %v1213_v63, %v1213_v63  ;;  %916 = vst.msk [vmem:[#allocation2 + $0x158] sm:$0xff] %vm45_vm0, %v851_v58  ;;  %v823_v26 = vadd.f32 %v2393_v40, %v125_v14 }
 0x12c   :  { %1529 = vst.msk [vmem:[%s2805_s3 + $0x14] sm:$0xf] %vm1523_vm2, %v1731_v19  ;;  %1561 = vst.msk [vmem:[%s2805_s3 + $0x94] sm:$0xf] %vm1523_vm2, %v1763_v20  ;;  %v161_v37 = vld [vmem:[#allocation2 + $0x198] sm:$0xff]  ;;  %v855_v31 = vadd.f32 %v2395_v41, %v157_v15  ;;  %v821_v32 = vadd.f32 %v2398_v50, %v123_v16  ;;  %v127_v43 = vld [vmem:[#allocation2 + $0x88] sm:$0xff]  ;;  %v853_v46 = vadd.f32 %v2400_v53, %v155_v51 }
 0x12d   :  { %882 = vst.msk [vmem:[#allocation2 + $0x48] sm:$0xff] %vm45_vm0, %v817_v23  ;;  %914 = vst.msk [vmem:[#allocation2 + $0x148] sm:$0xff] %vm45_vm0, %v849_v24  ;;  %v159_v44 = vld [vmem:[#allocation2 + $0x188] sm:$0xff]  ;;  %v982_v45 = vld [vmem:[#allocation2 + $0x150] sm:$0xff]  ;;  %v826_v48 = vadd.f32 %v1849_v17, %v128_v28  ;;  %v858_v49 = vadd.f32 %v1881_v18, %v160_v29  ;;  %v824_v54 = vadd.f32 %v617_v52, %v126_v30 }
 0x12e   :  { %887 = vst.msk [vmem:[#allocation2 + $0x70] sm:$0xff] %vm45_vm0, %v822_v27  ;;  %919 = vst.msk [vmem:[#allocation2 + $0x170] sm:$0xff] %vm45_vm0, %v854_v1  ;;  %v1053_v40 = vadd.f32 %v2303_v0, %v982_v45  ;;  %v856_v41 = vadd.f32 %v745_v22, %v158_v35  ;;  %v827_v50 = vadd.f32 %v1850_v33, %v129_v36  ;;  %v132_v53 = vld [vmem:[#allocation2 + $0xb0] sm:$0xff]  ;;  %v130_v60 = vld [vmem:[#allocation2 + $0xa0] sm:$0xff]  ;;  %v1853_v2 = vpop.f32.mrb[20].mxu0  ;;  %v1885_v8 = vpop.f32.mrb[20].mxu1 }
 0x12f   :  { %885 = vst.msk [vmem:[#allocation2 + $0x60] sm:$0xff] %vm45_vm0, %v820_v7  ;;  %917 = vst.msk [vmem:[#allocation2 + $0x160] sm:$0xff] %vm45_vm0, %v852_v25  ;;  %v859_v55 = vadd.f32 %v1882_v34, %v161_v37  ;;  %v825_v56 = vadd.f32 %v620_v38, %v127_v43  ;;  %v857_v57 = vadd.f32 %v748_v39, %v159_v44  ;;  %v164_v59 = vld [vmem:[#allocation2 + $0x1b0] sm:$0xff]  ;;  %v633_v9 = vpop.f32.mrb[21].mxu0  ;;  %v162_v14 = vld [vmem:[#allocation2 + $0x1a0] sm:$0xff]  ;;  %v761_v15 = vpop.f32.mrb[21].mxu1 }
 0x130   :  { %1534 = vst.msk [vmem:[%s2805_s3 + $0x28] sm:$0xf] %vm1523_vm2, %v1736_v42  ;;  %vm1117_vm6 = vcmp.gt.f32.partialorder %v1053_v40, 0.0  ;;  %v1181_v61 = vmul.f32 0.2, %v1053_v40  ;;  %v948_v47 = vld [vmem:[#allocation2 + $0x40] sm:$0xff]  ;;  %v830_v6 = vadd.f32 %v1853_v2, %v132_v53  ;;  %v862_v12 = vadd.f32 %v1885_v8, %v164_v59 }
 0x131   :  { %888 = vst.msk [vmem:[#allocation2 + $0x78] sm:$0xff] %vm45_vm0, %v823_v26  ;;  %920 = vst.msk [vmem:[#allocation2 + $0x178] sm:$0xff] %vm45_vm0, %v855_v31  ;;  %v980_v62 = vld [vmem:[#allocation2 + $0x140] sm:$0xff]  ;;  %v1019_v3 = vadd.f32 %v2303_v0, %v948_v47  ;;  %v828_v13 = vadd.f32 %v633_v9, %v130_v60  ;;  %v2474_v16 = vpop.f32.mrb[22].mxu0  ;;  %v860_v28 = vadd.f32 %v761_v15, %v162_v14  ;;  %v2486_v29 = vpop.f32.mrb[22].mxu1 }
 0x132   :  { %886 = vst.msk [vmem:[#allocation2 + $0x68] sm:$0xff] %vm45_vm0, %v821_v32  ;;  %918 = vst.msk [vmem:[#allocation2 + $0x168] sm:$0xff] %vm45_vm0, %v853_v46  ;;  %v1051_v4 = vadd.f32 %v2303_v0, %v980_v62  ;;  %v951_v5 = vld [vmem:[#allocation2 + $0x58] sm:$0xff]  ;;  %v1245_v10 = vsel %vm1117_vm6, %v1053_v40, %v1181_v61  ;;  %v2488_v30 = vpop.f32.mrb[23].mxu0  ;;  %v2492_v35 = vpop.f32.mrb[23].mxu1 }
 0x133   :  { %891 = vst.msk [vmem:[#allocation2 + $0x90] sm:$0xff] %vm45_vm0, %v826_v48  ;;  %923 = vst.msk [vmem:[#allocation2 + $0x190] sm:$0xff] %vm45_vm0, %v858_v49  ;;  %v1022_v11 = vadd.f32 %v2303_v0, %v951_v5  ;;  %v1768_v17 = vpack.c.bf16 %v1245_v10, %v1245_v10  ;;  %vm1083_vm7 = vcmp.gt.f32.partialorder %v1019_v3, 0.0  ;;  %v1147_v18 = vmul.f32 0.2, %v1019_v3  ;;  %v983_v19 = vld [vmem:[#allocation2 + $0x158] sm:$0xff] }
 0x134   :  { %889 = vst.msk [vmem:[#allocation2 + $0x80] sm:$0xff] %vm45_vm0, %v824_v54  ;;  %921 = vst.msk [vmem:[#allocation2 + $0x180] sm:$0xff] %vm45_vm0, %v856_v41  ;;  %vm1115_vm8 = vcmp.gt.f32.partialorder %v1051_v4, 0.0  ;;  %v949_v20 = vld [vmem:[#allocation2 + $0x48] sm:$0xff]  ;;  %v1179_v21 = vmul.f32 0.2, %v1051_v4  ;;  %v1054_v52 = vadd.f32 %v2303_v0, %v983_v19 }
 0x135   :  { %892 = vst.msk [vmem:[#allocation2 + $0x98] sm:$0xff] %vm45_vm0, %v827_v50  ;;  %924 = vst.msk [vmem:[#allocation2 + $0x198] sm:$0xff] %vm45_vm0, %v859_v55  ;;  %vm1086_vm9 = vcmp.gt.f32.partialorder %v1022_v11, 0.0  ;;  %v1150_v51 = vmul.f32 0.2, %v1022_v11  ;;  %v981_v22 = vld [vmem:[#allocation2 + $0x148] sm:$0xff]  ;;  %v1211_v58 = vsel %vm1083_vm7, %v1019_v3, %v1147_v18  ;;  %v1020_v23 = vadd.f32 %v2303_v0, %v949_v20 }
 0x136   :  { %890 = vst.msk [vmem:[#allocation2 + $0x88] sm:$0xff] %vm45_vm0, %v825_v56  ;;  %922 = vst.msk [vmem:[#allocation2 + $0x188] sm:$0xff] %vm45_vm0, %v857_v57  ;;  %v1052_v24 = vadd.f32 %v2303_v0, %v981_v22  ;;  %v954_v27 = vld [vmem:[#allocation2 + $0x70] sm:$0xff]  ;;  %v1734_v33 = vpack.c.bf16 %v1211_v58, %v1211_v58  ;;  %v1243_v34 = vsel %vm1115_vm8, %v1051_v4, %v1179_v21  ;;  %vm1118_vm10 = vcmp.gt.f32.partialorder %v1054_v52, 0.0  ;;  %v952_v7 = vld [vmem:[#allocation2 + $0x60] sm:$0xff]  ;;  %v2512_v45 = vpop.f32.mrb[24].mxu0 }
 0x137   :  { %895 = vst.msk [vmem:[#allocation2 + $0xb0] sm:$0xff] %vm45_vm0, %v830_v6  ;;  %927 = vst.msk [vmem:[#allocation2 + $0x1b0] sm:$0xff] %vm45_vm0, %v862_v12  ;;  %v1214_v63 = vsel %vm1086_vm9, %v1022_v11, %v1150_v51  ;;  %v986_v1 = vld [vmem:[#allocation2 + $0x170] sm:$0xff]  ;;  %v984_v25 = vld [vmem:[#allocation2 + $0x160] sm:$0xff]  ;;  %v1766_v36 = vpack.c.bf16 %v1243_v34, %v1243_v34  ;;  %v1182_v38 = vmul.f32 0.2, %v1054_v52  ;;  %v1025_v26 = vadd.f32 %v2303_v0, %v954_v27 }
 0x138   :  { %893 = vst.msk [vmem:[#allocation2 + $0xa0] sm:$0xff] %vm45_vm0, %v828_v13  ;;  %v1737_v37 = vpack.c.bf16 %v1214_v63, %v1214_v63  ;;  %vm1084_vm11 = vcmp.gt.f32.partialorder %v1020_v23, 0.0  ;;  %925 = vst.msk [vmem:[#allocation2 + $0x1a0] sm:$0xff] %vm45_vm0, %v860_v28  ;;  %v1148_v39 = vmul.f32 0.2, %v1020_v23  ;;  %vm1116_vm12 = vcmp.gt.f32.partialorder %v1052_v24, 0.0 }
 0x139   :  { %1566 = vst.msk [vmem:[%s2805_s3 + $0xa8] sm:$0xf] %vm1523_vm2, %v1768_v17  ;;  %1532 = vst.msk [vmem:[%s2805_s3 + $0x20] sm:$0xf] %vm1523_vm2, %v1734_v33  ;;  %v1180_v42 = vmul.f32 0.2, %v1052_v24  ;;  %v1246_v31 = vsel %vm1118_vm10, %v1054_v52, %v1182_v38  ;;  %v1057_v32 = vadd.f32 %v2303_v0, %v986_v1  ;;  %v1023_v43 = vadd.f32 %v2303_v0, %v952_v7 }
 0x13a   :  { %1564 = vst.msk [vmem:[%s2805_s3 + $0xa0] sm:$0xf] %vm1523_vm2, %v1766_v36  ;;  %1535 = vst.msk [vmem:[%s2805_s3 + $0x2c] sm:$0xf] %vm1523_vm2, %v1737_v37  ;;  %v1055_v44 = vadd.f32 %v2303_v0, %v984_v25  ;;  %v2514_v46 = vpop.f32.mrb[24].mxu1  ;;  %v1769_v48 = vpack.c.bf16 %v1246_v31, %v1246_v31  ;;  %v1212_v49 = vsel %vm1084_vm11, %v1020_v23, %v1148_v39  ;;  %vm1089_vm13 = vcmp.gt.f32.partialorder %v1025_v26, 0.0 }
 0x13b   :  { %v1244_v54 = vsel %vm1116_vm12, %v1052_v24, %v1180_v42  ;;  %v955_v40 = vld [vmem:[#allocation2 + $0x78] sm:$0xff]  ;;  %v2517_v50 = vpop.f32.mrb[25].mxu0  ;;  %v2519_v55 = vpop.f32.mrb[25].mxu1  ;;  %v1735_v53 = vpack.c.bf16 %v1212_v49, %v1212_v49  ;;  %v1153_v57 = vmul.f32 0.2, %v1025_v26  ;;  %vm1121_vm14 = vcmp.gt.f32.partialorder %v1057_v32, 0.0 }
 0x13c   :  { %v987_v41 = vld [vmem:[#allocation2 + $0x178] sm:$0xff]  ;;  %v1767_v56 = vpack.c.bf16 %v1244_v54, %v1244_v54  ;;  %v953_v59 = vld [vmem:[#allocation2 + $0x68] sm:$0xff]  ;;  %1567 = vst.msk [vmem:[%s2805_s3 + $0xac] sm:$0xf] %vm1523_vm2, %v1769_v48  ;;  %v1185_v60 = vmul.f32 0.2, %v1057_v32  ;;  %v1026_v2 = vadd.f32 %v2303_v0, %v955_v40 }
 0x13d   :  { %vm1087_vm15 = vcmp.gt.f32.partialorder %v1023_v43, 0.0  ;;  %v1151_v61 = vmul.f32 0.2, %v1023_v43  ;;  %vm1119_vm1 = vcmp.gt.f32.partialorder %v1055_v44, 0.0  ;;  %1533 = vst.msk [vmem:[%s2805_s3 + $0x24] sm:$0xf] %vm1523_vm2, %v1735_v53  ;;  %v1217_v47 = vsel %vm1089_vm13, %v1025_v26, %v1153_v57 }
 0x13e   :  { %1565 = vst.msk [vmem:[%s2805_s3 + $0xa4] sm:$0xf] %vm1523_vm2, %v1767_v56  ;;  %v1183_v62 = vmul.f32 0.2, %v1055_v44  ;;  %v1058_v3 = vadd.f32 %v2303_v0, %v987_v41  ;;  %v2536_v4 = vpop.f32.mrb[26].mxu0  ;;  %v2538_v5 = vpop.f32.mrb[26].mxu1  ;;  %v1740_v6 = vpack.c.bf16 %v1217_v47, %v1217_v47  ;;  %v1249_v8 = vsel %vm1121_vm14, %v1057_v32, %v1185_v60 }
 0x13f   :  { %v1215_v9 = vsel %vm1087_vm15, %v1023_v43, %v1151_v61  ;;  %v1024_v10 = vadd.f32 %v2303_v0, %v953_v59  ;;  %v985_v11 = vld [vmem:[#allocation2 + $0x168] sm:$0xff]  ;;  %v958_v12 = vld [vmem:[#allocation2 + $0x90] sm:$0xff]  ;;  %v2542_v13 = vpop.f32.mrb[27].mxu0  ;;  %v2544_v14 = vpop.f32.mrb[27].mxu1  ;;  %v1772_v15 = vpack.c.bf16 %v1249_v8, %v1249_v8  ;;  %vm1090_vm3 = vcmp.gt.f32.partialorder %v1026_v2, 0.0  ;;  %v956_v20 = vld [vmem:[#allocation2 + $0x80] sm:$0xff] }
 0x140   :  { %v1738_v17 = vpack.c.bf16 %v1215_v9, %v1215_v9  ;;  %v1247_v18 = vsel %vm1119_vm1, %v1055_v44, %v1183_v62  ;;  %v990_v19 = vld [vmem:[#allocation2 + $0x190] sm:$0xff]  ;;  %1538 = vst.msk [vmem:[%s2805_s3 + $0x38] sm:$0xf] %vm1523_vm2, %v1740_v6  ;;  %v1154_v51 = vmul.f32 0.2, %v1026_v2  ;;  %vm1122_vm4 = vcmp.gt.f32.partialorder %v1058_v3, 0.0 }
 0x141   :  { %v1770_v21 = vpack.c.bf16 %v1247_v18, %v1247_v18  ;;  %v1186_v52 = vmul.f32 0.2, %v1058_v3  ;;  %v2551_v22 = vpop.f32.mrb[28].mxu0  ;;  %1570 = vst.msk [vmem:[%s2805_s3 + $0xb8] sm:$0xf] %vm1523_vm2, %v1772_v15  ;;  %vm1088_vm5 = vcmp.gt.f32.partialorder %v1024_v10, 0.0  ;;  %v1056_v23 = vadd.f32 %v2303_v0, %v985_v11 }
 0x142   :  { %1536 = vst.msk [vmem:[%s2805_s3 + $0x30] sm:$0xf] %vm1523_vm2, %v1738_v17  ;;  %v1152_v58 = vmul.f32 0.2, %v1024_v10  ;;  %v1029_v24 = vadd.f32 %v2303_v0, %v958_v12  ;;  %v2563_v27 = vpop.f32.mrb[28].mxu1  ;;  %v2565_v28 = vpop.f32.mrb[29].mxu0  ;;  %v1218_v33 = vsel %vm1090_vm3, %v1026_v2, %v1154_v51  ;;  %v1061_v63 = vadd.f32 %v2303_v0, %v990_v19 }
 0x143   :  { %1568 = vst.msk [vmem:[%s2805_s3 + $0xb0] sm:$0xf] %vm1523_vm2, %v1770_v21  ;;  %v1250_v34 = vsel %vm1122_vm4, %v1058_v3, %v1186_v52  ;;  %v1027_v1 = vadd.f32 %v2303_v0, %v956_v20  ;;  %v2574_v7 = vpop.f32.mrb[29].mxu1  ;;  %v2576_v25 = vpop.f32.mrb[30].mxu0  ;;  %v1741_v36 = vpack.c.bf16 %v1218_v33, %v1218_v33  ;;  %vm1120_vm6 = vcmp.gt.f32.partialorder %v1056_v23, 0.0  ;;  %v988_v39 = vld [vmem:[#allocation2 + $0x180] sm:$0xff] }
 0x144   :  { %v1773_v37 = vpack.c.bf16 %v1250_v34, %v1250_v34  ;;  %v1216_v38 = vsel %vm1088_vm5, %v1024_v10, %v1152_v58  ;;  %v959_v42 = vld [vmem:[#allocation2 + $0x98] sm:$0xff]  ;;  %v2578_v26 = vpop.f32.mrb[30].mxu1  ;;  %v2580_v31 = vpop.f32.mrb[31].mxu0  ;;  %v1184_v43 = vmul.f32 0.2, %v1056_v23  ;;  %vm1093_vm7 = vcmp.gt.f32.partialorder %v1029_v24, 0.0 }
 0x145   :  { %v1739_v32 = vpack.c.bf16 %v1216_v38, %v1216_v38  ;;  %v1157_v44 = vmul.f32 0.2, %v1029_v24  ;;  %v2582_v48 = vpop.f32.mrb[31].mxu1  ;;  %1539 = vst.msk [vmem:[%s2805_s3 + $0x3c] sm:$0xf] %vm1523_vm2, %v1741_v36  ;;  %vm1125_vm8 = vcmp.gt.f32.partialorder %v1061_v63, 0.0  ;;  %v1059_v53 = vadd.f32 %v2303_v0, %v988_v39 }
 0x146   :  { %1571 = vst.msk [vmem:[%s2805_s3 + $0xbc] sm:$0xf] %vm1523_vm2, %v1773_v37  ;;  %v1189_v49 = vmul.f32 0.2, %v1061_v63  ;;  %vm1091_vm9 = vcmp.gt.f32.partialorder %v1027_v1, 0.0  ;;  %v1248_v40 = vsel %vm1120_vm6, %v1056_v23, %v1184_v43  ;;  %v1030_v56 = vadd.f32 %v2303_v0, %v959_v42  ;;  %v991_v57 = vld [vmem:[#allocation2 + $0x198] sm:$0xff] }
 0x147   :  { %v1155_v54 = vmul.f32 0.2, %v1027_v1  ;;  %1537 = vst.msk [vmem:[%s2805_s3 + $0x34] sm:$0xf] %vm1523_vm2, %v1739_v32  ;;  %v1221_v41 = vsel %vm1093_vm7, %v1029_v24, %v1157_v44  ;;  %v957_v59 = vld [vmem:[#allocation2 + $0x88] sm:$0xff]  ;;  %v1771_v60 = vpack.c.bf16 %v1248_v40, %v1248_v40  ;;  %v962_v3 = vld [vmem:[#allocation2 + $0xb0] sm:$0xff]  ;;  %v1062_v12 = vadd.f32 %v2303_v0, %v991_v57 }
 0x148   :  { %v1744_v61 = vpack.c.bf16 %v1221_v41, %v1221_v41  ;;  %v1253_v47 = vsel %vm1125_vm8, %v1061_v63, %v1189_v49  ;;  %v989_v2 = vld [vmem:[#allocation2 + $0x188] sm:$0xff]  ;;  %v994_v6 = vld [vmem:[#allocation2 + $0x1b0] sm:$0xff]  ;;  %vm1123_vm10 = vcmp.gt.f32.partialorder %v1059_v53, 0.0  ;;  %v1187_v10 = vmul.f32 0.2, %v1059_v53  ;;  %v960_v24 = vld [vmem:[#allocation2 + $0xa0] sm:$0xff] }
 0x149   :  { %v1219_v62 = vsel %vm1091_vm9, %v1027_v1, %v1155_v54  ;;  %v1776_v8 = vpack.c.bf16 %v1253_v47, %v1253_v47  ;;  %1569 = vst.msk [vmem:[%s2805_s3 + $0xb4] sm:$0xf] %vm1523_vm2, %v1771_v60  ;;  %vm1094_vm11 = vcmp.gt.f32.partialorder %v1030_v56, 0.0  ;;  %v1158_v11 = vmul.f32 0.2, %v1030_v56  ;;  %v992_v1 = vld [vmem:[#allocation2 + $0x1a0] sm:$0xff] }
 0x14a   :  { %v1742_v9 = vpack.c.bf16 %v1219_v62, %v1219_v62  ;;  %1542 = vst.msk [vmem:[%s2805_s3 + $0x48] sm:$0xf] %vm1523_vm2, %v1744_v61  ;;  %v1028_v15 = vadd.f32 %v2303_v0, %v957_v59  ;;  %v1251_v17 = vsel %vm1123_vm10, %v1059_v53, %v1187_v10  ;;  %v1060_v18 = vadd.f32 %v2303_v0, %v989_v2  ;;  %v133_v39 = vld [vmem:[#allocation2 + $0xb8] sm:$0xff]  ;;  %v131_v54 = vld [vmem:[#allocation2 + $0xa8] sm:$0xff]  ;;  %v136_v59 = vld [vmem:[#allocation2 + $0xd0] sm:$0xff] }
 0x14b   :  { %1574 = vst.msk [vmem:[%s2805_s3 + $0xc8] sm:$0xf] %vm1523_vm2, %v1776_v8  ;;  %v1033_v19 = vadd.f32 %v2303_v0, %v962_v3  ;;  %v1065_v20 = vadd.f32 %v2303_v0, %v994_v6  ;;  %v1774_v21 = vpack.c.bf16 %v1251_v17, %v1251_v17  ;;  %v1222_v51 = vsel %vm1094_vm11, %v1030_v56, %v1158_v11  ;;  %v165_v49 = vld [vmem:[#allocation2 + $0x1b8] sm:$0xff]  ;;  %v163_v40 = vld [vmem:[#allocation2 + $0x1a8] sm:$0xff]  ;;  %v168_v60 = vld [vmem:[#allocation2 + $0x1d0] sm:$0xff] }
 0x14c   :  { %1540 = vst.msk [vmem:[%s2805_s3 + $0x40] sm:$0xf] %vm1523_vm2, %v1742_v9  ;;  %vm1126_vm12 = vcmp.gt.f32.partialorder %v1062_v12, 0.0  ;;  %v1190_v52 = vmul.f32 0.2, %v1062_v12  ;;  %v1745_v58 = vpack.c.bf16 %v1222_v51, %v1222_v51  ;;  %vm1092_vm13 = vcmp.gt.f32.partialorder %v1028_v15, 0.0 }
 0x14d   :  { %v1156_v23 = vmul.f32 0.2, %v1028_v15  ;;  %vm1124_vm14 = vcmp.gt.f32.partialorder %v1060_v18, 0.0  ;;  %1572 = vst.msk [vmem:[%s2805_s3 + $0xc0] sm:$0xf] %vm1523_vm2, %v1774_v21  ;;  %vm1097_vm15 = vcmp.gt.f32.partialorder %v1033_v19, 0.0  ;;  %v1031_v44 = vadd.f32 %v2303_v0, %v960_v24 }
 0x14e   :  { %v1254_v33 = vsel %vm1126_vm12, %v1062_v12, %v1190_v52  ;;  %v1188_v34 = vmul.f32 0.2, %v1060_v18  ;;  %v1161_v63 = vmul.f32 0.2, %v1033_v19  ;;  %1543 = vst.msk [vmem:[%s2805_s3 + $0x4c] sm:$0xf] %vm1523_vm2, %v1745_v58  ;;  %v1063_v57 = vadd.f32 %v2303_v0, %v992_v1 }
 0x14f   :  { %v1777_v36 = vpack.c.bf16 %v1254_v33, %v1254_v33  ;;  %v1220_v37 = vsel %vm1092_vm13, %v1028_v15, %v1156_v23  ;;  %vm1129_vm1 = vcmp.gt.f32.partialorder %v1065_v20, 0.0  ;;  %v1193_v38 = vmul.f32 0.2, %v1065_v20  ;;  %v134_v61 = vld [vmem:[#allocation2 + $0xc0] sm:$0xff]  ;;  %v137_v6 = vld [vmem:[#allocation2 + $0xd8] sm:$0xff]  ;;  %v167_v11 = vld [vmem:[#allocation2 + $0x1c8] sm:$0xff] }
 0x150   :  { %v1743_v42 = vpack.c.bf16 %v1220_v37, %v1220_v37  ;;  %v1252_v32 = vsel %vm1124_vm14, %v1060_v18, %v1188_v34  ;;  %v1225_v43 = vsel %vm1097_vm15, %v1033_v19, %v1161_v63  ;;  %vm1095_vm3 = vcmp.gt.f32.partialorder %v1031_v44, 0.0  ;;  %v166_v3 = vld [vmem:[#allocation2 + $0x1c0] sm:$0xff]  ;;  %v169_v8 = vld [vmem:[#allocation2 + $0x1d8] sm:$0xff]  ;;  %v140_v12 = vld [vmem:[#allocation2 + $0xf0] sm:$0xff] }
 0x151   :  { %1575 = vst.msk [vmem:[%s2805_s3 + $0xcc] sm:$0xf] %vm1523_vm2, %v1777_v36  ;;  %v1775_v41 = vpack.c.bf16 %v1252_v32, %v1252_v32  ;;  %v1748_v53 = vpack.c.bf16 %v1225_v43, %v1225_v43  ;;  %v1257_v56 = vsel %vm1129_vm1, %v1065_v20, %v1193_v38  ;;  %v1159_v62 = vmul.f32 0.2, %v1031_v44  ;;  %v172_v19 = vld [vmem:[#allocation2 + $0x1f0] sm:$0xff]  ;;  %v170_v20 = vld [vmem:[#allocation2 + $0x1e0] sm:$0xff] }
 0x152   :  { %1541 = vst.msk [vmem:[%s2805_s3 + $0x44] sm:$0xf] %vm1523_vm2, %v1743_v42  ;;  %v1780_v47 = vpack.c.bf16 %v1257_v56, %v1257_v56  ;;  %v831_v2 = vadd.f32 %v2474_v16, %v133_v39  ;;  %vm1127_vm4 = vcmp.gt.f32.partialorder %v1063_v57, 0.0  ;;  %v1191_v0 = vmul.f32 0.2, %v1063_v57  ;;  %v135_v16 = vld [vmem:[#allocation2 + $0xc8] sm:$0xff] }
 0x153   :  { %1573 = vst.msk [vmem:[%s2805_s3 + $0xc4] sm:$0xf] %vm1523_vm2, %v1775_v41  ;;  %1546 = vst.msk [vmem:[%s2805_s3 + $0x58] sm:$0xf] %vm1523_vm2, %v1748_v53  ;;  %v863_v9 = vadd.f32 %v2486_v29, %v165_v49  ;;  %v829_v10 = vadd.f32 %v2488_v30, %v131_v54  ;;  %v1223_v15 = vsel %vm1095_vm3, %v1031_v44, %v1159_v62  ;;  %v138_v30 = vld [vmem:[#allocation2 + $0xe0] sm:$0xff]  ;;  %v141_v23 = vld [vmem:[#allocation2 + $0xf8] sm:$0xff] }
 0x154   :  { %1578 = vst.msk [vmem:[%s2805_s3 + $0xd8] sm:$0xf] %vm1523_vm2, %v1780_v47  ;;  %v861_v17 = vadd.f32 %v2492_v35, %v163_v40  ;;  %v834_v18 = vadd.f32 %v2512_v45, %v136_v59  ;;  %v866_v29 = vadd.f32 %v2514_v46, %v168_v60  ;;  %v1746_v21 = vpack.c.bf16 %v1223_v15, %v1223_v15  ;;  %v173_v35 = vld [vmem:[#allocation2 + $0x1f8] sm:$0xff]  ;;  %v139_v24 = vld [vmem:[#allocation2 + $0xe8] sm:$0xff] }
 0x155   :  { %896 = vst.msk [vmem:[#allocation2 + $0xb8] sm:$0xff] %vm45_vm0, %v831_v2  ;;  %v1255_v51 = vsel %vm1127_vm4, %v1063_v57, %v1191_v0  ;;  %928 = vst.msk [vmem:[#allocation2 + $0x1b8] sm:$0xff] %vm45_vm0, %v863_v9  ;;  %v832_v52 = vadd.f32 %v2517_v50, %v134_v61  ;;  %v864_v58 = vadd.f32 %v2519_v55, %v166_v3  ;;  %v171_v63 = vld [vmem:[#allocation2 + $0x1e8] sm:$0xff] }
 0x156   :  { %894 = vst.msk [vmem:[#allocation2 + $0xa8] sm:$0xff] %vm45_vm0, %v829_v10  ;;  %v1778_v45 = vpack.c.bf16 %v1255_v51, %v1255_v51  ;;  %926 = vst.msk [vmem:[#allocation2 + $0x1a8] sm:$0xff] %vm45_vm0, %v861_v17  ;;  %v835_v46 = vadd.f32 %v2536_v4, %v137_v6  ;;  %v867_v33 = vadd.f32 %v2538_v5, %v169_v8 }
 0x157   :  { %899 = vst.msk [vmem:[#allocation2 + $0xd0] sm:$0xff] %vm45_vm0, %v834_v18  ;;  %931 = vst.msk [vmem:[#allocation2 + $0x1d0] sm:$0xff] %vm45_vm0, %v866_v29  ;;  %v833_v34 = vadd.f32 %v2542_v13, %v135_v16  ;;  %v865_v50 = vadd.f32 %v2544_v14, %v167_v11  ;;  %v838_v55 = vadd.f32 %v2551_v22, %v140_v12 }
 0x158   :  { %1544 = vst.msk [vmem:[%s2805_s3 + $0x50] sm:$0xf] %vm1523_vm2, %v1746_v21  ;;  %v870_v4 = vadd.f32 %v2563_v27, %v172_v19  ;;  %v836_v5 = vadd.f32 %v2565_v28, %v138_v30  ;;  %1576 = vst.msk [vmem:[%s2805_s3 + $0xd0] sm:$0xf] %vm1523_vm2, %v1778_v45  ;;  %v868_v13 = vadd.f32 %v2574_v7, %v170_v20 }
 0x159   :  { %897 = vst.msk [vmem:[#allocation2 + $0xc0] sm:$0xff] %vm45_vm0, %v832_v52  ;;  %929 = vst.msk [vmem:[#allocation2 + $0x1c0] sm:$0xff] %vm45_vm0, %v864_v58  ;;  %v839_v14 = vadd.f32 %v2576_v25, %v141_v23  ;;  %v871_v22 = vadd.f32 %v2578_v26, %v173_v35  ;;  %v837_v27 = vadd.f32 %v2580_v31, %v139_v24  ;;  %v2700_v25 = vld [vmem:[#allocation5] ss:$0 sm:$0xff] }
 0x15a   :  { %900 = vst.msk [vmem:[#allocation2 + $0xd8] sm:$0xff] %vm45_vm0, %v835_v46  ;;  %932 = vst.msk [vmem:[#allocation2 + $0x1d8] sm:$0xff] %vm45_vm0, %v867_v33  ;;  %v869_v28 = vadd.f32 %v2582_v48, %v171_v63 }
 0x15b   :  { %898 = vst.msk [vmem:[#allocation2 + $0xc8] sm:$0xff] %vm45_vm0, %v833_v34  ;;  %930 = vst.msk [vmem:[#allocation2 + $0x1c8] sm:$0xff] %vm45_vm0, %v865_v50 }
 0x15c   :  { %903 = vst.msk [vmem:[#allocation2 + $0xf0] sm:$0xff] %vm45_vm0, %v838_v55  ;;  %935 = vst.msk [vmem:[#allocation2 + $0x1f0] sm:$0xff] %vm45_vm0, %v870_v4  ;;  %v963_v7 = vld [vmem:[#allocation2 + $0xb8] sm:$0xff] }
 0x15d   :  { %901 = vst.msk [vmem:[#allocation2 + $0xe0] sm:$0xff] %vm45_vm0, %v836_v5  ;;  %933 = vst.msk [vmem:[#allocation2 + $0x1e0] sm:$0xff] %vm45_vm0, %v868_v13  ;;  %v1034_v26 = vadd.f32 %v2700_v25, %v963_v7  ;;  %v995_v31 = vld [vmem:[#allocation2 + $0x1b8] sm:$0xff]  ;;  %v961_v1 = vld [vmem:[#allocation2 + $0xa8] sm:$0xff] }
 0x15e   :  { %904 = vst.msk [vmem:[#allocation2 + $0xf8] sm:$0xff] %vm45_vm0, %v839_v14  ;;  %936 = vst.msk [vmem:[#allocation2 + $0x1f8] sm:$0xff] %vm45_vm0, %v871_v22  ;;  %v1066_v36 = vadd.f32 %v2700_v25, %v995_v31  ;;  %v1032_v48 = vadd.f32 %v2700_v25, %v961_v1  ;;  %v993_v37 = vld [vmem:[#allocation2 + $0x1a8] sm:$0xff]  ;;  %v966_v38 = vld [vmem:[#allocation2 + $0xd0] sm:$0xff] }
 0x15f   :  { %902 = vst.msk [vmem:[#allocation2 + $0xe8] sm:$0xff] %vm45_vm0, %v837_v27  ;;  %934 = vst.msk [vmem:[#allocation2 + $0x1e8] sm:$0xff] %vm45_vm0, %v869_v28  ;;  %vm1098_vm5 = vcmp.gt.f32.partialorder %v1034_v26, 0.0  ;;  %v1162_v39 = vmul.f32 0.2, %v1034_v26  ;;  %v1064_v42 = vadd.f32 %v2700_v25, %v993_v37  ;;  %v1037_v32 = vadd.f32 %v2700_v25, %v966_v38  ;;  %v998_v43 = vld [vmem:[#allocation2 + $0x1d0] sm:$0xff] }
 0x160   :  { %vm1130_vm0 = vcmp.gt.f32.partialorder %v1066_v36, 0.0  ;;  %v1194_v44 = vmul.f32 0.2, %v1066_v36  ;;  %vm1096_vm6 = vcmp.gt.f32.partialorder %v1032_v48, 0.0  ;;  %v1160_v49 = vmul.f32 0.2, %v1032_v48 }
 0x161   :  { %v1226_v54 = vsel %vm1098_vm5, %v1034_v26, %v1162_v39  ;;  %vm1128_vm7 = vcmp.gt.f32.partialorder %v1064_v42, 0.0  ;;  %v1192_v40 = vmul.f32 0.2, %v1064_v42  ;;  %vm1101_vm8 = vcmp.gt.f32.partialorder %v1037_v32, 0.0  ;;  %v964_v41 = vld [vmem:[#allocation2 + $0xc0] sm:$0xff]  ;;  %v967_v61 = vld [vmem:[#allocation2 + $0xd8] sm:$0xff] }
 0x162   :  { %v996_v53 = vld [vmem:[#allocation2 + $0x1c0] sm:$0xff]  ;;  %v1749_v56 = vpack.c.bf16 %v1226_v54, %v1226_v54  ;;  %v1258_v57 = vsel %vm1130_vm0, %v1066_v36, %v1194_v44  ;;  %v1224_v59 = vsel %vm1096_vm6, %v1032_v48, %v1160_v49  ;;  %v1165_v60 = vmul.f32 0.2, %v1037_v32  ;;  %v999_v10 = vld [vmem:[#allocation2 + $0x1d8] sm:$0xff]  ;;  %v965_v15 = vld [vmem:[#allocation2 + $0xc8] sm:$0xff] }
 0x163   :  { %v1781_v47 = vpack.c.bf16 %v1258_v57, %v1258_v57  ;;  %v1747_v62 = vpack.c.bf16 %v1224_v59, %v1224_v59  ;;  %v1256_v2 = vsel %vm1128_vm7, %v1064_v42, %v1192_v40  ;;  %v1069_v3 = vadd.f32 %v2700_v25, %v998_v43  ;;  %v997_v20 = vld [vmem:[#allocation2 + $0x1c8] sm:$0xff]  ;;  %v970_v23 = vld [vmem:[#allocation2 + $0xf0] sm:$0xff] }
 0x164   :  { %1547 = vst.msk [vmem:[%s2805_s3 + $0x5c] sm:$0xf] %vm1523_vm2, %v1749_v56  ;;  %v1779_v6 = vpack.c.bf16 %v1256_v2, %v1256_v2  ;;  %v1229_v8 = vsel %vm1101_vm8, %v1037_v32, %v1165_v60  ;;  %v1035_v0 = vadd.f32 %v2700_v25, %v964_v41  ;;  %v1067_v9 = vadd.f32 %v2700_v25, %v996_v53  ;;  %v1002_v35 = vld [vmem:[#allocation2 + $0x1f0] sm:$0xff]  ;;  %v968_v24 = vld [vmem:[#allocation2 + $0xe0] sm:$0xff] }
 0x165   :  { %1579 = vst.msk [vmem:[%s2805_s3 + $0xdc] sm:$0xf] %vm1523_vm2, %v1781_v47  ;;  %1545 = vst.msk [vmem:[%s2805_s3 + $0x54] sm:$0xf] %vm1523_vm2, %v1747_v62  ;;  %v1752_v16 = vpack.c.bf16 %v1229_v8, %v1229_v8  ;;  %vm1133_vm9 = vcmp.gt.f32.partialorder %v1069_v3, 0.0  ;;  %v1038_v12 = vadd.f32 %v2700_v25, %v967_v61  ;;  %v1070_v30 = vadd.f32 %v2700_v25, %v999_v10  ;;  %v1000_v34 = vld [vmem:[#allocation2 + $0x1e0] sm:$0xff] }
 0x166   :  { %v1197_v11 = vmul.f32 0.2, %v1069_v3  ;;  %1577 = vst.msk [vmem:[%s2805_s3 + $0xd4] sm:$0xf] %vm1523_vm2, %v1779_v6  ;;  %vm1099_vm10 = vcmp.gt.f32.partialorder %v1035_v0, 0.0  ;;  %vm1131_vm11 = vcmp.gt.f32.partialorder %v1067_v9, 0.0  ;;  %v1036_v58 = vadd.f32 %v2700_v25, %v965_v15 }
 0x167   :  { %v1163_v17 = vmul.f32 0.2, %v1035_v0  ;;  %v1195_v18 = vmul.f32 0.2, %v1067_v9  ;;  %1550 = vst.msk [vmem:[%s2805_s3 + $0x68] sm:$0xf] %vm1523_vm2, %v1752_v16  ;;  %v1068_v5 = vadd.f32 %v2700_v25, %v997_v20  ;;  %v1041_v13 = vadd.f32 %v2700_v25, %v970_v23 }
 0x168   :  { %v1261_v29 = vsel %vm1133_vm9, %v1069_v3, %v1197_v11  ;;  %vm1102_vm12 = vcmp.gt.f32.partialorder %v1038_v12, 0.0  ;;  %v1166_v19 = vmul.f32 0.2, %v1038_v12  ;;  %vm1134_vm13 = vcmp.gt.f32.partialorder %v1070_v30, 0.0  ;;  %v971_v63 = vld [vmem:[#allocation2 + $0xf8] sm:$0xff]  ;;  %v969_v54 = vld [vmem:[#allocation2 + $0xe8] sm:$0xff] }
 0x169   :  { %v1784_v21 = vpack.c.bf16 %v1261_v29, %v1261_v29  ;;  %v1227_v51 = vsel %vm1099_vm10, %v1035_v0, %v1163_v17  ;;  %v1259_v52 = vsel %vm1131_vm11, %v1067_v9, %v1195_v18  ;;  %v1198_v55 = vmul.f32 0.2, %v1070_v30  ;;  %v1003_v42 = vld [vmem:[#allocation2 + $0x1f8] sm:$0xff]  ;;  %v1001_v40 = vld [vmem:[#allocation2 + $0x1e8] sm:$0xff] }
 0x16a   :  { %v1750_v45 = vpack.c.bf16 %v1227_v51, %v1227_v51  ;;  %v1782_v46 = vpack.c.bf16 %v1259_v52, %v1259_v52  ;;  %v1230_v33 = vsel %vm1102_vm12, %v1038_v12, %v1166_v19  ;;  %vm1100_vm14 = vcmp.gt.f32.partialorder %v1036_v58, 0.0 }
 0x16b   :  { %1582 = vst.msk [vmem:[%s2805_s3 + $0xe8] sm:$0xf] %vm1523_vm2, %v1784_v21  ;;  %v1753_v50 = vpack.c.bf16 %v1230_v33, %v1230_v33  ;;  %v1164_v4 = vmul.f32 0.2, %v1036_v58  ;;  %v1073_v14 = vadd.f32 %v2700_v25, %v1002_v35  ;;  %v1039_v22 = vadd.f32 %v2700_v25, %v968_v24 }
 0x16c   :  { %1548 = vst.msk [vmem:[%s2805_s3 + $0x60] sm:$0xf] %vm1523_vm2, %v1750_v45  ;;  %1580 = vst.msk [vmem:[%s2805_s3 + $0xe0] sm:$0xf] %vm1523_vm2, %v1782_v46  ;;  %v1262_v27 = vsel %vm1134_vm13, %v1070_v30, %v1198_v55  ;;  %v1071_v7 = vadd.f32 %v2700_v25, %v1000_v34  ;;  %v1042_v26 = vadd.f32 %v2700_v25, %v971_v63  ;;  %vm1132_vm15 = vcmp.gt.f32.partialorder %v1068_v5, 0.0 }
 0x16d   :  { %1551 = vst.msk [vmem:[%s2805_s3 + $0x6c] sm:$0xf] %vm1523_vm2, %v1753_v50  ;;  %v1228_v28 = vsel %vm1100_vm14, %v1036_v58, %v1164_v4  ;;  %v1785_v31 = vpack.c.bf16 %v1262_v27, %v1262_v27  ;;  %v1196_v36 = vmul.f32 0.2, %v1068_v5  ;;  %vm1105_vm1 = vcmp.gt.f32.partialorder %v1041_v13, 0.0 }
 0x16e   :  { %v1751_v1 = vpack.c.bf16 %v1228_v28, %v1228_v28  ;;  %v1169_v48 = vmul.f32 0.2, %v1041_v13  ;;  %vm1137_vm3 = vcmp.gt.f32.partialorder %v1073_v14, 0.0  ;;  %v1201_v37 = vmul.f32 0.2, %v1073_v14 }
 0x16f   :  { %1583 = vst.msk [vmem:[%s2805_s3 + $0xec] sm:$0xf] %vm1523_vm2, %v1785_v31  ;;  %v1260_v38 = vsel %vm1132_vm15, %v1068_v5, %v1196_v36  ;;  %vm1103_vm4 = vcmp.gt.f32.partialorder %v1039_v22, 0.0  ;;  %v1167_v39 = vmul.f32 0.2, %v1039_v22  ;;  %vm1135_vm5 = vcmp.gt.f32.partialorder %v1071_v7, 0.0 }
 0x170   :  { %1549 = vst.msk [vmem:[%s2805_s3 + $0x64] sm:$0xf] %vm1523_vm2, %v1751_v1  ;;  %v1783_v32 = vpack.c.bf16 %v1260_v38, %v1260_v38  ;;  %v1233_v43 = vsel %vm1105_vm1, %v1041_v13, %v1169_v48  ;;  %v1265_v44 = vsel %vm1137_vm3, %v1073_v14, %v1201_v37  ;;  %v1199_v49 = vmul.f32 0.2, %v1071_v7 }
 0x171   :  { %v1756_v41 = vpack.c.bf16 %v1233_v43, %v1233_v43  ;;  %v1788_v53 = vpack.c.bf16 %v1265_v44, %v1265_v44  ;;  %v1231_v56 = vsel %vm1103_vm4, %v1039_v22, %v1167_v39  ;;  %vm1106_vm0 = vcmp.gt.f32.partialorder %v1042_v26, 0.0 }
 0x172   :  { %1581 = vst.msk [vmem:[%s2805_s3 + $0xe4] sm:$0xf] %vm1523_vm2, %v1783_v32  ;;  %v1754_v57 = vpack.c.bf16 %v1231_v56, %v1231_v56  ;;  %v1263_v59 = vsel %vm1135_vm5, %v1071_v7, %v1199_v49  ;;  %v1170_v60 = vmul.f32 0.2, %v1042_v26  ;;  %v1074_v61 = vadd.f32 %v2700_v25, %v1003_v42 }
 0x173   :  { %1554 = vst.msk [vmem:[%s2805_s3 + $0x78] sm:$0xf] %vm1523_vm2, %v1756_v41  ;;  %1586 = vst.msk [vmem:[%s2805_s3 + $0xf8] sm:$0xf] %vm1523_vm2, %v1788_v53  ;;  %v1786_v47 = vpack.c.bf16 %v1263_v59, %v1263_v59  ;;  %v1040_v62 = vadd.f32 %v2700_v25, %v969_v54  ;;  %v1072_v2 = vadd.f32 %v2700_v25, %v1001_v40 }
 0x174   :  { %1552 = vst.msk [vmem:[%s2805_s3 + $0x70] sm:$0xf] %vm1523_vm2, %v1754_v57  ;;  %v1234_v3 = vsel %vm1106_vm0, %v1042_v26, %v1170_v60  ;;  %vm1138_vm6 = vcmp.gt.f32.partialorder %v1074_v61, 0.0  ;;  %v1202_v6 = vmul.f32 0.2, %v1074_v61 }
 0x175   :  { %1584 = vst.msk [vmem:[%s2805_s3 + $0xf0] sm:$0xf] %vm1523_vm2, %v1786_v47  ;;  %v1757_v8 = vpack.c.bf16 %v1234_v3, %v1234_v3  ;;  %vm1104_vm7 = vcmp.gt.f32.partialorder %v1040_v62, 0.0  ;;  %v1168_v0 = vmul.f32 0.2, %v1040_v62  ;;  %vm1136_vm8 = vcmp.gt.f32.partialorder %v1072_v2, 0.0 }
 0x176   :  { %v1266_v9 = vsel %vm1138_vm6, %v1074_v61, %v1202_v6  ;;  %v1200_v10 = vmul.f32 0.2, %v1072_v2 }
 0x177   :  { %1555 = vst.msk [vmem:[%s2805_s3 + $0x7c] sm:$0xf] %vm1523_vm2, %v1757_v8  ;;  %v1789_v25 = vpack.c.bf16 %v1266_v9, %v1266_v9  ;;  %v1232_v16 = vsel %vm1104_vm7, %v1040_v62, %v1168_v0 }
 0x178   :  { %v1755_v11 = vpack.c.bf16 %v1232_v16, %v1232_v16  ;;  %v1264_v12 = vsel %vm1136_vm8, %v1072_v2, %v1200_v10 }
 0x179   :  { %1587 = vst.msk [vmem:[%s2805_s3 + $0xfc] sm:$0xf] %vm1523_vm2, %v1789_v25  ;;  %v1787_v15 = vpack.c.bf16 %v1264_v12, %v1264_v12 }
 0x17a   :  { %1553 = vst.msk [vmem:[%s2805_s3 + $0x74] sm:$0xf] %vm1523_vm2, %v1755_v11 }
 0x17b   :  { %1585 = vst.msk [vmem:[%s2805_s3 + $0xf4] sm:$0xf] %vm1523_vm2, %v1787_v15 }
 0x17c   :  { %1592 = vsyncpa [#allocation4], 1 }
 0x17d   :  { %1593 = vsyncpa [#allocation6], 1 }

// kernel: discriminator_forward.9
= control target key start
LH: loop header
LB: loop body
LE: loop exit
PB: predicated region body
PF: predicated region fallthrough
CT: control target
= control target key end

     0   :  { %s1518_s18 = smov 0   ;;  %s1520_s19 = smov 0   ;;  %s1717_s0 = inlined_call_operand.vmem [shape: bf16[2,64,1024], index: 0, kind: input, shape index: {}]   ;;  %s1718_s1 = inlined_call_operand.vmem [shape: bf16[1024,128], index: 1, kind: input, shape index: {}]   ;;  %s1719_s2 = inlined_call_operand.vmem [shape: f32[1,128], index: 2, kind: input, shape index: {}]   ;;  %s1720_s3 = inlined_call_operand.vmem [shape: f32[2,64,128], index: 3, kind: output, shape index: {0}]   ;;  %s1721_s4 = inlined_call_operand.vmem [shape: f32[2,1,128], index: 4, kind: output, shape index: {1}]   ;;  %s1722_s5 = inlined_call_operand.vmem [shape: f32[2,1,128], index: 5, kind: output, shape index: {2}]  }
   0x1   :  { %s1522_s20 = smov 0   ;;  %s1524_s21 = smov 0  }
   0x2   :  { %s1526_s22 = smov 0   ;;  %s1528_s23 = smov 0  }
   0x3   :  { %s1530_s24 = smov 0  }
   0x4 LB: > { %s28_s25 = sadd.s32 1, %s1477_s22  ;;  %s35_s26 = sadd.s32 1, %s1481_s23  ;;  %s1485_s24 = sphi %s1530_s24, %s16_s24   ;;  %s1481_s23 = sphi %s1528_s23, %s1728_s23   ;;  %s1477_s22 = sphi %s1526_s22, %s1727_s22   ;;  %s1473_s21 = sphi %s1524_s21, %s1726_s21   ;;  %s1469_s20 = sphi %s1522_s20, %s1725_s20   ;;  %s1465_s19 = sphi %s1520_s19, %s1724_s19   ;;  %s1461_s18 = sphi %s1518_s18, %s1723_s18  }
   0x5   : > { %p29_p0 = scmp.ge.s32.totalorder %s28_s25, 2  ;;  %p53_p1 = scmp.ne.s32.totalorder %s1465_s19, %s1461_s18 }
   0x6   : > { %p54_p2 = scmp.eq.s32.totalorder %s1485_s24, 0  ;;  %s46_s30 = sadd.s32 1, %s1465_s19 }
   0x7   : > { %s1730_s25 = smov (%p29_p0, %s28_s25), 0  ;;  %s1732_s26 = smov (!%p29_p0, %s35_s26), %s1481_s23 }
   0x8   : > { %p55_p3 = por %p54_p2, %p53_p1  ;;  %p37_p4 = scmp.ge.s32.totalorder %s1732_s26, 2 }
   0x9   : > { %s42_s27 = ssub.s32 %s1477_s22, %s1730_s25  ;;  %p1173_p6 = scmp.ge.s32.totalorder %s1485_s24, 4 }
   0xa   : > { %s1734_s26 = smov (%p37_p4, %s1732_s26), 0 }
   0xb   : > { %s39_s28 = ssub.s32 %s1481_s23, %s1734_s26  ;;  %209 = sbr.rel (%p1173_p6) target bundleno = 33 (0x21), region = 20 }
   0xc   : > { %s43_s29 = sor.u32 %s42_s27, %s39_s28 }
   0xd   : > { %p44_p5 = scmp.eq.s32.totalorder %s43_s29, 0 }
   0xf   : > { %s1569_s6 = scalar_select %p44_p5, %s1465_s19, %s46_s30  }
  0x12   : > { %212 = sbr.rel (!%p55_p3) target bundleno = 33 (0x21), region = 24  ;;  %s214_s7 = sand.u32 (%p55_p3), 1, %s1465_s19  }
  0x13   : > { %s1175_s8 = sshll.u32 (%p55_p3), %s1477_s22, 2  ;;  %s1174_s9 = sshll.u32 (%p55_p3), %s214_s7, 7 }
  0x14   : > { %s1176_s10 = sshll.u32 (%p55_p3), %s1481_s23, 6  ;;  %s216_s16 = scalar_lea.vmem (%p55_p3), [#allocation3], %s1174_s9 }
  0x15   : > { %s222_s11 = sadd.s32 (%p55_p3), %s1176_s10, %s1175_s8 }
  0x16   : > { %s1177_s12 = sshll.u32 (%p55_p3), %s222_s11, 2 }
  0x17   : > { %s1578_s15 = scalar_lea.vmem (%p55_p3), %s1717_s0, %s1177_s12 }
  0x18   : > { %v237_v0 = vld [vmem:[%s1578_s15] sm:$0xff] (%p55_p3)  ;;  %v239_v1 = vld [vmem:[%s1578_s15 + $0x8] sm:$0xff] (%p55_p3) }
  0x19   : > { %v241_v2 = vld [vmem:[%s1578_s15 + $0x20] sm:$0xff]  ;;  %238 = vst [vmem:[%s216_s16] sm:$0xff] %v237_v0  ;;  %240 = vst [vmem:[%s216_s16 + $0x8] sm:$0xff] %v239_v1  ;;  %v243_v3 = vld [vmem:[%s1578_s15 + $0x28] sm:$0xff] }
  0x1a   : > { %242 = vst [vmem:[%s216_s16 + $0x10] sm:$0xff] %v241_v2  ;;  %v245_v4 = vld [vmem:[%s1578_s15 + $0x40] sm:$0xff]  ;;  %v247_v5 = vld [vmem:[%s1578_s15 + $0x48] sm:$0xff]  ;;  %244 = vst [vmem:[%s216_s16 + $0x18] sm:$0xff] %v243_v3 }
  0x1b   : > { %246 = vst [vmem:[%s216_s16 + $0x20] sm:$0xff] %v245_v4  ;;  %248 = vst [vmem:[%s216_s16 + $0x28] sm:$0xff] %v247_v5  ;;  %v249_v6 = vld [vmem:[%s1578_s15 + $0x60] sm:$0xff]  ;;  %v251_v7 = vld [vmem:[%s1578_s15 + $0x68] sm:$0xff] }
  0x1c   : > { %v253_v8 = vld [vmem:[%s1578_s15 + $0x80] sm:$0xff]  ;;  %250 = vst [vmem:[%s216_s16 + $0x30] sm:$0xff] %v249_v6  ;;  %252 = vst [vmem:[%s216_s16 + $0x38] sm:$0xff] %v251_v7  ;;  %v255_v9 = vld [vmem:[%s1578_s15 + $0x88] sm:$0xff] }
  0x1d   : > { %254 = vst [vmem:[%s216_s16 + $0x40] sm:$0xff] %v253_v8  ;;  %v257_v10 = vld [vmem:[%s1578_s15 + $0xa0] sm:$0xff]  ;;  %v259_v11 = vld [vmem:[%s1578_s15 + $0xa8] sm:$0xff]  ;;  %256 = vst [vmem:[%s216_s16 + $0x48] sm:$0xff] %v255_v9 }
  0x1e   : > { %258 = vst [vmem:[%s216_s16 + $0x50] sm:$0xff] %v257_v10  ;;  %260 = vst [vmem:[%s216_s16 + $0x58] sm:$0xff] %v259_v11  ;;  %v261_v12 = vld [vmem:[%s1578_s15 + $0xc0] sm:$0xff]  ;;  %v263_v13 = vld [vmem:[%s1578_s15 + $0xc8] sm:$0xff] }
  0x1f   : > { %v265_v14 = vld [vmem:[%s1578_s15 + $0xe0] sm:$0xff]  ;;  %262 = vst [vmem:[%s216_s16 + $0x60] sm:$0xff] %v261_v12  ;;  %264 = vst [vmem:[%s216_s16 + $0x68] sm:$0xff] %v263_v13  ;;  %v267_v15 = vld [vmem:[%s1578_s15 + $0xe8] sm:$0xff] }
  0x20   : > { %266 = vst [vmem:[%s216_s16 + $0x70] sm:$0xff] %v265_v14  ;;  %268 = vst [vmem:[%s216_s16 + $0x78] sm:$0xff] %v267_v15 }
  0x21 PF: > { %p1178_p7 = scmp.ge.s32.totalorder %s1485_s24, 1  ;;  %p282_p8 = scmp.lt.s32.totalorder %s1485_s24, 5 }
  0x23   : > { %p283_p9 = pnand %p1178_p7, %p282_p8 }
  0x24   : > { %s289_s17 = sand.u32 (!%p283_p9), 1, %s1461_s18   ;;  %s1180_s27 = sshll.u32 (!%p283_p9), %s1469_s20, 6 }
  0x25   : > { %286 = sbr.rel (%p283_p9) target bundleno = 362 (0x16a), region = 51  ;;  %s1179_s28 = sshll.u32 (!%p283_p9), %s289_s17, 7 }
  0x26   : > { %p334_p10 = scmp.lt.s32.totalorder (!%p283_p9), %s1180_s27, 127  ;;  %p340_p11 = scmp.lt.s32.totalorder (!%p283_p9), %s1473_s21, 1 }
  0x27   : > { %p1184_p12 = scmp.ne.s32.totalorder (!%p283_p9), %s1469_s20, 0 }
  0x2c   : > { %s1736_s27 = smov (!%p334_p10, %s1180_s27), 127  ;;  %s1738_s21 = smov (!%p340_p11, %s1473_s21), 1 }
  0x2d   : > { %s1181_s29 = sshll.u32 %s1736_s27, 2  ;;  %s1237_s9 = sshll.u32 %s1738_s21, 6  ;;  %v1487_v16 = vmov (!%p1184_p12), 0.0  }
  0x2e   : > { %s1607_s8 = scalar_lea.vmem %s1718_s1, %s1181_s29  ;;  %s1613_s18 = scalar_lea.vmem %s1720_s3, %s1237_s9  ;;  %360 = vst [vmem:[#allocation2] sm:$0xff] (!%p1184_p12), %v1487_v16  ;;  %361 = vst [vmem:[#allocation2 + $0x8] sm:$0xff] (!%p1184_p12), %v1487_v16 }
  0x2f   : > { %s351_s14 = scalar_lea.vmem %s1721_s4, %s1738_s21  ;;  %s354_s17 = scalar_lea.vmem %s1722_s5, %s1738_s21  ;;  %362 = vst [vmem:[#allocation2 + $0x10] sm:$0xff] (!%p1184_p12), %v1487_v16  ;;  %363 = vst [vmem:[#allocation2 + $0x18] sm:$0xff] (!%p1184_p12), %v1487_v16 }
  0x30   : > { %s1623_s27 = scalar_lea.vmem [#allocation3], %s1179_s28  ;;  %359 = sbr.rel (%p1184_p12) target bundleno = 55 (0x37), region = 59  ;;  %364 = vst [vmem:[#allocation2 + $0x20] sm:$0xff] (!%p1184_p12), %v1487_v16  ;;  %365 = vst [vmem:[#allocation2 + $0x28] sm:$0xff] (!%p1184_p12), %v1487_v16 }
  0x31   : > { %366 = vst [vmem:[#allocation2 + $0x30] sm:$0xff] (!%p1184_p12), %v1487_v16  ;;  %367 = vst [vmem:[#allocation2 + $0x38] sm:$0xff] (!%p1184_p12), %v1487_v16 }
  0x37 PF: > { %v1375_v17 = vld [vmem:[%s1607_s8 + $0x40] sm:$0xff]   ;;  %v1379_v21 = vld [vmem:[%s1607_s8 + $0x48] sm:$0xff]   ;;  %v1383_v25 = vld [vmem:[%s1607_s8 + $0x50] sm:$0xff]   ;;  %p1233_p13 = scmp.ne.s32.totalorder %s1469_s20, 1 }
  0x38   : > { %v1376_v18 = vld [vmem:[%s1607_s8 + $0xc0] sm:$0xff]   ;;  %1238 = vmatprep.subr.bf16.mxu0 %v1375_v17  ;;  %v1380_v22 = vld [vmem:[%s1607_s8 + $0xc8] sm:$0xff]   ;;  %v1384_v26 = vld [vmem:[%s1607_s8 + $0xd0] sm:$0xff]  }
  0x39   : > { %v1377_v19 = vld [vmem:[%s1607_s8] sm:$0xff]   ;;  %1278 = vmatprep.subr.bf16.mxu1 %v1376_v18  ;;  %v1381_v23 = vld [vmem:[%s1607_s8 + $0x8] sm:$0xff]   ;;  %v1385_v27 = vld [vmem:[%s1607_s8 + $0x10] sm:$0xff]  }
  0x3a   : > { %v1378_v20 = vld [vmem:[%s1607_s8 + $0x80] sm:$0xff]   ;;  %1239 = vmatpush3.bf16.msra.mxu0 %v1377_v19  ;;  %v1382_v24 = vld [vmem:[%s1607_s8 + $0x88] sm:$0xff]   ;;  %v1386_v28 = vld [vmem:[%s1607_s8 + $0x90] sm:$0xff]  }
  0x3b   : > { %1279 = vmatpush3.bf16.msra.mxu1 %v1378_v20  ;;  %1240 = vmatprep.subr.bf16.mxu0 %v1379_v21  ;;  %v1387_v29 = vld [vmem:[%s1607_s8 + $0x58] sm:$0xff]   ;;  %v1391_v33 = vld [vmem:[%s1607_s8 + $0x60] sm:$0xff]   ;;  %v1395_v37 = vld [vmem:[%s1607_s8 + $0x68] sm:$0xff]  }
  0x3c   : > { %1280 = vmatprep.subr.bf16.mxu1 %v1380_v22  ;;  %v1388_v30 = vld [vmem:[%s1607_s8 + $0xd8] sm:$0xff]   ;;  %v1392_v34 = vld [vmem:[%s1607_s8 + $0xe0] sm:$0xff]   ;;  %v1396_v38 = vld [vmem:[%s1607_s8 + $0xe8] sm:$0xff]  }
  0x3d   : > { %v1389_v31 = vld [vmem:[%s1607_s8 + $0x18] sm:$0xff]   ;;  %v1393_v35 = vld [vmem:[%s1607_s8 + $0x20] sm:$0xff]   ;;  %v1397_v39 = vld [vmem:[%s1607_s8 + $0x28] sm:$0xff]  }
  0x3e   : > { %1241 = vmatpush3.bf16.msra.mxu0 %v1381_v23  ;;  %v1390_v32 = vld [vmem:[%s1607_s8 + $0x98] sm:$0xff]   ;;  %v1394_v36 = vld [vmem:[%s1607_s8 + $0xa0] sm:$0xff]   ;;  %v1398_v40 = vld [vmem:[%s1607_s8 + $0xa8] sm:$0xff]  }
  0x3f   : > { %1281 = vmatpush3.bf16.msra.mxu1 %v1382_v24  ;;  %1242 = vmatprep.subr.bf16.mxu0 %v1383_v25  ;;  %v1399_v41 = vld [vmem:[%s1607_s8 + $0x70] sm:$0xff]   ;;  %v1403_v45 = vld [vmem:[%s1607_s8 + $0x78] sm:$0xff]   ;;  %v368_v10 = vld [vmem:[#allocation2] sm:$0xff] }
  0x40   : > { %1282 = vmatprep.subr.bf16.mxu1 %v1384_v26  ;;  %v1400_v42 = vld [vmem:[%s1607_s8 + $0xf0] sm:$0xff]   ;;  %v1404_v46 = vld [vmem:[%s1607_s8 + $0xf8] sm:$0xff]   ;;  %v369_v15 = vld [vmem:[#allocation2 + $0x8] sm:$0xff] }
  0x41   : > { %v1401_v43 = vld [vmem:[%s1607_s8 + $0x30] sm:$0xff]   ;;  %v1405_v47 = vld [vmem:[%s1607_s8 + $0x38] sm:$0xff]  }
  0x42   : > { %1243 = vmatpush3.bf16.msra.mxu0 %v1385_v27  ;;  %v1402_v44 = vld [vmem:[%s1607_s8 + $0xb0] sm:$0xff]   ;;  %v1406_v48 = vld [vmem:[%s1607_s8 + $0xb8] sm:$0xff]  }
  0x43   : > { %1283 = vmatpush3.bf16.msra.mxu1 %v1386_v28  ;;  %1244 = vmatprep.subr.bf16.mxu0 %v1387_v29  ;;  %v1407_v49 = vld [vmem:[%s1623_s27] ss:$16 sps:$4 sm:$0xff]   ;;  %v1409_v50 = vld [vmem:[%s1623_s27 + $0x4] ss:$16 sps:$4 sm:$0xff]   ;;  %v1410_v51 = vld [vmem:[%s1623_s27 + $0x8] ss:$16 sps:$4 sm:$0xff]  }
  0x44   : > { %1284 = vmatprep.subr.bf16.mxu1 %v1388_v30  ;;  %v1412_v52 = vld [vmem:[%s1623_s27 + $0xc] ss:$16 sps:$4 sm:$0xff]   ;;  %760 = vmatprep.mubr.bf16.mxu0 %v1409_v50  ;;  %v1413_v53 = vld [vmem:[%s1623_s27 + $0x24] ss:$16 sps:$4 sm:$0xff]   ;;  %v1417_v55 = vld [vmem:[%s1623_s27 + $0x20] ss:$16 sps:$4 sm:$0xff]  }
  0x45   : > { %825 = vmatprep.mubr.bf16.mxu1 %v1412_v52  ;;  %v1415_v54 = vld [vmem:[%s1623_s27 + $0x2c] ss:$16 sps:$4 sm:$0xff]   ;;  %v1418_v56 = vld [vmem:[%s1623_s27 + $0x28] ss:$16 sps:$4 sm:$0xff]   ;;  %v1419_v57 = vld [vmem:[%s1623_s27 + $0x44] ss:$16 sps:$4 sm:$0xff]  }
  0x46   : > { %1245 = vmatpush3.bf16.msra.mxu0 %v1389_v31  ;;  %v1421_v58 = vld [vmem:[%s1623_s27 + $0x4c] ss:$16 sps:$4 sm:$0xff]   ;;  %v1423_v59 = vld [vmem:[%s1623_s27 + $0x40] ss:$16 sps:$4 sm:$0xff]   ;;  %v1424_v60 = vld [vmem:[%s1623_s27 + $0x48] ss:$16 sps:$4 sm:$0xff]  }
  0x47   : > { %1285 = vmatpush3.bf16.msra.mxu1 %v1390_v32  ;;  %1246 = vmatprep.subr.bf16.mxu0 %v1391_v33  ;;  %v1425_v61 = vld [vmem:[%s1623_s27 + $0x64] ss:$16 sps:$4 sm:$0xff]   ;;  %v1427_v62 = vld [vmem:[%s1623_s27 + $0x6c] ss:$16 sps:$4 sm:$0xff]   ;;  %v1429_v63 = vld [vmem:[%s1623_s27 + $0x60] ss:$16 sps:$4 sm:$0xff]  }
  0x48   : > { %1286 = vmatprep.subr.bf16.mxu1 %v1392_v34  ;;  %v1430_v0 = vld [vmem:[%s1623_s27 + $0x68] ss:$16 sps:$4 sm:$0xff]   ;;  %v370_v28 = vld [vmem:[#allocation2 + $0x10] sm:$0xff] }
  0x49   : > { %v371_v33 = vld [vmem:[#allocation2 + $0x18] sm:$0xff] }
  0x4a   : > { %1247 = vmatpush3.bf16.msra.mxu0 %v1393_v35 }
  0x4b   : > { %1287 = vmatpush3.bf16.msra.mxu1 %v1394_v36  ;;  %1248 = vmatprep.subr.bf16.mxu0 %v1395_v37 }
  0x4c   : > { %1288 = vmatprep.subr.bf16.mxu1 %v1396_v38 }
  0x4e   : > { %1249 = vmatpush3.bf16.msra.mxu0 %v1397_v39 }
  0x4f   : > { %1289 = vmatpush3.bf16.msra.mxu1 %v1398_v40  ;;  %1250 = vmatprep.subr.bf16.mxu0 %v1399_v41 }
  0x50   : > { %1290 = vmatprep.subr.bf16.mxu1 %v1400_v42 }
  0x52   : > { %1251 = vmatpush3.bf16.msra.mxu0 %v1401_v43 }
  0x53   : > { %1291 = vmatpush3.bf16.msra.mxu1 %v1402_v44  ;;  %1252 = vmatprep.subr.bf16.mxu0 %v1403_v45 }
  0x54   : > { %1292 = vmatprep.subr.bf16.mxu1 %v1404_v46  ;;  %v372_v46 = vld [vmem:[#allocation2 + $0x20] sm:$0xff] }
  0x56   : > { %1253 = vmatpush3.bf16.msra.mxu0 %v1405_v47 }
  0x57   : > { %1293 = vmatpush3.bf16.msra.mxu1 %v1406_v48 }
  0x59   : > { %761 = vmatmul.mubr.bf16.vlgmr.msra.gmra.mrb[0].mxu0 %v1407_v49 }
  0x5a   : > { %826 = vmatmul.mubr.bf16.vlgmr.msra.gmra.mrb[0].mxu1 %v1410_v51  ;;  %768 = vmatprep.mubr.bf16.mxu0 %v1413_v53  ;;  %v373_v51 = vld [vmem:[#allocation2 + $0x28] sm:$0xff] }
  0x5b   : > { %833 = vmatprep.mubr.bf16.mxu1 %v1415_v54 }
  0x61   : > { %769 = vmatmul.mubr.bf16.gmra.mrb[4].mxu0 %v1417_v55 }
  0x62   : > { %834 = vmatmul.mubr.bf16.gmra.mrb[4].mxu1 %v1418_v56  ;;  %776 = vmatprep.mubr.bf16.mxu0 %v1419_v57 }
  0x63   : > { %841 = vmatprep.mubr.bf16.mxu1 %v1421_v58 }
  0x69   : > { %777 = vmatmul.mubr.bf16.gmra.mrb[8].mxu0 %v1423_v59 }
  0x6a   : > { %842 = vmatmul.mubr.bf16.gmra.mrb[8].mxu1 %v1424_v60  ;;  %784 = vmatprep.mubr.bf16.mxu0 %v1425_v61 }
  0x6b   : > { %849 = vmatprep.mubr.bf16.mxu1 %v1427_v62 }
  0x71   : > { %785 = vmatmul.mubr.bf16.gmra.mrb[12].mxu0 %v1429_v63 }
  0x72   : > { %850 = vmatmul.mubr.bf16.gmra.mrb[12].mxu1 %v1430_v0  ;;  %v374_v0 = vld [vmem:[#allocation2 + $0x30] sm:$0xff] }
 0x12c   : > { %v1254_v1 = vpop.f32.mrb[0].mxu0 }
 0x12d   : > { %v1294_v2 = vpop.f32.mrb[0].mxu1  ;;  %v1255_v3 = vpop.f32.mrb[1].mxu0 }
 0x12e   : > { %v1256_v4 = vadd.f32 %v1255_v3, %v1254_v1  ;;  %v1295_v5 = vpop.f32.mrb[1].mxu1  ;;  %v1257_v6 = vpop.f32.mrb[2].mxu0 }
 0x12f   : > { %v1296_v7 = vadd.f32 %v1295_v5, %v1294_v2  ;;  %v1297_v8 = vpop.f32.mrb[2].mxu1  ;;  %v1258_v9 = vpop.f32.mrb[3].mxu0  ;;  %v375_v5 = vld [vmem:[#allocation2 + $0x38] sm:$0xff] }
 0x130   : > { %v1259_v11 = vadd.f32 %v1258_v9, %v1257_v6  ;;  %v1298_v12 = vpop.f32.mrb[3].mxu1 }
 0x131   : > { %v828_v13 = vadd.f32 %v1296_v7, %v1256_v4  ;;  %v1299_v14 = vadd.f32 %v1298_v12, %v1297_v8 }
 0x133   : > { %v858_v16 = vadd.f32 %v828_v13, %v368_v10  ;;  %v831_v17 = vadd.f32 %v1299_v14, %v1259_v11  ;;  %v1234_v10 = vld [vmem:[%s1719_s2] ss:$0 sm:$0xff] (!%p1233_p13) }
 0x134   : > { %v1260_v18 = vpop.f32.mrb[4].mxu0 }
 0x135   : > { %866 = vst [vmem:[#allocation2] sm:$0xff] %v858_v16  ;;  %v859_v19 = vadd.f32 %v831_v17, %v369_v15  ;;  %v1300_v20 = vpop.f32.mrb[4].mxu1  ;;  %v1261_v21 = vpop.f32.mrb[5].mxu0 }
 0x136   : > { %v1262_v22 = vadd.f32 %v1261_v21, %v1260_v18  ;;  %v1301_v23 = vpop.f32.mrb[5].mxu1  ;;  %v1263_v24 = vpop.f32.mrb[6].mxu0 }
 0x137   : > { %867 = vst [vmem:[#allocation2 + $0x8] sm:$0xff] %v859_v19  ;;  %v1302_v25 = vadd.f32 %v1301_v23, %v1300_v20  ;;  %v1303_v26 = vpop.f32.mrb[6].mxu1  ;;  %v1264_v27 = vpop.f32.mrb[7].mxu0 }
 0x138   : > { %v1265_v29 = vadd.f32 %v1264_v27, %v1263_v24  ;;  %v1304_v30 = vpop.f32.mrb[7].mxu1 }
 0x139   : > { %v836_v31 = vadd.f32 %v1302_v25, %v1262_v22  ;;  %v1305_v32 = vadd.f32 %v1304_v30, %v1303_v26 }
 0x13b   : > { %v860_v34 = vadd.f32 %v836_v31, %v370_v28  ;;  %v839_v35 = vadd.f32 %v1305_v32, %v1265_v29 }
 0x13c   : > { %v1266_v36 = vpop.f32.mrb[8].mxu0  ;;  %v878_v9 = vld [vmem:[#allocation2] sm:$0xff] (!%p1233_p13) }
 0x13d   : > { %868 = vst [vmem:[#allocation2 + $0x10] sm:$0xff] %v860_v34  ;;  %v861_v37 = vadd.f32 %v839_v35, %v371_v33  ;;  %v1306_v38 = vpop.f32.mrb[8].mxu1  ;;  %v1267_v39 = vpop.f32.mrb[9].mxu0  ;;  %v893_v12 = vadd.f32 (!%p1233_p13), %v1234_v10, %v878_v9 }
 0x13e   : > { %v1268_v40 = vadd.f32 %v1267_v39, %v1266_v36  ;;  %v1307_v41 = vpop.f32.mrb[9].mxu1  ;;  %v1269_v42 = vpop.f32.mrb[10].mxu0  ;;  %v879_v11 = vld [vmem:[#allocation2 + $0x8] sm:$0xff] (!%p1233_p13) }
 0x13f   : > { %869 = vst [vmem:[#allocation2 + $0x18] sm:$0xff] %v861_v37  ;;  %v1308_v43 = vadd.f32 %v1307_v41, %v1306_v38  ;;  %v1309_v44 = vpop.f32.mrb[10].mxu1  ;;  %v1270_v45 = vpop.f32.mrb[11].mxu0  ;;  %v894_v13 = vadd.f32 (!%p1233_p13), %v1234_v10, %v879_v11  ;;  %901 = vst [vmem:[%s1613_s18] sm:$0xff] (!%p1233_p13), %v893_v12  ;;  %v973_v23 = vmul.f32 (!%p1233_p13), %v893_v12, %v893_v12 }
 0x140   : > { %v1271_v47 = vadd.f32 %v1270_v45, %v1269_v42  ;;  %v1310_v48 = vpop.f32.mrb[11].mxu1 }
 0x141   : > { %v844_v49 = vadd.f32 %v1308_v43, %v1268_v40  ;;  %v1311_v50 = vadd.f32 %v1310_v48, %v1309_v44  ;;  %902 = vst [vmem:[%s1613_s18 + $0x8] sm:$0xff] (!%p1233_p13), %v894_v13  ;;  %v960_v24 = vadd.f32 (!%p1233_p13), %v894_v13, %v893_v12  ;;  %v974_v25 = vmul.f32 (!%p1233_p13), %v894_v13, %v894_v13 }
 0x143   : > { %v862_v52 = vadd.f32 %v844_v49, %v372_v46  ;;  %v847_v53 = vadd.f32 %v1311_v50, %v1271_v47  ;;  %v981_v29 = vadd.f32 (!%p1233_p13), %v974_v25, %v973_v23 }
 0x144   : > { %v1272_v54 = vpop.f32.mrb[12].mxu0  ;;  %v880_v14 = vld [vmem:[#allocation2 + $0x10] sm:$0xff] (!%p1233_p13) }
 0x145   : > { %870 = vst [vmem:[#allocation2 + $0x20] sm:$0xff] %v862_v52  ;;  %v863_v55 = vadd.f32 %v847_v53, %v373_v51  ;;  %v1312_v56 = vpop.f32.mrb[12].mxu1  ;;  %v1273_v57 = vpop.f32.mrb[13].mxu0  ;;  %v895_v17 = vadd.f32 (!%p1233_p13), %v1234_v10, %v880_v14 }
 0x146   : > { %v1274_v58 = vadd.f32 %v1273_v57, %v1272_v54  ;;  %v1313_v59 = vpop.f32.mrb[13].mxu1  ;;  %v1275_v60 = vpop.f32.mrb[14].mxu0  ;;  %v881_v15 = vld [vmem:[#allocation2 + $0x18] sm:$0xff] (!%p1233_p13) }
 0x147   : > { %871 = vst [vmem:[#allocation2 + $0x28] sm:$0xff] %v863_v55  ;;  %v1314_v61 = vadd.f32 %v1313_v59, %v1312_v56  ;;  %v1315_v62 = vpop.f32.mrb[14].mxu1  ;;  %v1276_v63 = vpop.f32.mrb[15].mxu0  ;;  %v896_v18 = vadd.f32 (!%p1233_p13), %v1234_v10, %v881_v15  ;;  %903 = vst [vmem:[%s1613_s18 + $0x10] sm:$0xff] (!%p1233_p13), %v895_v17  ;;  %v975_v27 = vmul.f32 (!%p1233_p13), %v895_v17, %v895_v17 }
 0x148   : > { %v1277_v1 = vadd.f32 %v1276_v63, %v1275_v60  ;;  %v1316_v2 = vpop.f32.mrb[15].mxu1  ;;  %v961_v30 = vadd.f32 (!%p1233_p13), %v960_v24, %v895_v17 }
 0x149   : > { %v852_v3 = vadd.f32 %v1314_v61, %v1274_v58  ;;  %v1317_v4 = vadd.f32 %v1316_v2, %v1315_v62  ;;  %877 = sbr.rel (%p1233_p13) target bundleno = 362 (0x16a), region = 63  ;;  %904 = vst [vmem:[%s1613_s18 + $0x18] sm:$0xff] (!%p1233_p13), %v896_v18  ;;  %v976_v31 = vmul.f32 (!%p1233_p13), %v896_v18, %v896_v18  ;;  %v982_v33 = vadd.f32 (!%p1233_p13), %v981_v29, %v975_v27 }
 0x14a   : > { %v962_v34 = vadd.f32 (!%p1233_p13), %v961_v30, %v896_v18 }
 0x14b   : > { %v864_v6 = vadd.f32 %v852_v3, %v374_v0  ;;  %v855_v7 = vadd.f32 %v1317_v4, %v1277_v1  ;;  %v983_v36 = vadd.f32 (!%p1233_p13), %v982_v33, %v976_v31 }
 0x14c   : > { %v882_v16 = vld [vmem:[#allocation2 + $0x20] sm:$0xff] (!%p1233_p13) }
 0x14d   : > { %872 = vst [vmem:[#allocation2 + $0x30] sm:$0xff] %v864_v6  ;;  %v865_v8 = vadd.f32 %v855_v7, %v375_v5  ;;  %v897_v19 = vadd.f32 (!%p1233_p13), %v1234_v10, %v882_v16 }
 0x14e   : > { %v883_v20 = vld [vmem:[#allocation2 + $0x28] sm:$0xff] (!%p1233_p13) }
 0x14f   : > { %873 = vst [vmem:[#allocation2 + $0x38] sm:$0xff] %v865_v8  ;;  %v898_v26 = vadd.f32 (!%p1233_p13), %v1234_v10, %v883_v20  ;;  %905 = vst [vmem:[%s1613_s18 + $0x20] sm:$0xff] (!%p1233_p13), %v897_v19  ;;  %v977_v35 = vmul.f32 (!%p1233_p13), %v897_v19, %v897_v19  ;;  %v963_v37 = vadd.f32 (!%p1233_p13), %v962_v34, %v897_v19 }
 0x151   : > { %906 = vst [vmem:[%s1613_s18 + $0x28] sm:$0xff] %v898_v26  ;;  %v978_v38 = vmul.f32 %v898_v26, %v898_v26  ;;  %v984_v39 = vadd.f32 %v983_v36, %v977_v35  ;;  %v964_v40 = vadd.f32 %v963_v37, %v898_v26 }
 0x153   : > { %v985_v44 = vadd.f32 %v984_v39, %v978_v38 }
 0x154   : > { %v884_v21 = vld [vmem:[#allocation2 + $0x30] sm:$0xff] }
 0x155   : > { %v899_v28 = vadd.f32 %v1234_v10, %v884_v21 }
 0x156   : > { %v885_v22 = vld [vmem:[#allocation2 + $0x38] sm:$0xff] }
 0x157   : > { %v900_v32 = vadd.f32 %v1234_v10, %v885_v22  ;;  %907 = vst [vmem:[%s1613_s18 + $0x30] sm:$0xff] %v899_v28  ;;  %v979_v41 = vmul.f32 %v899_v28, %v899_v28  ;;  %v965_v42 = vadd.f32 %v964_v40, %v899_v28 }
 0x159   : > { %908 = vst [vmem:[%s1613_s18 + $0x38] sm:$0xff] %v900_v32  ;;  %v980_v43 = vmul.f32 %v900_v32, %v900_v32  ;;  %v966_v45 = vadd.f32 %v965_v42, %v900_v32  ;;  %v986_v46 = vadd.f32 %v985_v44, %v979_v41 }
 0x15b   : > { %v967_v47 = vrot.slane %v966_v45, 4  ;;  %v987_v48 = vadd.f32 %v986_v46, %v980_v43 }
 0x15d   : > { %v968_v49 = vadd.f32 %v967_v47, %v966_v45  ;;  %v988_v50 = vrot.slane %v987_v48, 4 }
 0x15f   : > { %v969_v51 = vrot.slane %v968_v49, 2  ;;  %v989_v52 = vadd.f32 %v988_v50, %v987_v48 }
 0x161   : > { %v970_v53 = vadd.f32 %v969_v51, %v968_v49  ;;  %v990_v54 = vrot.slane %v989_v52, 2 }
 0x163   : > { %v971_v55 = vrot.slane %v970_v53, 1  ;;  %v991_v56 = vadd.f32 %v990_v54, %v989_v52 }
 0x165   : > { %v972_v57 = vadd.f32 %v971_v55, %v970_v53  ;;  %v992_v58 = vrot.slane %v991_v56, 1 }
 0x167   : > { %998 = vst [vmem:[%s351_s14] sm:$0x1] %v972_v57  ;;  %v993_v59 = vadd.f32 %v992_v58, %v991_v56 }
 0x169   : > { %999 = vst [vmem:[%s354_s17] sm:$0x1] %v993_v59 }
 0x16a PF: > { %s16_s24 = sadd.s32 1, %s1485_s24   ;;  %s1723_s18 = smov %s1465_s19 }
 0x16b   : > { %p13_p0 = scmp.ge.s32.totalorder %s16_s24, 6   ;;  %s1724_s19 = smov %s1569_s6 }
 0x16c   : > { %s1725_s20 = smov %s1477_s22  ;;  %s1726_s21 = smov %s1481_s23 }
 0x16d   : > { %s1727_s22 = smov %s1730_s25  ;;  %s1728_s23 = smov %s1734_s26 }
 0x16e   :  { %15 = sbr.rel (!%p13_p0) target bundleno = 4 (0x4), region = 133 }

// kernel: discriminator_forward.10
= control target key start
LH: loop header
LB: loop body
LE: loop exit
PB: predicated region body
PF: predicated region fallthrough
CT: control target
= control target key end

     0   :  { %s574_s12 = smov 0   ;;  %s576_s13 = smov 0   ;;  %s619_s0 = inlined_call_operand.vmem [shape: f32[2,64,128], index: 0, kind: input, shape index: {}]   ;;  %s620_s1 = inlined_call_operand.vmem [shape: f32[2,1,128], index: 1, kind: input, shape index: {}]   ;;  %s621_s2 = inlined_call_operand.vmem [shape: f32[2,1,128], index: 2, kind: input, shape index: {}]   ;;  %s622_s3 = inlined_call_operand.vmem [shape: bf16[2,64,128], index: 3, kind: output, shape index: {}]  }
   0x1   :  { %s578_s14 = smov 0  }
   0x2 LB: > { %s25_s15 = sadd.s32 1, %s548_s13  ;;  %p456_p0 = scmp.ge.s32.totalorder %s552_s14, 1  ;;  %s552_s14 = sphi %s578_s14, %s13_s14   ;;  %s548_s13 = sphi %s576_s13, %s624_s13   ;;  %s544_s12 = sphi %s574_s12, %s623_s12  }
   0x3   : > { %p27_p1 = scmp.ge.s32.totalorder %s25_s15, 2  ;;  %p174_p2 = scmp.lt.s32.totalorder %s552_s14, 3 }
   0x5   : > { %s626_s15 = smov (%p27_p1, %s25_s15), 0  ;;  %p175_p3 = pnand %p456_p0, %p174_p2 }
   0x6   : > { %p213_p4 = scmp.lt.s32.totalorder (!%p175_p3), %s544_s12, 1  ;;  %v254_v5 = vlaneseq (!%p175_p3) }
   0x7   : > { %178 = sbr.rel (%p175_p3) target bundleno = 53 (0x35), region = 32 }
   0x8   : > { %v255_v8 = vshrl.u32 (!%p175_p3), %v254_v5, 7 }
   0xa   : > { %v256_v10 = vsub.s32 (!%p175_p3), 0, %v255_v8 }
   0xe   : > { %s628_s12 = smov (!%p213_p4, %s544_s12), 1 }
   0xf   : > { %s224_s18 = scalar_lea.vmem %s620_s1, %s628_s12  ;;  %s227_s21 = scalar_lea.vmem %s621_s2, %s628_s12 }
  0x10   : > { %v246_v0 = vld [vmem:[%s224_s18] sm:$0x1]  ;;  %s471_s22 = sshll.u32 %s628_s12, 6  ;;  %s472_s26 = sshll.u32 %s628_s12, 5 }
  0x11   : > { %v247_v1 = vmul.f32 0.015625, %v246_v0  ;;  %v248_v2 = vld [vmem:[%s227_s21] sm:$0x1]  ;;  %s220_s25 = scalar_lea.vmem %s619_s0, %s471_s22  ;;  %s236_s29 = scalar_lea.vmem %s622_s3, %s472_s26 }
  0x12   : > { %v249_v3 = vmul.f32 0.015625, %v248_v2  ;;  %v238_v11 = vld [vmem:[%s220_s25] sm:$0xff]  ;;  %v239_v12 = vld [vmem:[%s220_s25 + $0x8] sm:$0xff]  ;;  %v240_v14 = vld [vmem:[%s220_s25 + $0x10] sm:$0xff] }
  0x13   : > { %v250_v4 = vmul.f32 %v247_v1, %v247_v1  ;;  %v257_v13 = vrot.slane %v247_v1, %v256_v10  ;;  %v241_v15 = vld [vmem:[%s220_s25 + $0x18] sm:$0xff]  ;;  %v242_v16 = vld [vmem:[%s220_s25 + $0x20] sm:$0xff]  ;;  %v243_v17 = vld [vmem:[%s220_s25 + $0x28] sm:$0xff] }
  0x14   : > { %v244_v18 = vld [vmem:[%s220_s25 + $0x30] sm:$0xff]  ;;  %v245_v19 = vld [vmem:[%s220_s25 + $0x38] sm:$0xff] }
  0x15   : > { %v251_v6 = vsub.f32 %v249_v3, %v250_v4  ;;  %v259_v20 = vsub.f32 %v238_v11, %v257_v13  ;;  %v260_v21 = vsub.f32 %v239_v12, %v257_v13  ;;  %v261_v22 = vsub.f32 %v240_v14, %v257_v13 }
  0x16   : > { %v262_v23 = vsub.f32 %v241_v15, %v257_v13  ;;  %v263_v25 = vsub.f32 %v242_v16, %v257_v13  ;;  %v264_v26 = vsub.f32 %v243_v17, %v257_v13  ;;  %v265_v27 = vsub.f32 %v244_v18, %v257_v13 }
  0x17   : > { %v252_v7 = vmax.f32 %v251_v6, 0.0  ;;  %v266_v28 = vsub.f32 %v245_v19, %v257_v13 }
  0x19   : > { %v267_v9 = vadd.f32 1e-05, %v252_v7 }
  0x1b   : > { %528 = vrsqrt.f32 %v267_v9 }
  0x25   : > { %v529_v24 = vpop.eup %528 }
  0x26   : > { %v273_v29 = vrot.slane %v529_v24, %v256_v10 }
  0x28   : > { %v275_v30 = vmul.f32 %v273_v29, %v259_v20  ;;  %v276_v31 = vmul.f32 %v273_v29, %v260_v21  ;;  %v277_v32 = vmul.f32 %v273_v29, %v261_v22  ;;  %v278_v33 = vmul.f32 %v273_v29, %v262_v23 }
  0x29   : > { %v279_v34 = vmul.f32 %v273_v29, %v263_v25  ;;  %v280_v35 = vmul.f32 %v273_v29, %v264_v26  ;;  %v281_v36 = vmul.f32 %v273_v29, %v265_v27  ;;  %v282_v37 = vmul.f32 %v273_v29, %v266_v28 }
  0x2a   : > { %vm283_vm0 = vcmp.gt.f32.partialorder %v275_v30, 0.0  ;;  %vm284_vm1 = vcmp.gt.f32.partialorder %v276_v31, 0.0  ;;  %v291_v38 = vmul.f32 0.2, %v275_v30  ;;  %v292_v39 = vmul.f32 0.2, %v276_v31 }
  0x2b   : > { %vm285_vm2 = vcmp.gt.f32.partialorder %v277_v32, 0.0  ;;  %vm286_vm3 = vcmp.gt.f32.partialorder %v278_v33, 0.0  ;;  %v293_v40 = vmul.f32 0.2, %v277_v32  ;;  %v294_v41 = vmul.f32 0.2, %v278_v33 }
  0x2c   : > { %v299_v42 = vsel %vm283_vm0, %v275_v30, %v291_v38  ;;  %v300_v43 = vsel %vm284_vm1, %v276_v31, %v292_v39  ;;  %vm287_vm4 = vcmp.gt.f32.partialorder %v279_v34, 0.0  ;;  %vm288_vm5 = vcmp.gt.f32.partialorder %v280_v35, 0.0 }
  0x2d   : > { %v484_v44 = vpack.c.bf16 %v300_v43, %v299_v42  ;;  %v301_v45 = vsel %vm285_vm2, %v277_v32, %v293_v40  ;;  %v302_v46 = vsel %vm286_vm3, %v278_v33, %v294_v41  ;;  %v295_v47 = vmul.f32 0.2, %v279_v34 }
  0x2e   : > { %v489_v48 = vpack.c.bf16 %v302_v46, %v301_v45  ;;  %v296_v49 = vmul.f32 0.2, %v280_v35  ;;  %vm289_vm6 = vcmp.gt.f32.partialorder %v281_v36, 0.0  ;;  %vm290_vm7 = vcmp.gt.f32.partialorder %v282_v37, 0.0 }
  0x2f   : > { %485 = vst [vmem:[%s236_s29] sm:$0xff] %v484_v44   ;;  %v303_v50 = vsel %vm287_vm4, %v279_v34, %v295_v47  ;;  %v297_v51 = vmul.f32 0.2, %v281_v36  ;;  %v298_v52 = vmul.f32 0.2, %v282_v37 }
  0x30   : > { %501 = vst [vmem:[%s236_s29 + $0x8] sm:$0xff] %v489_v48   ;;  %v304_v53 = vsel %vm288_vm5, %v280_v35, %v296_v49 }
  0x31   : > { %v494_v54 = vpack.c.bf16 %v304_v53, %v303_v50  ;;  %v305_v55 = vsel %vm289_vm6, %v281_v36, %v297_v51  ;;  %v306_v56 = vsel %vm290_vm7, %v282_v37, %v298_v52 }
  0x32   : > { %v499_v57 = vpack.c.bf16 %v306_v56, %v305_v55 }
  0x33   : > { %502 = vst [vmem:[%s236_s29 + $0x10] sm:$0xff] %v494_v54  }
  0x34   : > { %503 = vst [vmem:[%s236_s29 + $0x18] sm:$0xff] %v499_v57  }
  0x35 PF: > { %s13_s14 = sadd.s32 1, %s552_s14   ;;  %s623_s12 = smov %s548_s13 }
  0x36   : > { %p10_p5 = scmp.ge.s32.totalorder %s13_s14, 4   ;;  %s624_s13 = smov %s626_s15 }
  0x38   :  { %12 = sbr.rel (!%p10_p5) target bundleno = 2 (0x2), region = 68 }

// kernel: discriminator_forward.11
= control target key start
LH: loop header
LB: loop body
LE: loop exit
PB: predicated region body
PF: predicated region fallthrough
CT: control target
= control target key end

     0   :  { %s1548_s18 = smov 0   ;;  %s1550_s19 = smov 0   ;;  %s1736_s0 = inlined_call_operand.vmem [shape: bf16[2,16,2048], index: 0, kind: input, shape index: {}]   ;;  %s1737_s1 = inlined_call_operand.vmem [shape: bf16[2048,256], index: 1, kind: input, shape index: {}]   ;;  %s1738_s2 = inlined_call_operand.vmem [shape: f32[1,256], index: 2, kind: input, shape index: {}]   ;;  %s1739_s3 = inlined_call_operand.vmem [shape: f32[2,16,256], index: 3, kind: output, shape index: {0}]   ;;  %s1740_s4 = inlined_call_operand.vmem [shape: f32[2,1,256], index: 4, kind: output, shape index: {1}]   ;;  %s1741_s5 = inlined_call_operand.vmem [shape: f32[2,1,256], index: 5, kind: output, shape index: {2}]  }
   0x1   :  { %s1552_s20 = smov 0   ;;  %s1554_s21 = smov 0  }
   0x2   :  { %s1556_s22 = smov 0   ;;  %s1558_s23 = smov 0  }
   0x3   :  { %s1560_s24 = smov 0  }
   0x4 LB: > { %s28_s25 = sadd.s32 1, %s1506_s22  ;;  %s35_s26 = sadd.s32 1, %s1510_s23  ;;  %s1514_s24 = sphi %s1560_s24, %s16_s24   ;;  %s1510_s23 = sphi %s1558_s23, %s1747_s23   ;;  %s1506_s22 = sphi %s1556_s22, %s1746_s22   ;;  %s1502_s21 = sphi %s1554_s21, %s1745_s21   ;;  %s1498_s20 = sphi %s1552_s20, %s1744_s20   ;;  %s1494_s19 = sphi %s1550_s19, %s1743_s19   ;;  %s1490_s18 = sphi %s1548_s18, %s1742_s18  }
   0x5   : > { %p29_p0 = scmp.ge.s32.totalorder %s28_s25, 4  ;;  %p53_p1 = scmp.ne.s32.totalorder %s1494_s19, %s1490_s18 }
   0x6   : > { %p54_p2 = scmp.eq.s32.totalorder %s1514_s24, 0  ;;  %s46_s30 = sadd.s32 1, %s1494_s19 }
   0x7   : > { %s1749_s25 = smov (%p29_p0, %s28_s25), 0  ;;  %s1751_s26 = smov (!%p29_p0, %s35_s26), %s1510_s23 }
   0x8   : > { %p55_p3 = por %p54_p2, %p53_p1  ;;  %p37_p4 = scmp.ge.s32.totalorder %s1751_s26, 2 }
   0x9   : > { %s42_s27 = ssub.s32 %s1506_s22, %s1749_s25  ;;  %p1208_p6 = scmp.ge.s32.totalorder %s1514_s24, 8 }
   0xa   : > { %s1753_s26 = smov (%p37_p4, %s1751_s26), 0 }
   0xb   : > { %s39_s28 = ssub.s32 %s1510_s23, %s1753_s26  ;;  %209 = sbr.rel (%p1208_p6) target bundleno = 27 (0x1b), region = 20 }
   0xc   : > { %s43_s29 = sor.u32 %s42_s27, %s39_s28 }
   0xd   : > { %p44_p5 = scmp.eq.s32.totalorder %s43_s29, 0 }
   0xf   : > { %s1599_s6 = scalar_select %p44_p5, %s1494_s19, %s46_s30  }
  0x12   : > { %212 = sbr.rel (!%p55_p3) target bundleno = 27 (0x1b), region = 24  ;;  %s214_s7 = sand.u32 (%p55_p3), 1, %s1494_s19  }
  0x13   : > { %s1210_s8 = sshll.u32 (%p55_p3), %s1506_s22, 2  ;;  %s1209_s9 = sshll.u32 (%p55_p3), %s214_s7, 5 }
  0x14   : > { %s1211_s10 = sshll.u32 (%p55_p3), %s1510_s23, 5  ;;  %s216_s16 = scalar_lea.vmem (%p55_p3), [#allocation3], %s1209_s9 }
  0x15   : > { %s222_s11 = sadd.s32 (%p55_p3), %s1211_s10, %s1210_s8 }
  0x16   : > { %s1212_s12 = sshll.u32 (%p55_p3), %s222_s11, 2 }
  0x17   : > { %s224_s15 = scalar_lea.vmem (%p55_p3), %s1736_s0, %s1212_s12 }
  0x18   : > { %v237_v0 = vld [vmem:[%s224_s15] sm:$0xff] (%p55_p3)  ;;  %v239_v1 = vld [vmem:[%s224_s15 + $0x8] sm:$0xff] (%p55_p3) }
  0x19   : > { %v241_v2 = vld [vmem:[%s224_s15 + $0x40] sm:$0xff]  ;;  %238 = vst [vmem:[%s216_s16] sm:$0xff] %v237_v0  ;;  %240 = vst [vmem:[%s216_s16 + $0x8] sm:$0xff] %v239_v1  ;;  %v243_v3 = vld [vmem:[%s224_s15 + $0x48] sm:$0xff] }
  0x1a   : > { %242 = vst [vmem:[%s216_s16 + $0x10] sm:$0xff] %v241_v2  ;;  %244 = vst [vmem:[%s216_s16 + $0x18] sm:$0xff] %v243_v3 }
  0x1b PF: > { %p1213_p7 = scmp.ge.s32.totalorder %s1514_s24, 1  ;;  %p259_p8 = scmp.lt.s32.totalorder %s1514_s24, 9 }
  0x1d   : > { %p260_p9 = pnand %p1213_p7, %p259_p8 }
  0x1e   : > { %s266_s17 = sand.u32 (!%p260_p9), 1, %s1490_s18   ;;  %s1215_s27 = sshll.u32 (!%p260_p9), %s1498_s20, 6 }
  0x1f   : > { %263 = sbr.rel (%p260_p9) target bundleno = 366 (0x16e), region = 51  ;;  %s1214_s28 = sshll.u32 (!%p260_p9), %s266_s17, 5 }
  0x20   : > { %p315_p10 = scmp.lt.s32.totalorder (!%p260_p9), %s1215_s27, 255  ;;  %p322_p11 = scmp.lt.s32.totalorder (!%p260_p9), %s1502_s21, 1 }
  0x21   : > { %s1634_s30 = scalar_lea.vmem (!%p260_p9), [#allocation3], %s1214_s28  ;;  %p1222_p12 = scmp.ne.s32.totalorder (!%p260_p9), %s1498_s20, 0 }
  0x26   : > { %s1755_s27 = smov (!%p315_p10, %s1215_s27), 255  ;;  %s1757_s21 = smov (!%p322_p11, %s1502_s21), 1 }
  0x27   : > { %s1294_s29 = sshll.u32 %s1755_s27, 3  ;;  %s1295_s9 = sshll.u32 %s1757_s21, 5  ;;  %v1516_v4 = vmov (!%p1222_p12), 0.0  }
  0x28   : > { %s1617_s8 = scalar_lea.vmem %s1737_s1, %s1294_s29  ;;  %s1622_s12 = scalar_lea.vmem %s1739_s3, %s1295_s9  ;;  %344 = vst [vmem:[#allocation2] sm:$0xff] (!%p1222_p12), %v1516_v4  ;;  %345 = vst [vmem:[#allocation2 + $0x8] sm:$0xff] (!%p1222_p12), %v1516_v4 }
  0x29   : > { %s1220_s13 = sshll.u32 %s1757_s21, 1  ;;  %343 = sbr.rel (%p1222_p12) target bundleno = 48 (0x30), region = 59  ;;  %346 = vst [vmem:[#allocation2 + $0x10] sm:$0xff] (!%p1222_p12), %v1516_v4  ;;  %347 = vst [vmem:[#allocation2 + $0x18] sm:$0xff] (!%p1222_p12), %v1516_v4 }
  0x2a   : > { %s1627_s15 = scalar_lea.vmem %s1740_s4, %s1220_s13  ;;  %s1632_s27 = scalar_lea.vmem %s1741_s5, %s1220_s13 }
  0x30 PF: > { %v1358_v5 = vld [vmem:[%s1617_s8 + $0x4] ss:$8 sps:$4 sm:$0xff]   ;;  %v1362_v7 = vld [vmem:[%s1617_s8] ss:$8 sps:$4 sm:$0xff]   ;;  %v1364_v9 = vld [vmem:[%s1617_s8 + $0x14] ss:$8 sps:$4 sm:$0xff]  }
  0x31   : > { %v1360_v6 = vld [vmem:[%s1617_s8 + $0x104] ss:$8 sps:$4 sm:$0xff]   ;;  %760 = vmatprep.subr.bf16.mxu1 %v1358_v5  ;;  %v1363_v8 = vld [vmem:[%s1617_s8 + $0x100] ss:$8 sps:$4 sm:$0xff]   ;;  %v1366_v10 = vld [vmem:[%s1617_s8 + $0x114] ss:$8 sps:$4 sm:$0xff]  }
  0x32   : > { %803 = vmatprep.subr.bf16.mxu0 %v1360_v6  ;;  %761 = vmatpush1.bf16.msra.mxu1 %v1362_v7  ;;  %v1368_v11 = vld [vmem:[%s1617_s8 + $0x10] ss:$8 sps:$4 sm:$0xff]   ;;  %v1370_v13 = vld [vmem:[%s1617_s8 + $0x24] ss:$8 sps:$4 sm:$0xff]   ;;  %v1374_v15 = vld [vmem:[%s1617_s8 + $0x20] ss:$8 sps:$4 sm:$0xff]  }
  0x33   : > { %804 = vmatpush1.bf16.msra.mxu0 %v1363_v8  ;;  %762 = vmatprep.subr.bf16.mxu1 %v1364_v9  ;;  %v1369_v12 = vld [vmem:[%s1617_s8 + $0x110] ss:$8 sps:$4 sm:$0xff]   ;;  %v1372_v14 = vld [vmem:[%s1617_s8 + $0x124] ss:$8 sps:$4 sm:$0xff]   ;;  %v1375_v16 = vld [vmem:[%s1617_s8 + $0x120] ss:$8 sps:$4 sm:$0xff]  }
  0x34   : > { %805 = vmatprep.subr.bf16.mxu0 %v1366_v10  ;;  %v1376_v17 = vld [vmem:[%s1617_s8 + $0x34] ss:$8 sps:$4 sm:$0xff]   ;;  %v1380_v19 = vld [vmem:[%s1617_s8 + $0x30] ss:$8 sps:$4 sm:$0xff]   ;;  %v1382_v21 = vld [vmem:[%s1617_s8 + $0x44] ss:$8 sps:$4 sm:$0xff]  }
  0x35   : > { %v1378_v18 = vld [vmem:[%s1617_s8 + $0x134] ss:$8 sps:$4 sm:$0xff]   ;;  %v1381_v20 = vld [vmem:[%s1617_s8 + $0x130] ss:$8 sps:$4 sm:$0xff]   ;;  %v1384_v22 = vld [vmem:[%s1617_s8 + $0x144] ss:$8 sps:$4 sm:$0xff]  }
  0x36   : > { %763 = vmatpush1.bf16.msra.mxu1 %v1368_v11  ;;  %v1386_v23 = vld [vmem:[%s1617_s8 + $0x40] ss:$8 sps:$4 sm:$0xff]   ;;  %v1388_v25 = vld [vmem:[%s1617_s8 + $0x54] ss:$8 sps:$4 sm:$0xff]   ;;  %v1392_v27 = vld [vmem:[%s1617_s8 + $0x50] ss:$8 sps:$4 sm:$0xff]  }
  0x37   : > { %806 = vmatpush1.bf16.msra.mxu0 %v1369_v12  ;;  %764 = vmatprep.subr.bf16.mxu1 %v1370_v13  ;;  %v1387_v24 = vld [vmem:[%s1617_s8 + $0x140] ss:$8 sps:$4 sm:$0xff]   ;;  %v1390_v26 = vld [vmem:[%s1617_s8 + $0x154] ss:$8 sps:$4 sm:$0xff]   ;;  %v1393_v28 = vld [vmem:[%s1617_s8 + $0x150] ss:$8 sps:$4 sm:$0xff]  }
  0x38   : > { %807 = vmatprep.subr.bf16.mxu0 %v1372_v14  ;;  %v1394_v29 = vld [vmem:[%s1617_s8 + $0x64] ss:$8 sps:$4 sm:$0xff]   ;;  %v1398_v31 = vld [vmem:[%s1617_s8 + $0x60] ss:$8 sps:$4 sm:$0xff]   ;;  %v1400_v33 = vld [vmem:[%s1617_s8 + $0x74] ss:$8 sps:$4 sm:$0xff]  }
  0x39   : > { %v1396_v30 = vld [vmem:[%s1617_s8 + $0x164] ss:$8 sps:$4 sm:$0xff]   ;;  %v1399_v32 = vld [vmem:[%s1617_s8 + $0x160] ss:$8 sps:$4 sm:$0xff]   ;;  %v1402_v34 = vld [vmem:[%s1617_s8 + $0x174] ss:$8 sps:$4 sm:$0xff]  }
  0x3a   : > { %765 = vmatpush1.bf16.msra.mxu1 %v1374_v15  ;;  %v1404_v35 = vld [vmem:[%s1617_s8 + $0x70] ss:$8 sps:$4 sm:$0xff]   ;;  %v1406_v37 = vld [vmem:[%s1617_s8 + $0x84] ss:$8 sps:$4 sm:$0xff]   ;;  %v1410_v39 = vld [vmem:[%s1617_s8 + $0x80] ss:$8 sps:$4 sm:$0xff]  }
  0x3b   : > { %808 = vmatpush1.bf16.msra.mxu0 %v1375_v16  ;;  %766 = vmatprep.subr.bf16.mxu1 %v1376_v17  ;;  %v1405_v36 = vld [vmem:[%s1617_s8 + $0x170] ss:$8 sps:$4 sm:$0xff]   ;;  %v1408_v38 = vld [vmem:[%s1617_s8 + $0x184] ss:$8 sps:$4 sm:$0xff]   ;;  %v1411_v40 = vld [vmem:[%s1617_s8 + $0x180] ss:$8 sps:$4 sm:$0xff]  }
  0x3c   : > { %809 = vmatprep.subr.bf16.mxu0 %v1378_v18  ;;  %v1412_v41 = vld [vmem:[%s1617_s8 + $0x94] ss:$8 sps:$4 sm:$0xff]   ;;  %v1416_v43 = vld [vmem:[%s1617_s8 + $0x90] ss:$8 sps:$4 sm:$0xff]   ;;  %v1418_v45 = vld [vmem:[%s1617_s8 + $0xa4] ss:$8 sps:$4 sm:$0xff]  }
  0x3d   : > { %v1414_v42 = vld [vmem:[%s1617_s8 + $0x194] ss:$8 sps:$4 sm:$0xff]   ;;  %v1417_v44 = vld [vmem:[%s1617_s8 + $0x190] ss:$8 sps:$4 sm:$0xff]   ;;  %v1420_v46 = vld [vmem:[%s1617_s8 + $0x1a4] ss:$8 sps:$4 sm:$0xff]  }
  0x3e   : > { %767 = vmatpush1.bf16.msra.mxu1 %v1380_v19  ;;  %v1422_v47 = vld [vmem:[%s1617_s8 + $0xa0] ss:$8 sps:$4 sm:$0xff]   ;;  %v1424_v49 = vld [vmem:[%s1617_s8 + $0xb4] ss:$8 sps:$4 sm:$0xff]   ;;  %v1428_v51 = vld [vmem:[%s1617_s8 + $0xb0] ss:$8 sps:$4 sm:$0xff]  }
  0x3f   : > { %810 = vmatpush1.bf16.msra.mxu0 %v1381_v20  ;;  %768 = vmatprep.subr.bf16.mxu1 %v1382_v21  ;;  %v1423_v48 = vld [vmem:[%s1617_s8 + $0x1a0] ss:$8 sps:$4 sm:$0xff]   ;;  %v1426_v50 = vld [vmem:[%s1617_s8 + $0x1b4] ss:$8 sps:$4 sm:$0xff]   ;;  %v1429_v53 = vld [vmem:[%s1617_s8 + $0x1b0] ss:$8 sps:$4 sm:$0xff]  }
  0x40   : > { %811 = vmatprep.subr.bf16.mxu0 %v1384_v22  ;;  %v1456_v52 = vld [vmem:[%s1634_s30 + $0x4] ss:$16 sps:$4 sm:$0xff]   ;;  %v1459_v56 = vld [vmem:[%s1634_s30 + $0xc] ss:$16 sps:$4 sm:$0xff]   ;;  %v1434_v57 = vld [vmem:[%s1617_s8 + $0xc0] ss:$8 sps:$4 sm:$0xff]  }
  0x41   : > { %v1430_v54 = vld [vmem:[%s1617_s8 + $0xc4] ss:$8 sps:$4 sm:$0xff]   ;;  %792 = vmatprep.mubr.bf16.mxu1 %v1456_v52  ;;  %835 = vmatprep.mubr.bf16.mxu0 %v1459_v56  ;;  %v1435_v58 = vld [vmem:[%s1617_s8 + $0x1c0] ss:$8 sps:$4 sm:$0xff]   ;;  %v1436_v59 = vld [vmem:[%s1617_s8 + $0xd4] ss:$8 sps:$4 sm:$0xff]  }
  0x42   : > { %769 = vmatpush1.bf16.msra.mxu1 %v1386_v23  ;;  %v1432_v55 = vld [vmem:[%s1617_s8 + $0x1c4] ss:$8 sps:$4 sm:$0xff]   ;;  %v1438_v60 = vld [vmem:[%s1617_s8 + $0x1d4] ss:$8 sps:$4 sm:$0xff]   ;;  %v1440_v61 = vld [vmem:[%s1617_s8 + $0xd0] ss:$8 sps:$4 sm:$0xff]  }
  0x43   : > { %812 = vmatpush1.bf16.msra.mxu0 %v1387_v24  ;;  %770 = vmatprep.subr.bf16.mxu1 %v1388_v25  ;;  %v1441_v62 = vld [vmem:[%s1617_s8 + $0x1d0] ss:$8 sps:$4 sm:$0xff]   ;;  %v1442_v63 = vld [vmem:[%s1617_s8 + $0xe4] ss:$8 sps:$4 sm:$0xff]   ;;  %v1446_v1 = vld [vmem:[%s1617_s8 + $0xe0] ss:$8 sps:$4 sm:$0xff]  }
  0x44   : > { %813 = vmatprep.subr.bf16.mxu0 %v1390_v26  ;;  %v1444_v0 = vld [vmem:[%s1617_s8 + $0x1e4] ss:$8 sps:$4 sm:$0xff]   ;;  %v1447_v2 = vld [vmem:[%s1617_s8 + $0x1e0] ss:$8 sps:$4 sm:$0xff]   ;;  %v1448_v3 = vld [vmem:[%s1617_s8 + $0xf4] ss:$8 sps:$4 sm:$0xff]  }
  0x45   : > { %v1450_v4 = vld [vmem:[%s1617_s8 + $0x1f4] ss:$8 sps:$4 sm:$0xff]   ;;  %v1452_v5 = vld [vmem:[%s1617_s8 + $0xf0] ss:$8 sps:$4 sm:$0xff]   ;;  %v348_v10 = vld [vmem:[#allocation2] sm:$0xff]  ;;  %p1291_p13 = scmp.ne.s32.totalorder %s1498_s20, 3 }
  0x46   : > { %771 = vmatpush1.bf16.msra.mxu1 %v1392_v27  ;;  %v1453_v6 = vld [vmem:[%s1617_s8 + $0x1f0] ss:$8 sps:$4 sm:$0xff]   ;;  %v349_v14 = vld [vmem:[#allocation2 + $0x8] sm:$0xff] }
  0x47   : > { %814 = vmatpush1.bf16.msra.mxu0 %v1393_v28  ;;  %772 = vmatprep.subr.bf16.mxu1 %v1394_v29  ;;  %v1454_v7 = vld [vmem:[%s1634_s30] ss:$16 sps:$4 sm:$0xff]   ;;  %v1457_v8 = vld [vmem:[%s1634_s30 + $0x8] ss:$16 sps:$4 sm:$0xff]   ;;  %v864_v29 = vlaneseq (!%p1291_p13) }
  0x48   : > { %815 = vmatprep.subr.bf16.mxu0 %v1396_v30  ;;  %v350_v18 = vld [vmem:[#allocation2 + $0x10] sm:$0xff]  ;;  %v351_v23 = vld [vmem:[#allocation2 + $0x18] sm:$0xff] }
  0x49   : > { %v865_v30 = vshrl.u32 (!%p1291_p13), %v864_v29, 7  ;;  %vm955_vm0 = vcmp.lt.s32.totalorder (!%p1291_p13), %v864_v29, 256 }
  0x4a   : > { %773 = vmatpush1.bf16.msra.mxu1 %v1398_v31  ;;  %v862_v31 = vld [vmem:[%s1738_s2] sm:$0x3] (!%p1291_p13) }
  0x4b   : > { %816 = vmatpush1.bf16.msra.mxu0 %v1399_v32  ;;  %774 = vmatprep.subr.bf16.mxu1 %v1400_v33  ;;  %v866_v33 = vsub.s32 (!%p1291_p13), 0, %v865_v30 }
  0x4c   : > { %817 = vmatprep.subr.bf16.mxu0 %v1402_v34  ;;  %v870_v34 = vsub.s32 (!%p1291_p13), 1, %v865_v30 }
  0x4e   : > { %775 = vmatpush1.bf16.msra.mxu1 %v1404_v35 }
  0x4f   : > { %818 = vmatpush1.bf16.msra.mxu0 %v1405_v36  ;;  %776 = vmatprep.subr.bf16.mxu1 %v1406_v37 }
  0x50   : > { %819 = vmatprep.subr.bf16.mxu0 %v1408_v38  ;;  %v867_v38 = vrot.slane (!%p1291_p13), %v862_v31, %v866_v33 }
  0x52   : > { %777 = vmatpush1.bf16.msra.mxu1 %v1410_v39  ;;  %v871_v39 = vrot.slane (!%p1291_p13), %v862_v31, %v870_v34 }
  0x53   : > { %820 = vmatpush1.bf16.msra.mxu0 %v1411_v40  ;;  %778 = vmatprep.subr.bf16.mxu1 %v1412_v41 }
  0x54   : > { %821 = vmatprep.subr.bf16.mxu0 %v1414_v42 }
  0x56   : > { %779 = vmatpush1.bf16.msra.mxu1 %v1416_v43 }
  0x57   : > { %822 = vmatpush1.bf16.msra.mxu0 %v1417_v44  ;;  %780 = vmatprep.subr.bf16.mxu1 %v1418_v45 }
  0x58   : > { %823 = vmatprep.subr.bf16.mxu0 %v1420_v46 }
  0x5a   : > { %781 = vmatpush1.bf16.msra.mxu1 %v1422_v47 }
  0x5b   : > { %824 = vmatpush1.bf16.msra.mxu0 %v1423_v48  ;;  %782 = vmatprep.subr.bf16.mxu1 %v1424_v49 }
  0x5c   : > { %825 = vmatprep.subr.bf16.mxu0 %v1426_v50 }
  0x5e   : > { %783 = vmatpush1.bf16.msra.mxu1 %v1428_v51 }
  0x5f   : > { %826 = vmatpush1.bf16.msra.mxu0 %v1429_v53  ;;  %784 = vmatprep.subr.bf16.mxu1 %v1430_v54 }
  0x60   : > { %827 = vmatprep.subr.bf16.mxu0 %v1432_v55 }
  0x62   : > { %785 = vmatpush1.bf16.msra.mxu1 %v1434_v57 }
  0x63   : > { %828 = vmatpush1.bf16.msra.mxu0 %v1435_v58  ;;  %786 = vmatprep.subr.bf16.mxu1 %v1436_v59  ;;  %v1517_v58 = vmov (!%p1291_p13), 1966171168  }
  0x64   : > { %829 = vmatprep.subr.bf16.mxu0 %v1438_v60  ;;  %v939_v59 = vunpack.c.l.s4 (!%p1291_p13), %v1517_v58 }
  0x66   : > { %787 = vmatpush1.bf16.msra.mxu1 %v1440_v61 }
  0x67   : > { %830 = vmatpush1.bf16.msra.mxu0 %v1441_v62  ;;  %788 = vmatprep.subr.bf16.mxu1 %v1442_v63 }
  0x68   : > { %831 = vmatprep.subr.bf16.mxu0 %v1444_v0 }
  0x6a   : > { %789 = vmatpush1.bf16.msra.mxu1 %v1446_v1 }
  0x6b   : > { %832 = vmatpush1.bf16.msra.mxu0 %v1447_v2  ;;  %790 = vmatprep.subr.bf16.mxu1 %v1448_v3  ;;  %v940_v3 = vunpack.c.0.s8 (!%p1291_p13), %v939_v59 }
  0x6c   : > { %833 = vmatprep.subr.bf16.mxu0 %v1450_v4 }
  0x6e   : > { %791 = vmatpush1.bf16.msra.mxu1 %v1452_v5 }
  0x6f   : > { %834 = vmatpush1.bf16.msra.mxu0 %v1453_v6 }
  0x71   : > { %793 = vmatmul.mubr.bf16.vlgmr.msra.gmra.mrb[0].mxu1 %v1454_v7 }
  0x72   : > { %836 = vmatmul.mubr.bf16.vlgmr.msra.gmra.mrb[0].mxu0 %v1457_v8 }
 0x144   : > { %v794_v9 = vpop.f32.mrb[0].mxu1 }
 0x145   : > { %v837_v11 = vpop.f32.mrb[0].mxu0  ;;  %v796_v13 = vpop.f32.mrb[1].mxu1 }
 0x146   : > { %v838_v12 = vadd.f32 %v837_v11, %v794_v9  ;;  %v839_v15 = vpop.f32.mrb[1].mxu0  ;;  %v798_v17 = vpop.f32.mrb[2].mxu1 }
 0x147   : > { %v840_v16 = vadd.f32 %v839_v15, %v796_v13  ;;  %v841_v19 = vpop.f32.mrb[2].mxu0  ;;  %v800_v22 = vpop.f32.mrb[3].mxu1  ;;  %857 = sbr.rel (%p1291_p13) target bundleno = 366 (0x16e), region = 63 }
 0x148   : > { %v846_v20 = vadd.f32 %v838_v12, %v348_v10  ;;  %v842_v21 = vadd.f32 %v841_v19, %v798_v17  ;;  %v843_v24 = vpop.f32.mrb[3].mxu0  ;;  %v943_v12 = vsub.s32 (!%p1291_p13), %v940_v3, %v865_v30 }
 0x149   : > { %v847_v25 = vadd.f32 %v840_v16, %v349_v14  ;;  %v844_v26 = vadd.f32 %v843_v24, %v800_v22 }
 0x14a   : > { %850 = vst [vmem:[#allocation2] sm:$0xff] %v846_v20  ;;  %v848_v27 = vadd.f32 %v842_v21, %v350_v18 }
 0x14b   : > { %851 = vst [vmem:[#allocation2 + $0x8] sm:$0xff] %v847_v25  ;;  %v849_v28 = vadd.f32 %v844_v26, %v351_v23 }
 0x14c   : > { %852 = vst [vmem:[#allocation2 + $0x10] sm:$0xff] %v848_v27 }
 0x14d   : > { %853 = vst [vmem:[#allocation2 + $0x18] sm:$0xff] %v849_v28 }
 0x151   : > { %v858_v32 = vld [vmem:[#allocation2] sm:$0xff] }
 0x152   : > { %v859_v35 = vld [vmem:[#allocation2 + $0x8] sm:$0xff]  ;;  %v874_v40 = vadd.f32 %v867_v38, %v858_v32 }
 0x153   : > { %v860_v36 = vld [vmem:[#allocation2 + $0x10] sm:$0xff]  ;;  %v875_v41 = vadd.f32 %v871_v39, %v859_v35 }
 0x154   : > { %v861_v37 = vld [vmem:[#allocation2 + $0x18] sm:$0xff]  ;;  %v876_v42 = vadd.f32 %v867_v38, %v860_v36  ;;  %878 = vst [vmem:[%s1622_s12] sm:$0xff] %v874_v40  ;;  %v913_v44 = vmul.f32 %v874_v40, %v874_v40 }
 0x155   : > { %v877_v43 = vadd.f32 %v871_v39, %v861_v37  ;;  %879 = vst [vmem:[%s1622_s12 + $0x8] sm:$0xff] %v875_v41  ;;  %v914_v45 = vmul.f32 %v875_v41, %v875_v41 }
 0x156   : > { %880 = vst [vmem:[%s1622_s12 + $0x10] sm:$0xff] %v876_v42  ;;  %v899_v46 = vadd.f32 %v876_v42, %v874_v40  ;;  %v915_v47 = vmul.f32 %v876_v42, %v876_v42 }
 0x157   : > { %881 = vst [vmem:[%s1622_s12 + $0x18] sm:$0xff] %v877_v43  ;;  %v906_v48 = vadd.f32 %v877_v43, %v875_v41  ;;  %v916_v49 = vmul.f32 %v877_v43, %v877_v43 }
 0x158   : > { %v900_v50 = vrot.slane %v899_v46, 4  ;;  %v917_v51 = vadd.f32 %v915_v47, %v913_v44 }
 0x159   : > { %v907_v52 = vrot.slane %v906_v48, 4  ;;  %v924_v53 = vadd.f32 %v916_v49, %v914_v45 }
 0x15a   : > { %v901_v54 = vadd.f32 %v900_v50, %v899_v46  ;;  %v918_v55 = vrot.slane %v917_v51, 4 }
 0x15b   : > { %v908_v56 = vadd.f32 %v907_v52, %v906_v48  ;;  %v925_v57 = vrot.slane %v924_v53, 4 }
 0x15c   : > { %v902_v60 = vrot.slane %v901_v54, 2  ;;  %v919_v61 = vadd.f32 %v918_v55, %v917_v51 }
 0x15d   : > { %v909_v62 = vrot.slane %v908_v56, 2  ;;  %v926_v63 = vadd.f32 %v925_v57, %v924_v53 }
 0x15e   : > { %v903_v0 = vadd.f32 %v902_v60, %v901_v54  ;;  %v920_v1 = vrot.slane %v919_v61, 2 }
 0x15f   : > { %v910_v2 = vadd.f32 %v909_v62, %v908_v56  ;;  %v927_v4 = vrot.slane %v926_v63, 2 }
 0x160   : > { %v904_v5 = vrot.slane %v903_v0, 1  ;;  %v921_v6 = vadd.f32 %v920_v1, %v919_v61 }
 0x161   : > { %v911_v7 = vrot.slane %v910_v2, 1  ;;  %v928_v8 = vadd.f32 %v927_v4, %v926_v63 }
 0x162   : > { %v905_v9 = vadd.f32 %v904_v5, %v903_v0  ;;  %v922_v10 = vrot.slane %v921_v6, 1 }
 0x163   : > { %v912_v11 = vadd.f32 %v911_v7, %v910_v2  ;;  %v929_v13 = vrot.slane %v928_v8, 1 }
 0x164   : > { %v923_v14 = vadd.f32 %v922_v10, %v921_v6 }
 0x165   : > { %v937_v15 = vcombine.low %v905_v9, %v912_v11  ;;  %v930_v16 = vadd.f32 %v929_v13, %v928_v8 }
 0x167   : > { %v944_v17 = vrot.slane %v937_v15, %v943_v12  ;;  %v960_v18 = vcombine.low %v923_v14, %v930_v16 }
 0x169   : > { %v951_v19 = vrot.slane %v944_v17, %v943_v12  ;;  %v967_v20 = vrot.slane %v960_v18, %v943_v12 }
 0x16b   : > { %957 = vst.msk [vmem:[%s1627_s15] sm:$0x3] %vm955_vm0, %v951_v19  ;;  %v974_v21 = vrot.slane %v967_v20, %v943_v12 }
 0x16d   : > { %976 = vst.msk [vmem:[%s1632_s27] sm:$0x3] %vm955_vm0, %v974_v21 }
 0x16e PF: > { %s16_s24 = sadd.s32 1, %s1514_s24   ;;  %s1742_s18 = smov %s1494_s19 }
 0x16f   : > { %p13_p0 = scmp.ge.s32.totalorder %s16_s24, 10   ;;  %s1743_s19 = smov %s1599_s6 }
 0x170   : > { %s1744_s20 = smov %s1506_s22  ;;  %s1745_s21 = smov %s1510_s23 }
 0x171   : > { %s1746_s22 = smov %s1749_s25  ;;  %s1747_s23 = smov %s1753_s26 }
 0x172   :  { %15 = sbr.rel (!%p13_p0) target bundleno = 4 (0x4), region = 133 }

// kernel: discriminator_forward.12
= control target key start
LH: loop header
LB: loop body
LE: loop exit
PB: predicated region body
PF: predicated region fallthrough
CT: control target
= control target key end

     0   :  { %s527_s12 = smov 0   ;;  %s529_s13 = smov 0   ;;  %s571_s0 = inlined_call_operand.vmem [shape: f32[2,16,256], index: 0, kind: input, shape index: {}]   ;;  %s572_s1 = inlined_call_operand.vmem [shape: f32[2,1,256], index: 1, kind: input, shape index: {}]   ;;  %s573_s2 = inlined_call_operand.vmem [shape: f32[2,1,256], index: 2, kind: input, shape index: {}]   ;;  %s574_s3 = inlined_call_operand.vmem [shape: bf16[2,16,256], index: 3, kind: output, shape index: {}]  }
   0x1   :  { %s531_s14 = smov 0  }
   0x2 LB: > { %s25_s15 = sadd.s32 1, %s501_s13  ;;  %p442_p0 = scmp.ge.s32.totalorder %s505_s14, 1  ;;  %s505_s14 = sphi %s531_s14, %s13_s14   ;;  %s501_s13 = sphi %s529_s13, %s576_s13   ;;  %s497_s12 = sphi %s527_s12, %s575_s12  }
   0x3   : > { %p27_p1 = scmp.ge.s32.totalorder %s25_s15, 2  ;;  %p177_p2 = scmp.lt.s32.totalorder %s505_s14, 3 }
   0x5   : > { %s578_s15 = smov (%p27_p1, %s25_s15), 0  ;;  %p178_p3 = pnand %p442_p0, %p177_p2 }
   0x6   : > { %p220_p4 = scmp.lt.s32.totalorder (!%p178_p3), %s497_s12, 1  ;;  %v261_v5 = vlaneseq (!%p178_p3) }
   0x7   : > { %181 = sbr.rel (%p178_p3) target bundleno = 50 (0x32), region = 32 }
   0x8   : > { %v262_v8 = vshrl.u32 (!%p178_p3), %v261_v5, 7 }
   0xa   : > { %v263_v10 = vsub.s32 (!%p178_p3), 0, %v262_v8  ;;  %v267_v11 = vsub.s32 (!%p178_p3), 1, %v262_v8 }
   0xe   : > { %s580_s12 = smov (!%p220_p4, %s497_s12), 1 }
   0xf   : > { %s445_s16 = sshll.u32 %s580_s12, 1  ;;  %s453_s23 = sshll.u32 %s580_s12, 5 }
  0x10   : > { %s233_s19 = scalar_lea.vmem %s572_s1, %s445_s16  ;;  %s237_s22 = scalar_lea.vmem %s573_s2, %s445_s16 }
  0x11   : > { %v253_v0 = vld [vmem:[%s233_s19] sm:$0x3]  ;;  %s228_s26 = scalar_lea.vmem %s571_s0, %s453_s23  ;;  %s454_s27 = sshll.u32 %s580_s12, 4 }
  0x12   : > { %v254_v1 = vmul.f32 0.0625, %v253_v0  ;;  %v255_v2 = vld [vmem:[%s237_s22] sm:$0x3]  ;;  %v250_v15 = vld [vmem:[%s228_s26 + $0x8] sm:$0xff]  ;;  %v251_v16 = vld [vmem:[%s228_s26 + $0x10] sm:$0xff]  ;;  %s247_s30 = scalar_lea.vmem %s574_s3, %s454_s27 }
  0x13   : > { %v256_v3 = vmul.f32 0.0625, %v255_v2  ;;  %v249_v12 = vld [vmem:[%s228_s26] sm:$0xff]  ;;  %v252_v17 = vld [vmem:[%s228_s26 + $0x18] sm:$0xff] }
  0x14   : > { %v257_v4 = vmul.f32 %v254_v1, %v254_v1  ;;  %v264_v13 = vrot.slane %v254_v1, %v263_v10  ;;  %v268_v14 = vrot.slane %v254_v1, %v267_v11 }
  0x16   : > { %v258_v6 = vsub.f32 %v256_v3, %v257_v4  ;;  %v271_v18 = vsub.f32 %v249_v12, %v264_v13  ;;  %v272_v19 = vsub.f32 %v250_v15, %v268_v14  ;;  %v273_v20 = vsub.f32 %v251_v16, %v264_v13 }
  0x17   : > { %v274_v21 = vsub.f32 %v252_v17, %v268_v14 }
  0x18   : > { %v259_v7 = vmax.f32 %v258_v6, 0.0 }
  0x1a   : > { %v275_v9 = vadd.f32 1e-05, %v259_v7 }
  0x1c   : > { %481 = vrsqrt.f32 %v275_v9 }
  0x26   : > { %v482_v22 = vpop.eup %481 }
  0x27   : > { %v281_v23 = vrot.slane %v482_v22, %v263_v10  ;;  %v285_v24 = vrot.slane %v482_v22, %v267_v11 }
  0x29   : > { %v288_v25 = vmul.f32 %v281_v23, %v271_v18  ;;  %v289_v26 = vmul.f32 %v285_v24, %v272_v19  ;;  %v290_v27 = vmul.f32 %v281_v23, %v273_v20  ;;  %v291_v28 = vmul.f32 %v285_v24, %v274_v21 }
  0x2b   : > { %vm292_vm0 = vcmp.gt.f32.partialorder %v288_v25, 0.0  ;;  %vm293_vm1 = vcmp.gt.f32.partialorder %v289_v26, 0.0  ;;  %v296_v29 = vmul.f32 0.2, %v288_v25  ;;  %v297_v30 = vmul.f32 0.2, %v289_v26 }
  0x2c   : > { %vm294_vm2 = vcmp.gt.f32.partialorder %v290_v27, 0.0  ;;  %vm295_vm3 = vcmp.gt.f32.partialorder %v291_v28, 0.0  ;;  %v298_v31 = vmul.f32 0.2, %v290_v27  ;;  %v299_v32 = vmul.f32 0.2, %v291_v28 }
  0x2d   : > { %v300_v33 = vsel %vm292_vm0, %v288_v25, %v296_v29  ;;  %v301_v34 = vsel %vm293_vm1, %v289_v26, %v297_v30 }
  0x2e   : > { %v455_v35 = vpack.c.bf16 %v301_v34, %v300_v33  ;;  %v302_v36 = vsel %vm294_vm2, %v290_v27, %v298_v31  ;;  %v303_v37 = vsel %vm295_vm3, %v291_v28, %v299_v32 }
  0x2f   : > { %v456_v38 = vpack.c.bf16 %v303_v37, %v302_v36 }
  0x30   : > { %316 = vst [vmem:[%s247_s30] sm:$0xff] %v455_v35 }
  0x31   : > { %317 = vst [vmem:[%s247_s30 + $0x8] sm:$0xff] %v456_v38 }
  0x32 PF: > { %s13_s14 = sadd.s32 1, %s505_s14   ;;  %s575_s12 = smov %s501_s13 }
  0x33   : > { %p10_p5 = scmp.ge.s32.totalorder %s13_s14, 4   ;;  %s576_s13 = smov %s578_s15 }
  0x35   :  { %12 = sbr.rel (!%p10_p5) target bundleno = 2 (0x2), region = 68 }

// kernel: discriminator_forward.14
= control target key start
LH: loop header
LB: loop body
LE: loop exit
PB: predicated region body
PF: predicated region fallthrough
CT: control target
= control target key end

     0   :  { %s600_s12 = smov 0   ;;  %s602_s13 = smov 0   ;;  %s661_s0 = inlined_call_operand.vmem [shape: f32[2,9,512], index: 0, kind: input, shape index: {}]   ;;  %s662_s1 = inlined_call_operand.vmem [shape: f32[2,1,512], index: 1, kind: input, shape index: {}]   ;;  %s663_s2 = inlined_call_operand.vmem [shape: f32[2,1,512], index: 2, kind: input, shape index: {}]   ;;  %s664_s3 = inlined_call_operand.vmem [shape: bf16[2,9,512], index: 3, kind: output, shape index: {}]  }
   0x1   :  { %s604_s14 = smov 0  }
   0x2 LB: > { %s25_s15 = sadd.s32 1, %s574_s13  ;;  %p511_p0 = scmp.ge.s32.totalorder %s578_s14, 1  ;;  %s578_s14 = sphi %s604_s14, %s13_s14   ;;  %s574_s13 = sphi %s602_s13, %s670_s13   ;;  %s570_s12 = sphi %s600_s12, %s669_s12  }
   0x3   : > { %p27_p1 = scmp.ge.s32.totalorder %s25_s15, 2  ;;  %p177_p2 = scmp.lt.s32.totalorder %s578_s14, 3 }
   0x5   : > { %s672_s15 = smov (%p27_p1, %s25_s15), 0  ;;  %p178_p3 = pnand %p511_p0, %p177_p2 }
   0x6   : > { %p220_p4 = scmp.lt.s32.totalorder (!%p178_p3), %s570_s12, 1  ;;  %v265_v5 = vlaneseq (!%p178_p3)  ;;  %vm374_vm0 = vcmask (!%p178_p3), 1040384   ;;  %vm375_vm1 = vsmask.f32 (!%p178_p3), 256  ;;  %vm377_vm2 = vcmask (!%p178_p3), 1044484  }
   0x7   : > { %181 = sbr.rel (%p178_p3) target bundleno = 55 (0x37), region = 32  ;;  %vm378_vm3 = vsmask.f32 (!%p178_p3), 4352  ;;  %vm634_vm10 = vmand (!%p178_p3), %vm374_vm0, %vm375_vm1 }
   0x8   : > { %v266_v8 = vshrl.u32 (!%p178_p3), %v265_v5, 7  ;;  %vm643_vm11 = vmand (!%p178_p3), %vm377_vm2, %vm378_vm3 }
   0x9   : > { %vm380_vm14 = vmor (!%p178_p3), %vm643_vm11, %vm634_vm10 }
   0xa   : > { %v267_v10 = vsub.s32 (!%p178_p3), 0, %v266_v8  ;;  %v271_v11 = vsub.s32 (!%p178_p3), 1, %v266_v8  ;;  %v275_v12 = vsub.s32 (!%p178_p3), 2, %v266_v8  ;;  %v279_v13 = vsub.s32 (!%p178_p3), 3, %v266_v8 }
   0xe   : > { %s674_s12 = smov (!%p220_p4, %s570_s12), 1 }
   0xf   : > { %s514_s16 = sshll.u32 %s674_s12, 2  ;;  %s524_s23 = sshll.u32 %s674_s12, 6 }
  0x10   : > { %s233_s19 = scalar_lea.vmem %s662_s1, %s514_s16  ;;  %s237_s22 = scalar_lea.vmem %s663_s2, %s514_s16 }
  0x11   : > { %v257_v0 = vld [vmem:[%s233_s19] sm:$0xf]  ;;  %s228_s26 = scalar_lea.vmem %s661_s0, %s524_s23  ;;  %s525_s27 = sshll.u32 %s674_s12, 5 }
  0x12   : > { %v259_v1 = vld [vmem:[%s237_s22] sm:$0xf]  ;;  %v258_v2 = vmul.f32 0.11111111, %v257_v0  ;;  %v250_v15 = vld [vmem:[%s228_s26 + $0x8] sm:$0xff]  ;;  %v251_v20 = vld [vmem:[%s228_s26 + $0x10] sm:$0xff]  ;;  %s247_s30 = scalar_lea.vmem %s664_s3, %s525_s27 }
  0x13   : > { %v260_v3 = vmul.f32 0.11111111, %v259_v1  ;;  %v249_v14 = vld [vmem:[%s228_s26] sm:$0xff]  ;;  %v254_v19 = vld [vmem:[%s228_s26 + $0x28] sm:$0x1]  ;;  %v252_v23 = vld [vmem:[%s228_s26 + $0x18] sm:$0xff] }
  0x14   : > { %v261_v4 = vmul.f32 %v258_v2, %v258_v2  ;;  %v268_v16 = vrot.slane %v258_v2, %v267_v10  ;;  %v272_v17 = vrot.slane %v258_v2, %v271_v11  ;;  %v253_v18 = vld [vmem:[%s228_s26 + $0x20] sm:$0x1]  ;;  %v276_v21 = vrot.slane %v258_v2, %v275_v12  ;;  %v255_v24 = vld [vmem:[%s228_s26 + $0x30] sm:$0x1]  ;;  %v256_v25 = vld [vmem:[%s228_s26 + $0x38] sm:$0x1] }
  0x15   : > { %v280_v22 = vrot.slane %v258_v2, %v279_v13  ;;  %v381_v1 = vld [vmem:[%s247_s30 + $0x10] sm:$0x11]  ;;  %v384_v5 = vld [vmem:[%s247_s30 + $0x18] sm:$0x11] }
  0x16   : > { %v262_v6 = vsub.f32 %v260_v3, %v261_v4  ;;  %v285_v26 = vsub.f32 %v249_v14, %v268_v16  ;;  %v286_v27 = vsub.f32 %v250_v15, %v272_v17  ;;  %v289_v28 = vsub.f32 %v253_v18, %v268_v16 }
  0x17   : > { %v290_v29 = vsub.f32 %v254_v19, %v272_v17  ;;  %v287_v31 = vsub.f32 %v251_v20, %v276_v21  ;;  %v288_v32 = vsub.f32 %v252_v23, %v280_v22  ;;  %v291_v33 = vsub.f32 %v255_v24, %v276_v21 }
  0x18   : > { %v263_v7 = vmax.f32 %v262_v6, 0.0  ;;  %v292_v34 = vsub.f32 %v256_v25, %v280_v22 }
  0x1a   : > { %v293_v9 = vadd.f32 1e-05, %v263_v7 }
  0x1c   : > { %554 = vrsqrt.f32 %v293_v9 }
  0x26   : > { %v555_v30 = vpop.eup %554 }
  0x27   : > { %v299_v35 = vrot.slane %v555_v30, %v267_v10  ;;  %v303_v36 = vrot.slane %v555_v30, %v271_v11  ;;  %v307_v37 = vrot.slane %v555_v30, %v275_v12  ;;  %v311_v38 = vrot.slane %v555_v30, %v279_v13 }
  0x29   : > { %v316_v39 = vmul.f32 %v299_v35, %v285_v26  ;;  %v317_v40 = vmul.f32 %v303_v36, %v286_v27  ;;  %v320_v41 = vmul.f32 %v299_v35, %v289_v28  ;;  %v321_v42 = vmul.f32 %v303_v36, %v290_v29 }
  0x2a   : > { %v318_v43 = vmul.f32 %v307_v37, %v287_v31  ;;  %v319_v44 = vmul.f32 %v311_v38, %v288_v32  ;;  %v322_v45 = vmul.f32 %v307_v37, %v291_v33  ;;  %v323_v46 = vmul.f32 %v311_v38, %v292_v34 }
  0x2b   : > { %vm324_vm4 = vcmp.gt.f32.partialorder %v316_v39, 0.0  ;;  %vm325_vm5 = vcmp.gt.f32.partialorder %v317_v40, 0.0  ;;  %v332_v47 = vmul.f32 0.2, %v316_v39  ;;  %v333_v48 = vmul.f32 0.2, %v317_v40 }
  0x2c   : > { %vm326_vm6 = vcmp.gt.f32.partialorder %v318_v43, 0.0  ;;  %vm327_vm7 = vcmp.gt.f32.partialorder %v319_v44, 0.0  ;;  %v334_v49 = vmul.f32 0.2, %v318_v43  ;;  %v335_v50 = vmul.f32 0.2, %v319_v44 }
  0x2d   : > { %v340_v51 = vsel %vm324_vm4, %v316_v39, %v332_v47  ;;  %v341_v52 = vsel %vm325_vm5, %v317_v40, %v333_v48  ;;  %vm328_vm8 = vcmp.gt.f32.partialorder %v320_v41, 0.0  ;;  %vm329_vm9 = vcmp.gt.f32.partialorder %v321_v42, 0.0 }
  0x2e   : > { %v526_v54 = vpack.c.bf16 %v341_v52, %v340_v51  ;;  %v342_v55 = vsel %vm326_vm6, %v318_v43, %v334_v49  ;;  %v343_v56 = vsel %vm327_vm7, %v319_v44, %v335_v50  ;;  %v336_v57 = vmul.f32 0.2, %v320_v41 }
  0x2f   : > { %v527_v59 = vpack.c.bf16 %v343_v56, %v342_v55  ;;  %v337_v60 = vmul.f32 0.2, %v321_v42  ;;  %vm330_vm12 = vcmp.gt.f32.partialorder %v322_v45, 0.0  ;;  %vm331_vm13 = vcmp.gt.f32.partialorder %v323_v46, 0.0 }
  0x30   : > { %372 = vst [vmem:[%s247_s30] sm:$0xff] %v526_v54  ;;  %v344_v61 = vsel %vm328_vm8, %v320_v41, %v336_v57  ;;  %v338_v62 = vmul.f32 0.2, %v322_v45  ;;  %v339_v63 = vmul.f32 0.2, %v323_v46 }
  0x31   : > { %373 = vst [vmem:[%s247_s30 + $0x8] sm:$0xff] %v527_v59  ;;  %v345_v0 = vsel %vm329_vm9, %v321_v42, %v337_v60 }
  0x32   : > { %v528_v2 = vpack.c.bf16 %v345_v0, %v344_v61  ;;  %v346_v3 = vsel %vm330_vm12, %v322_v45, %v338_v62  ;;  %v347_v4 = vsel %vm331_vm13, %v323_v46, %v339_v63 }
  0x33   : > { %v529_v6 = vpack.c.bf16 %v347_v4, %v346_v3 }
  0x34   : > { %v382_v7 = vsel %vm380_vm14, %v528_v2, %v381_v1 }
  0x35   : > { %383 = vst [vmem:[%s247_s30 + $0x10] sm:$0x11] %v382_v7  ;;  %v385_v8 = vsel %vm380_vm14, %v529_v6, %v384_v5 }
  0x36   : > { %386 = vst [vmem:[%s247_s30 + $0x18] sm:$0x11] %v385_v8 }
  0x37 PF: > { %s13_s14 = sadd.s32 1, %s578_s14   ;;  %s669_s12 = smov %s574_s13 }
  0x38   : > { %p10_p5 = scmp.ge.s32.totalorder %s13_s14, 4   ;;  %s670_s13 = smov %s672_s15 }
  0x3a   :  { %12 = sbr.rel (!%p10_p5) target bundleno = 2 (0x2), region = 68 }

// kernel: discriminator_forward.13
= control target key start
LH: loop header
LB: loop body
LE: loop exit
PB: predicated region body
PF: predicated region fallthrough
CT: control target
= control target key end

     0   :  { %s2309_s18 = smov 0   ;;  %s2311_s19 = smov 0   ;;  %s2587_s0 = inlined_call_operand.vmem [shape: bf16[2,9,4096], index: 0, kind: input, shape index: {}]   ;;  %s2588_s1 = inlined_call_operand.vmem [shape: bf16[4096,512], index: 1, kind: input, shape index: {}]   ;;  %s2589_s2 = inlined_call_operand.vmem [shape: f32[1,512], index: 2, kind: input, shape index: {}]   ;;  %s2590_s3 = inlined_call_operand.vmem [shape: f32[2,9,512], index: 3, kind: output, shape index: {0}]   ;;  %s2591_s4 = inlined_call_operand.vmem [shape: f32[2,1,512], index: 4, kind: output, shape index: {1}]   ;;  %s2592_s5 = inlined_call_operand.vmem [shape: f32[2,1,512], index: 5, kind: output, shape index: {2}]  }
   0x1   :  { %s2313_s20 = smov 0   ;;  %s2315_s21 = smov 0  }
   0x2   :  { %s2317_s22 = smov 0   ;;  %s2319_s23 = smov 0  }
   0x3   :  { %s2321_s24 = smov 0  }
   0x4 LB: > { %s28_s25 = sadd.s32 1, %s2267_s22  ;;  %s35_s26 = sadd.s32 1, %s2271_s23  ;;  %s2275_s24 = sphi %s2321_s24, %s16_s24   ;;  %s2271_s23 = sphi %s2319_s23, %s2598_s23   ;;  %s2267_s22 = sphi %s2317_s22, %s2597_s22   ;;  %s2263_s21 = sphi %s2315_s21, %s2596_s21   ;;  %s2259_s20 = sphi %s2313_s20, %s2595_s20   ;;  %s2255_s19 = sphi %s2311_s19, %s2594_s19   ;;  %s2251_s18 = sphi %s2309_s18, %s2593_s18  }
   0x5   : > { %p29_p0 = scmp.ge.s32.totalorder %s28_s25, 8  ;;  %p53_p1 = scmp.ne.s32.totalorder %s2255_s19, %s2251_s18 }
   0x6   : > { %p54_p2 = scmp.eq.s32.totalorder %s2275_s24, 0  ;;  %s46_s30 = sadd.s32 1, %s2255_s19 }
   0x7   : > { %s2600_s25 = smov (%p29_p0, %s28_s25), 0  ;;  %s2602_s26 = smov (!%p29_p0, %s35_s26), %s2271_s23 }
   0x8   : > { %p55_p3 = por %p54_p2, %p53_p1  ;;  %p37_p4 = scmp.ge.s32.totalorder %s2602_s26, 2 }
   0x9   : > { %s42_s27 = ssub.s32 %s2267_s22, %s2600_s25  ;;  %p1805_p6 = scmp.ge.s32.totalorder %s2275_s24, 16 }
   0xa   : > { %s2604_s26 = smov (%p37_p4, %s2602_s26), 0 }
   0xb   : > { %s39_s28 = ssub.s32 %s2271_s23, %s2604_s26  ;;  %209 = sbr.rel (%p1805_p6) target bundleno = 27 (0x1b), region = 20 }
   0xc   : > { %s43_s29 = sor.u32 %s42_s27, %s39_s28 }
   0xd   : > { %p44_p5 = scmp.eq.s32.totalorder %s43_s29, 0 }
   0xf   : > { %s2360_s6 = scalar_select %p44_p5, %s2255_s19, %s46_s30  }
  0x12   : > { %212 = sbr.rel (!%p55_p3) target bundleno = 27 (0x1b), region = 24  ;;  %s214_s7 = sand.u32 (%p55_p3), 1, %s2255_s19  }
  0x13   : > { %s1807_s8 = sshll.u32 (%p55_p3), %s2267_s22, 2  ;;  %s1806_s9 = sshll.u32 (%p55_p3), %s214_s7, 5 }
  0x14   : > { %s1808_s10 = sshll.u32 (%p55_p3), %s2271_s23, 6  ;;  %s216_s16 = scalar_lea.vmem (%p55_p3), [#allocation3], %s1806_s9 }
  0x15   : > { %s222_s11 = sadd.s32 (%p55_p3), %s1808_s10, %s1807_s8 }
  0x16   : > { %s1809_s12 = sshll.u32 (%p55_p3), %s222_s11, 2 }
  0x17   : > { %s224_s15 = scalar_lea.vmem (%p55_p3), %s2587_s0, %s1809_s12 }
  0x18   : > { %v237_v0 = vld [vmem:[%s224_s15] sm:$0xff] (%p55_p3)  ;;  %v239_v1 = vld [vmem:[%s224_s15 + $0x8] sm:$0xff] (%p55_p3) }
  0x19   : > { %v241_v2 = vld [vmem:[%s224_s15 + $0x80] sm:$0xff]  ;;  %238 = vst [vmem:[%s216_s16] sm:$0xff] %v237_v0  ;;  %240 = vst [vmem:[%s216_s16 + $0x8] sm:$0xff] %v239_v1  ;;  %v243_v3 = vld [vmem:[%s224_s15 + $0x88] sm:$0xff] }
  0x1a   : > { %242 = vst [vmem:[%s216_s16 + $0x10] sm:$0xff] %v241_v2  ;;  %244 = vst [vmem:[%s216_s16 + $0x18] sm:$0xff] %v243_v3 }
  0x1b PF: > { %p1810_p7 = scmp.ge.s32.totalorder %s2275_s24, 1  ;;  %p259_p8 = scmp.lt.s32.totalorder %s2275_s24, 17 }
  0x1d   : > { %p260_p9 = pnand %p1810_p7, %p259_p8 }
  0x1e   : > { %s266_s17 = sand.u32 (!%p260_p9), 1, %s2251_s18   ;;  %s1812_s27 = sshll.u32 (!%p260_p9), %s2259_s20, 6 }
  0x1f   : > { %263 = sbr.rel (%p260_p9) target bundleno = 436 (0x1b4), region = 51  ;;  %s1811_s28 = sshll.u32 (!%p260_p9), %s266_s17, 5 }
  0x20   : > { %p315_p10 = scmp.lt.s32.totalorder (!%p260_p9), %s1812_s27, 511  ;;  %p322_p11 = scmp.lt.s32.totalorder (!%p260_p9), %s2263_s21, 1 }
  0x21   : > { %s2395_s30 = scalar_lea.vmem (!%p260_p9), [#allocation3], %s1811_s28  ;;  %p1819_p12 = scmp.ne.s32.totalorder (!%p260_p9), %s2259_s20, 0 }
  0x26   : > { %s2606_s27 = smov (!%p315_p10, %s1812_s27), 511  ;;  %s2608_s21 = smov (!%p322_p11, %s2263_s21), 1 }
  0x27   : > { %s1955_s29 = sshll.u32 %s2606_s27, 4  ;;  %s1956_s9 = sshll.u32 %s2608_s21, 6  ;;  %v2277_v4 = vmov (!%p1819_p12), 0.0  }
  0x28   : > { %s2378_s8 = scalar_lea.vmem %s2588_s1, %s1955_s29  ;;  %s2383_s12 = scalar_lea.vmem %s2590_s3, %s1956_s9  ;;  %344 = vst [vmem:[#allocation2] sm:$0xff] (!%p1819_p12), %v2277_v4  ;;  %345 = vst [vmem:[#allocation2 + $0x8] sm:$0xff] (!%p1819_p12), %v2277_v4 }
  0x29   : > { %s1817_s13 = sshll.u32 %s2608_s21, 2  ;;  %343 = sbr.rel (%p1819_p12) target bundleno = 48 (0x30), region = 59  ;;  %346 = vst [vmem:[#allocation2 + $0x10] sm:$0xff] (!%p1819_p12), %v2277_v4  ;;  %347 = vst [vmem:[#allocation2 + $0x18] sm:$0xff] (!%p1819_p12), %v2277_v4 }
  0x2a   : > { %s2388_s15 = scalar_lea.vmem %s2591_s4, %s1817_s13  ;;  %s2393_s27 = scalar_lea.vmem %s2592_s5, %s1817_s13  ;;  %348 = vst [vmem:[#allocation2 + $0x20] sm:$0x1] (!%p1819_p12), %v2277_v4  ;;  %349 = vst [vmem:[#allocation2 + $0x28] sm:$0x1] (!%p1819_p12), %v2277_v4 }
  0x2b   : > { %350 = vst [vmem:[#allocation2 + $0x30] sm:$0x1] (!%p1819_p12), %v2277_v4  ;;  %351 = vst [vmem:[#allocation2 + $0x38] sm:$0x1] (!%p1819_p12), %v2277_v4 }
  0x30 PF: > { %v2023_v5 = vld [vmem:[%s2378_s8 + $0x4] ss:$16 sps:$4 sm:$0xff]   ;;  %v2025_v6 = vld [vmem:[%s2378_s8 + $0xc] ss:$16 sps:$4 sm:$0xff]   ;;  %v2027_v7 = vld [vmem:[%s2378_s8] ss:$16 sps:$4 sm:$0xff]  }
  0x31   : > { %1152 = vmatprep.subr.bf16.mxu0 %v2023_v5  ;;  %v2028_v8 = vld [vmem:[%s2378_s8 + $0x8] ss:$16 sps:$4 sm:$0xff]   ;;  %1238 = vmatprep.subr.bf16.mxu1 %v2025_v6  ;;  %v2029_v9 = vld [vmem:[%s2378_s8 + $0x24] ss:$16 sps:$4 sm:$0xff]   ;;  %v2031_v10 = vld [vmem:[%s2378_s8 + $0x2c] ss:$16 sps:$4 sm:$0xff]  }
  0x32   : > { %1153 = vmatpush1.bf16.msra.mxu0 %v2027_v7  ;;  %1239 = vmatpush1.bf16.msra.mxu1 %v2028_v8  ;;  %v2033_v11 = vld [vmem:[%s2378_s8 + $0x20] ss:$16 sps:$4 sm:$0xff]   ;;  %v2034_v12 = vld [vmem:[%s2378_s8 + $0x28] ss:$16 sps:$4 sm:$0xff]   ;;  %v2035_v13 = vld [vmem:[%s2378_s8 + $0x44] ss:$16 sps:$4 sm:$0xff]  }
  0x33   : > { %1154 = vmatprep.subr.bf16.mxu0 %v2029_v9  ;;  %1240 = vmatprep.subr.bf16.mxu1 %v2031_v10  ;;  %v2037_v14 = vld [vmem:[%s2378_s8 + $0x4c] ss:$16 sps:$4 sm:$0xff]   ;;  %v2039_v15 = vld [vmem:[%s2378_s8 + $0x40] ss:$16 sps:$4 sm:$0xff]   ;;  %v2040_v16 = vld [vmem:[%s2378_s8 + $0x48] ss:$16 sps:$4 sm:$0xff]  }
  0x34   : > { %v2041_v17 = vld [vmem:[%s2378_s8 + $0x64] ss:$16 sps:$4 sm:$0xff]   ;;  %v2043_v18 = vld [vmem:[%s2378_s8 + $0x6c] ss:$16 sps:$4 sm:$0xff]   ;;  %v2045_v19 = vld [vmem:[%s2378_s8 + $0x60] ss:$16 sps:$4 sm:$0xff]  }
  0x35   : > { %v2046_v20 = vld [vmem:[%s2378_s8 + $0x68] ss:$16 sps:$4 sm:$0xff]   ;;  %v2047_v21 = vld [vmem:[%s2378_s8 + $0x84] ss:$16 sps:$4 sm:$0xff]   ;;  %v2049_v22 = vld [vmem:[%s2378_s8 + $0x8c] ss:$16 sps:$4 sm:$0xff]  }
  0x36   : > { %1155 = vmatpush1.bf16.msra.mxu0 %v2033_v11  ;;  %1241 = vmatpush1.bf16.msra.mxu1 %v2034_v12  ;;  %v2051_v23 = vld [vmem:[%s2378_s8 + $0x80] ss:$16 sps:$4 sm:$0xff]   ;;  %v2052_v24 = vld [vmem:[%s2378_s8 + $0x88] ss:$16 sps:$4 sm:$0xff]   ;;  %v2053_v25 = vld [vmem:[%s2378_s8 + $0xa4] ss:$16 sps:$4 sm:$0xff]  }
  0x37   : > { %1156 = vmatprep.subr.bf16.mxu0 %v2035_v13  ;;  %1242 = vmatprep.subr.bf16.mxu1 %v2037_v14  ;;  %v2055_v26 = vld [vmem:[%s2378_s8 + $0xac] ss:$16 sps:$4 sm:$0xff]   ;;  %v2057_v27 = vld [vmem:[%s2378_s8 + $0xa0] ss:$16 sps:$4 sm:$0xff]   ;;  %v2058_v28 = vld [vmem:[%s2378_s8 + $0xa8] ss:$16 sps:$4 sm:$0xff]  }
  0x38   : > { %v2059_v29 = vld [vmem:[%s2378_s8 + $0xc4] ss:$16 sps:$4 sm:$0xff]   ;;  %v2061_v30 = vld [vmem:[%s2378_s8 + $0xcc] ss:$16 sps:$4 sm:$0xff]   ;;  %v2063_v31 = vld [vmem:[%s2378_s8 + $0xc0] ss:$16 sps:$4 sm:$0xff]  }
  0x39   : > { %v2064_v32 = vld [vmem:[%s2378_s8 + $0xc8] ss:$16 sps:$4 sm:$0xff]   ;;  %v2065_v33 = vld [vmem:[%s2378_s8 + $0xe4] ss:$16 sps:$4 sm:$0xff]   ;;  %v2067_v34 = vld [vmem:[%s2378_s8 + $0xec] ss:$16 sps:$4 sm:$0xff]  }
  0x3a   : > { %1157 = vmatpush1.bf16.msra.mxu0 %v2039_v15  ;;  %1243 = vmatpush1.bf16.msra.mxu1 %v2040_v16  ;;  %v2069_v35 = vld [vmem:[%s2378_s8 + $0xe0] ss:$16 sps:$4 sm:$0xff]   ;;  %v2070_v36 = vld [vmem:[%s2378_s8 + $0xe8] ss:$16 sps:$4 sm:$0xff]   ;;  %v2071_v37 = vld [vmem:[%s2378_s8 + $0x104] ss:$16 sps:$4 sm:$0xff]  }
  0x3b   : > { %1158 = vmatprep.subr.bf16.mxu0 %v2041_v17  ;;  %1244 = vmatprep.subr.bf16.mxu1 %v2043_v18  ;;  %v2073_v38 = vld [vmem:[%s2378_s8 + $0x10c] ss:$16 sps:$4 sm:$0xff]   ;;  %v2075_v39 = vld [vmem:[%s2378_s8 + $0x100] ss:$16 sps:$4 sm:$0xff]   ;;  %v2076_v40 = vld [vmem:[%s2378_s8 + $0x108] ss:$16 sps:$4 sm:$0xff]  }
  0x3c   : > { %v2077_v41 = vld [vmem:[%s2378_s8 + $0x124] ss:$16 sps:$4 sm:$0xff]   ;;  %v2079_v42 = vld [vmem:[%s2378_s8 + $0x12c] ss:$16 sps:$4 sm:$0xff]   ;;  %v2081_v43 = vld [vmem:[%s2378_s8 + $0x120] ss:$16 sps:$4 sm:$0xff]  }
  0x3d   : > { %v2082_v44 = vld [vmem:[%s2378_s8 + $0x128] ss:$16 sps:$4 sm:$0xff]   ;;  %v2083_v45 = vld [vmem:[%s2378_s8 + $0x144] ss:$16 sps:$4 sm:$0xff]   ;;  %v2085_v46 = vld [vmem:[%s2378_s8 + $0x14c] ss:$16 sps:$4 sm:$0xff]  }
  0x3e   : > { %1159 = vmatpush1.bf16.msra.mxu0 %v2045_v19  ;;  %1245 = vmatpush1.bf16.msra.mxu1 %v2046_v20  ;;  %v2087_v47 = vld [vmem:[%s2378_s8 + $0x140] ss:$16 sps:$4 sm:$0xff]   ;;  %v2088_v48 = vld [vmem:[%s2378_s8 + $0x148] ss:$16 sps:$4 sm:$0xff]   ;;  %v2089_v49 = vld [vmem:[%s2378_s8 + $0x164] ss:$16 sps:$4 sm:$0xff]  }
  0x3f   : > { %1160 = vmatprep.subr.bf16.mxu0 %v2047_v21  ;;  %1246 = vmatprep.subr.bf16.mxu1 %v2049_v22  ;;  %v2091_v50 = vld [vmem:[%s2378_s8 + $0x16c] ss:$16 sps:$4 sm:$0xff]   ;;  %v2093_v51 = vld [vmem:[%s2378_s8 + $0x160] ss:$16 sps:$4 sm:$0xff]   ;;  %v2094_v52 = vld [vmem:[%s2378_s8 + $0x168] ss:$16 sps:$4 sm:$0xff]  }
  0x40   : > { %v2095_v53 = vld [vmem:[%s2378_s8 + $0x184] ss:$16 sps:$4 sm:$0xff]   ;;  %v2097_v55 = vld [vmem:[%s2378_s8 + $0x18c] ss:$16 sps:$4 sm:$0xff]   ;;  %v2099_v56 = vld [vmem:[%s2378_s8 + $0x180] ss:$16 sps:$4 sm:$0xff]  }
  0x41   : > { %v2121_v54 = vld [vmem:[%s2395_s30 + $0x4] ss:$16 sps:$4 sm:$0x1f]   ;;  %v2100_v57 = vld [vmem:[%s2378_s8 + $0x188] ss:$16 sps:$4 sm:$0xff]   ;;  %p1952_p13 = scmp.ne.s32.totalorder %s2259_s20, 7 }
  0x42   : > { %1161 = vmatpush1.bf16.msra.mxu0 %v2051_v23  ;;  %1247 = vmatpush1.bf16.msra.mxu1 %v2052_v24  ;;  %v2101_v58 = vld [vmem:[%s2378_s8 + $0x1a4] ss:$16 sps:$4 sm:$0xff]   ;;  %v2103_v59 = vld [vmem:[%s2378_s8 + $0x1ac] ss:$16 sps:$4 sm:$0xff]   ;;  %v2105_v60 = vld [vmem:[%s2378_s8 + $0x1a0] ss:$16 sps:$4 sm:$0xff]  }
  0x43   : > { %1162 = vmatprep.subr.bf16.mxu0 %v2053_v25  ;;  %1248 = vmatprep.subr.bf16.mxu1 %v2055_v26  ;;  %v2106_v61 = vld [vmem:[%s2378_s8 + $0x1a8] ss:$16 sps:$4 sm:$0xff]   ;;  %v2107_v62 = vld [vmem:[%s2378_s8 + $0x1c4] ss:$16 sps:$4 sm:$0xff]   ;;  %v2109_v63 = vld [vmem:[%s2378_s8 + $0x1cc] ss:$16 sps:$4 sm:$0xff]  }
  0x44   : > { %1184 = vmatprep.mubr.bf16.mxu0 %v2121_v54  ;;  %1270 = vmatprep.mubr.bf16.mxu1 %v2121_v54  ;;  %v2111_v0 = vld [vmem:[%s2378_s8 + $0x1c0] ss:$16 sps:$4 sm:$0xff]   ;;  %v2112_v1 = vld [vmem:[%s2378_s8 + $0x1c8] ss:$16 sps:$4 sm:$0xff]   ;;  %v2113_v2 = vld [vmem:[%s2378_s8 + $0x1e4] ss:$16 sps:$4 sm:$0xff]  }
  0x45   : > { %v2115_v3 = vld [vmem:[%s2378_s8 + $0x1ec] ss:$16 sps:$4 sm:$0xff]   ;;  %v2117_v4 = vld [vmem:[%s2378_s8 + $0x1e0] ss:$16 sps:$4 sm:$0xff]   ;;  %v2118_v5 = vld [vmem:[%s2378_s8 + $0x1e8] ss:$16 sps:$4 sm:$0xff]  }
  0x46   : > { %1163 = vmatpush1.bf16.msra.mxu0 %v2057_v27  ;;  %1249 = vmatpush1.bf16.msra.mxu1 %v2058_v28  ;;  %v2124_v6 = vld [vmem:[%s2378_s8 + $0x204] ss:$16 sps:$4 sm:$0xff]   ;;  %v2127_v7 = vld [vmem:[%s2378_s8 + $0x20c] ss:$16 sps:$4 sm:$0xff]   ;;  %v2122_v9 = vld [vmem:[%s2378_s8 + $0x200] ss:$16 sps:$4 sm:$0xff]  }
  0x47   : > { %1164 = vmatprep.subr.bf16.mxu0 %v2059_v29  ;;  %1250 = vmatprep.subr.bf16.mxu1 %v2061_v30  ;;  %v2119_v8 = vld [vmem:[%s2395_s30] ss:$16 sps:$4 sm:$0x1f]   ;;  %v2125_v10 = vld [vmem:[%s2378_s8 + $0x208] ss:$16 sps:$4 sm:$0xff]   ;;  %vm1411_vm1 = vcmask (!%p1952_p13), 1040384  }
  0x48   : > { %v2130_v11 = vld [vmem:[%s2378_s8 + $0x224] ss:$16 sps:$4 sm:$0xff]   ;;  %v2133_v12 = vld [vmem:[%s2378_s8 + $0x22c] ss:$16 sps:$4 sm:$0xff]   ;;  %v2128_v13 = vld [vmem:[%s2378_s8 + $0x220] ss:$16 sps:$4 sm:$0xff]  }
  0x49   : > { %v2131_v14 = vld [vmem:[%s2378_s8 + $0x228] ss:$16 sps:$4 sm:$0xff]   ;;  %v2136_v15 = vld [vmem:[%s2378_s8 + $0x244] ss:$16 sps:$4 sm:$0xff]   ;;  %v2139_v16 = vld [vmem:[%s2378_s8 + $0x24c] ss:$16 sps:$4 sm:$0xff]  }
  0x4a   : > { %1165 = vmatpush1.bf16.msra.mxu0 %v2063_v31  ;;  %1251 = vmatpush1.bf16.msra.mxu1 %v2064_v32  ;;  %v2134_v17 = vld [vmem:[%s2378_s8 + $0x240] ss:$16 sps:$4 sm:$0xff]   ;;  %v2137_v18 = vld [vmem:[%s2378_s8 + $0x248] ss:$16 sps:$4 sm:$0xff]   ;;  %v2142_v19 = vld [vmem:[%s2378_s8 + $0x264] ss:$16 sps:$4 sm:$0xff]  }
  0x4b   : > { %1166 = vmatprep.subr.bf16.mxu0 %v2065_v33  ;;  %1252 = vmatprep.subr.bf16.mxu1 %v2067_v34  ;;  %v2145_v20 = vld [vmem:[%s2378_s8 + $0x26c] ss:$16 sps:$4 sm:$0xff]   ;;  %v2140_v21 = vld [vmem:[%s2378_s8 + $0x260] ss:$16 sps:$4 sm:$0xff]   ;;  %v2143_v22 = vld [vmem:[%s2378_s8 + $0x268] ss:$16 sps:$4 sm:$0xff]  }
  0x4c   : > { %v2148_v23 = vld [vmem:[%s2378_s8 + $0x284] ss:$16 sps:$4 sm:$0xff]   ;;  %v2151_v24 = vld [vmem:[%s2378_s8 + $0x28c] ss:$16 sps:$4 sm:$0xff]   ;;  %v2146_v25 = vld [vmem:[%s2378_s8 + $0x280] ss:$16 sps:$4 sm:$0xff]  }
  0x4d   : > { %v2149_v26 = vld [vmem:[%s2378_s8 + $0x288] ss:$16 sps:$4 sm:$0xff]   ;;  %v2154_v27 = vld [vmem:[%s2378_s8 + $0x2a4] ss:$16 sps:$4 sm:$0xff]   ;;  %v2157_v28 = vld [vmem:[%s2378_s8 + $0x2ac] ss:$16 sps:$4 sm:$0xff]  }
  0x4e   : > { %1167 = vmatpush1.bf16.msra.mxu0 %v2069_v35  ;;  %1253 = vmatpush1.bf16.msra.mxu1 %v2070_v36  ;;  %v2152_v29 = vld [vmem:[%s2378_s8 + $0x2a0] ss:$16 sps:$4 sm:$0xff]   ;;  %v2155_v30 = vld [vmem:[%s2378_s8 + $0x2a8] ss:$16 sps:$4 sm:$0xff]   ;;  %v2160_v31 = vld [vmem:[%s2378_s8 + $0x2c4] ss:$16 sps:$4 sm:$0xff]  }
  0x4f   : > { %1168 = vmatprep.subr.bf16.mxu0 %v2071_v37  ;;  %1254 = vmatprep.subr.bf16.mxu1 %v2073_v38  ;;  %v2163_v32 = vld [vmem:[%s2378_s8 + $0x2cc] ss:$16 sps:$4 sm:$0xff]   ;;  %v2158_v33 = vld [vmem:[%s2378_s8 + $0x2c0] ss:$16 sps:$4 sm:$0xff]   ;;  %v2161_v34 = vld [vmem:[%s2378_s8 + $0x2c8] ss:$16 sps:$4 sm:$0xff]  }
  0x50   : > { %v2220_v35 = vld [vmem:[%s2395_s30 + $0xc] ss:$16 sps:$4 sm:$0x1f]   ;;  %v2166_v36 = vld [vmem:[%s2378_s8 + $0x2e4] ss:$16 sps:$4 sm:$0xff]  }
  0x51   : > { %v2169_v37 = vld [vmem:[%s2378_s8 + $0x2ec] ss:$16 sps:$4 sm:$0xff]   ;;  %v2164_v38 = vld [vmem:[%s2378_s8 + $0x2e0] ss:$16 sps:$4 sm:$0xff]  }
  0x52   : > { %1169 = vmatpush1.bf16.msra.mxu0 %v2075_v39  ;;  %1255 = vmatpush1.bf16.msra.mxu1 %v2076_v40  ;;  %v2167_v39 = vld [vmem:[%s2378_s8 + $0x2e8] ss:$16 sps:$4 sm:$0xff]   ;;  %v2172_v40 = vld [vmem:[%s2378_s8 + $0x304] ss:$16 sps:$4 sm:$0xff]   ;;  %v2188_v54 = vld [vmem:[%s2378_s8 + $0x360] ss:$16 sps:$4 sm:$0xff]  }
  0x53   : > { %1170 = vmatprep.subr.bf16.mxu0 %v2077_v41  ;;  %1256 = vmatprep.subr.bf16.mxu1 %v2079_v42  ;;  %v2175_v41 = vld [vmem:[%s2378_s8 + $0x30c] ss:$16 sps:$4 sm:$0xff]   ;;  %v2170_v42 = vld [vmem:[%s2378_s8 + $0x300] ss:$16 sps:$4 sm:$0xff]  }
  0x56   : > { %1171 = vmatpush1.bf16.msra.mxu0 %v2081_v43  ;;  %1257 = vmatpush1.bf16.msra.mxu1 %v2082_v44  ;;  %v2173_v43 = vld [vmem:[%s2378_s8 + $0x308] ss:$16 sps:$4 sm:$0xff]   ;;  %v2178_v44 = vld [vmem:[%s2378_s8 + $0x324] ss:$16 sps:$4 sm:$0xff]  }
  0x57   : > { %1172 = vmatprep.subr.bf16.mxu0 %v2083_v45  ;;  %1258 = vmatprep.subr.bf16.mxu1 %v2085_v46  ;;  %v2181_v45 = vld [vmem:[%s2378_s8 + $0x32c] ss:$16 sps:$4 sm:$0xff]   ;;  %v2176_v46 = vld [vmem:[%s2378_s8 + $0x320] ss:$16 sps:$4 sm:$0xff]  }
  0x5a   : > { %1173 = vmatpush1.bf16.msra.mxu0 %v2087_v47  ;;  %1259 = vmatpush1.bf16.msra.mxu1 %v2088_v48  ;;  %v2179_v47 = vld [vmem:[%s2378_s8 + $0x328] ss:$16 sps:$4 sm:$0xff]   ;;  %v2184_v48 = vld [vmem:[%s2378_s8 + $0x344] ss:$16 sps:$4 sm:$0xff]  }
  0x5b   : > { %1174 = vmatprep.subr.bf16.mxu0 %v2089_v49  ;;  %1260 = vmatprep.subr.bf16.mxu1 %v2091_v50  ;;  %v2187_v49 = vld [vmem:[%s2378_s8 + $0x34c] ss:$16 sps:$4 sm:$0xff]   ;;  %v2182_v50 = vld [vmem:[%s2378_s8 + $0x340] ss:$16 sps:$4 sm:$0xff]  }
  0x5e   : > { %1175 = vmatpush1.bf16.msra.mxu0 %v2093_v51  ;;  %1261 = vmatpush1.bf16.msra.mxu1 %v2094_v52  ;;  %v2185_v51 = vld [vmem:[%s2378_s8 + $0x348] ss:$16 sps:$4 sm:$0xff]   ;;  %v2190_v52 = vld [vmem:[%s2378_s8 + $0x364] ss:$16 sps:$4 sm:$0xff]  }
  0x5f   : > { %1176 = vmatprep.subr.bf16.mxu0 %v2095_v53  ;;  %1262 = vmatprep.subr.bf16.mxu1 %v2097_v55  ;;  %v2193_v53 = vld [vmem:[%s2378_s8 + $0x36c] ss:$16 sps:$4 sm:$0xff]   ;;  %v2191_v55 = vld [vmem:[%s2378_s8 + $0x368] ss:$16 sps:$4 sm:$0xff]  }
  0x62   : > { %1177 = vmatpush1.bf16.msra.mxu0 %v2099_v56  ;;  %1263 = vmatpush1.bf16.msra.mxu1 %v2100_v57  ;;  %v2196_v56 = vld [vmem:[%s2378_s8 + $0x384] ss:$16 sps:$4 sm:$0xff]   ;;  %v2199_v57 = vld [vmem:[%s2378_s8 + $0x38c] ss:$16 sps:$4 sm:$0xff]  }
  0x63   : > { %1178 = vmatprep.subr.bf16.mxu0 %v2101_v58  ;;  %1264 = vmatprep.subr.bf16.mxu1 %v2103_v59  ;;  %v2194_v58 = vld [vmem:[%s2378_s8 + $0x380] ss:$16 sps:$4 sm:$0xff]   ;;  %v2197_v59 = vld [vmem:[%s2378_s8 + $0x388] ss:$16 sps:$4 sm:$0xff]  }
  0x66   : > { %1179 = vmatpush1.bf16.msra.mxu0 %v2105_v60  ;;  %1265 = vmatpush1.bf16.msra.mxu1 %v2106_v61  ;;  %v2202_v60 = vld [vmem:[%s2378_s8 + $0x3a4] ss:$16 sps:$4 sm:$0xff]   ;;  %v2205_v61 = vld [vmem:[%s2378_s8 + $0x3ac] ss:$16 sps:$4 sm:$0xff]  }
  0x67   : > { %1180 = vmatprep.subr.bf16.mxu0 %v2107_v62  ;;  %1266 = vmatprep.subr.bf16.mxu1 %v2109_v63  ;;  %v2200_v62 = vld [vmem:[%s2378_s8 + $0x3a0] ss:$16 sps:$4 sm:$0xff]   ;;  %v2203_v63 = vld [vmem:[%s2378_s8 + $0x3a8] ss:$16 sps:$4 sm:$0xff]  }
  0x6a   : > { %1181 = vmatpush1.bf16.msra.mxu0 %v2111_v0  ;;  %1267 = vmatpush1.bf16.msra.mxu1 %v2112_v1  ;;  %v2208_v0 = vld [vmem:[%s2378_s8 + $0x3c4] ss:$16 sps:$4 sm:$0xff]   ;;  %v2211_v1 = vld [vmem:[%s2378_s8 + $0x3cc] ss:$16 sps:$4 sm:$0xff]  }
  0x6b   : > { %1182 = vmatprep.subr.bf16.mxu0 %v2113_v2  ;;  %1268 = vmatprep.subr.bf16.mxu1 %v2115_v3  ;;  %v2206_v2 = vld [vmem:[%s2378_s8 + $0x3c0] ss:$16 sps:$4 sm:$0xff]   ;;  %v2209_v3 = vld [vmem:[%s2378_s8 + $0x3c8] ss:$16 sps:$4 sm:$0xff]  }
  0x6e   : > { %1183 = vmatpush1.bf16.msra.mxu0 %v2117_v4  ;;  %1269 = vmatpush1.bf16.msra.mxu1 %v2118_v5  ;;  %v2214_v4 = vld [vmem:[%s2378_s8 + $0x3e4] ss:$16 sps:$4 sm:$0xff]   ;;  %v2217_v5 = vld [vmem:[%s2378_s8 + $0x3ec] ss:$16 sps:$4 sm:$0xff]  }
  0x6f   : > { %1195 = vmatprep.subr.bf16.mxu0 %v2124_v6  ;;  %1281 = vmatprep.subr.bf16.mxu1 %v2127_v7  ;;  %v2212_v6 = vld [vmem:[%s2378_s8 + $0x3e0] ss:$16 sps:$4 sm:$0xff]   ;;  %v2215_v7 = vld [vmem:[%s2378_s8 + $0x3e8] ss:$16 sps:$4 sm:$0xff]  }
  0x71   : > { %1185 = vmatmul.mubr.bf16.vlgmr.msra.gmra.mrb[0].mxu0 %v2119_v8  ;;  %1271 = vmatmul.mubr.bf16.vlgmr.msra.gmra.mrb[0].mxu1 %v2119_v8  ;;  %v2218_v8 = vld [vmem:[%s2395_s30 + $0x8] ss:$16 sps:$4 sm:$0x1f]  }
  0x72   : > { %1196 = vmatpush1.bf16.msra.mxu0 %v2122_v9  ;;  %1282 = vmatpush1.bf16.msra.mxu1 %v2125_v10  ;;  %v352_v9 = vld [vmem:[#allocation2] sm:$0xff]  ;;  %v354_v10 = vld [vmem:[#allocation2 + $0x10] sm:$0xff] }
  0x73   : > { %1197 = vmatprep.subr.bf16.mxu0 %v2130_v11  ;;  %1283 = vmatprep.subr.bf16.mxu1 %v2133_v12  ;;  %v353_v11 = vld [vmem:[#allocation2 + $0x8] sm:$0xff]  ;;  %v355_v12 = vld [vmem:[#allocation2 + $0x18] sm:$0xff] }
  0x74   : > { %1227 = vmatprep.mubr.bf16.mxu0 %v2220_v35  ;;  %1313 = vmatprep.mubr.bf16.mxu1 %v2220_v35  ;;  %v2278_v35 = vmov (!%p1952_p13), 1966171168  }
  0x76   : > { %1198 = vmatpush1.bf16.msra.mxu0 %v2128_v13  ;;  %1284 = vmatpush1.bf16.msra.mxu1 %v2131_v14 }
  0x77   : > { %1199 = vmatprep.subr.bf16.mxu0 %v2136_v15  ;;  %1285 = vmatprep.subr.bf16.mxu1 %v2139_v16  ;;  %v356_v15 = vld [vmem:[#allocation2 + $0x20] sm:$0x1]  ;;  %v358_v16 = vld [vmem:[#allocation2 + $0x30] sm:$0x1] }
  0x7a   : > { %1200 = vmatpush1.bf16.msra.mxu0 %v2134_v17  ;;  %1286 = vmatpush1.bf16.msra.mxu1 %v2137_v18 }
  0x7b   : > { %1201 = vmatprep.subr.bf16.mxu0 %v2142_v19  ;;  %1287 = vmatprep.subr.bf16.mxu1 %v2145_v20 }
  0x7e   : > { %1202 = vmatpush1.bf16.msra.mxu0 %v2140_v21  ;;  %1288 = vmatpush1.bf16.msra.mxu1 %v2143_v22  ;;  %v357_v21 = vld [vmem:[#allocation2 + $0x28] sm:$0x1]  ;;  %v359_v22 = vld [vmem:[#allocation2 + $0x38] sm:$0x1] }
  0x7f   : > { %1203 = vmatprep.subr.bf16.mxu0 %v2148_v23  ;;  %1289 = vmatprep.subr.bf16.mxu1 %v2151_v24 }
  0x82   : > { %1204 = vmatpush1.bf16.msra.mxu0 %v2146_v25  ;;  %1290 = vmatpush1.bf16.msra.mxu1 %v2149_v26 }
  0x83   : > { %1205 = vmatprep.subr.bf16.mxu0 %v2154_v27  ;;  %1291 = vmatprep.subr.bf16.mxu1 %v2157_v28 }
  0x86   : > { %1206 = vmatpush1.bf16.msra.mxu0 %v2152_v29  ;;  %1292 = vmatpush1.bf16.msra.mxu1 %v2155_v30 }
  0x87   : > { %1207 = vmatprep.subr.bf16.mxu0 %v2160_v31  ;;  %1293 = vmatprep.subr.bf16.mxu1 %v2163_v32 }
  0x8a   : > { %1208 = vmatpush1.bf16.msra.mxu0 %v2158_v33  ;;  %1294 = vmatpush1.bf16.msra.mxu1 %v2161_v34  ;;  %v1354_v33 = vlaneseq (!%p1952_p13) }
  0x8b   : > { %1209 = vmatprep.subr.bf16.mxu0 %v2166_v36  ;;  %1295 = vmatprep.subr.bf16.mxu1 %v2169_v37  ;;  %v1495_v36 = vunpack.c.l.s4 (!%p1952_p13), %v2278_v35  ;;  %v1352_v37 = vld [vmem:[%s2589_s2] sm:$0xf] (!%p1952_p13) }
  0x8c   : > { %v1355_v34 = vshrl.u32 (!%p1952_p13), %v1354_v33, 7  ;;  %vm1519_vm2 = vcmp.lt.s32.totalorder (!%p1952_p13), %v1354_v33, 512 }
  0x8e   : > { %1210 = vmatpush1.bf16.msra.mxu0 %v2164_v38  ;;  %1296 = vmatpush1.bf16.msra.mxu1 %v2167_v39  ;;  %v1356_v39 = vsub.s32 (!%p1952_p13), 0, %v1355_v34 }
  0x8f   : > { %1211 = vmatprep.subr.bf16.mxu0 %v2172_v40  ;;  %1297 = vmatprep.subr.bf16.mxu1 %v2175_v41  ;;  %v1360_v41 = vsub.s32 (!%p1952_p13), 1, %v1355_v34 }
  0x92   : > { %1212 = vmatpush1.bf16.msra.mxu0 %v2170_v42  ;;  %1298 = vmatpush1.bf16.msra.mxu1 %v2173_v43  ;;  %v1364_v42 = vsub.s32 (!%p1952_p13), 2, %v1355_v34  ;;  %v1368_v43 = vsub.s32 (!%p1952_p13), 3, %v1355_v34 }
  0x93   : > { %1213 = vmatprep.subr.bf16.mxu0 %v2178_v44  ;;  %1299 = vmatprep.subr.bf16.mxu1 %v2181_v45 }
  0x96   : > { %1214 = vmatpush1.bf16.msra.mxu0 %v2176_v46  ;;  %1300 = vmatpush1.bf16.msra.mxu1 %v2179_v47  ;;  %v1392_v47 = vadd.s32 (!%p1952_p13), 8, %v1355_v34 }
  0x97   : > { %1215 = vmatprep.subr.bf16.mxu0 %v2184_v48  ;;  %1301 = vmatprep.subr.bf16.mxu1 %v2187_v49  ;;  %v1496_v48 = vunpack.c.0.s8 (!%p1952_p13), %v1495_v36  ;;  %v1357_v49 = vrot.slane (!%p1952_p13), %v1352_v37, %v1356_v39 }
  0x98   : > { %vm1398_vm0 = vcmp.lt.s32.totalorder (!%p1952_p13), %v1392_v47, 9 }
  0x9a   : > { %1216 = vmatpush1.bf16.msra.mxu0 %v2182_v50  ;;  %1302 = vmatpush1.bf16.msra.mxu1 %v2185_v51  ;;  %v1361_v50 = vrot.slane (!%p1952_p13), %v1352_v37, %v1360_v41  ;;  %v1365_v51 = vrot.slane (!%p1952_p13), %v1352_v37, %v1364_v42 }
  0x9b   : > { %1217 = vmatprep.subr.bf16.mxu0 %v2190_v52  ;;  %1303 = vmatprep.subr.bf16.mxu1 %v2193_v53  ;;  %v1369_v52 = vrot.slane (!%p1952_p13), %v1352_v37, %v1368_v43 }
  0x9e   : > { %1218 = vmatpush1.bf16.msra.mxu0 %v2188_v54  ;;  %1304 = vmatpush1.bf16.msra.mxu1 %v2191_v55 }
  0x9f   : > { %1219 = vmatprep.subr.bf16.mxu0 %v2196_v56  ;;  %1305 = vmatprep.subr.bf16.mxu1 %v2199_v57  ;;  %v2535_v56 = vsub.s32 (!%p1952_p13), %v1496_v48, %v1355_v34 }
  0xa2   : > { %1220 = vmatpush1.bf16.msra.mxu0 %v2194_v58  ;;  %1306 = vmatpush1.bf16.msra.mxu1 %v2197_v59 }
  0xa3   : > { %1221 = vmatprep.subr.bf16.mxu0 %v2202_v60  ;;  %1307 = vmatprep.subr.bf16.mxu1 %v2205_v61 }
  0xa6   : > { %1222 = vmatpush1.bf16.msra.mxu0 %v2200_v62  ;;  %1308 = vmatpush1.bf16.msra.mxu1 %v2203_v63 }
  0xa7   : > { %1223 = vmatprep.subr.bf16.mxu0 %v2208_v0  ;;  %1309 = vmatprep.subr.bf16.mxu1 %v2211_v1 }
  0xaa   : > { %1224 = vmatpush1.bf16.msra.mxu0 %v2206_v2  ;;  %1310 = vmatpush1.bf16.msra.mxu1 %v2209_v3 }
  0xab   : > { %1225 = vmatprep.subr.bf16.mxu0 %v2214_v4  ;;  %1311 = vmatprep.subr.bf16.mxu1 %v2217_v5 }
  0xae   : > { %1226 = vmatpush1.bf16.msra.mxu0 %v2212_v6  ;;  %1312 = vmatpush1.bf16.msra.mxu1 %v2215_v7 }
  0xb1   : > { %1228 = vmatmul.mubr.bf16.vlgmr.msra.gmra.mrb[0].mxu0 %v2218_v8  ;;  %1314 = vmatmul.mubr.bf16.vlgmr.msra.gmra.mrb[0].mxu1 %v2218_v8 }
 0x184   : > { %v1229_v13 = vpop.f32.mrb[0].mxu0  ;;  %v1315_v14 = vpop.f32.mrb[0].mxu1  ;;  %1343 = sbr.rel (%p1952_p13) target bundleno = 436 (0x1b4), region = 63 }
 0x185   : > { %v1324_v17 = vadd.f32 %v1229_v13, %v352_v9  ;;  %v1326_v18 = vadd.f32 %v1315_v14, %v354_v10  ;;  %v1231_v19 = vpop.f32.mrb[1].mxu0  ;;  %v1317_v20 = vpop.f32.mrb[1].mxu1 }
 0x186   : > { %v1325_v23 = vadd.f32 %v1231_v19, %v353_v11  ;;  %v1327_v24 = vadd.f32 %v1317_v20, %v355_v12  ;;  %v1233_v25 = vpop.f32.mrb[2].mxu0  ;;  %v1319_v26 = vpop.f32.mrb[2].mxu1 }
 0x187   : > { %1332 = vst [vmem:[#allocation2] sm:$0xff] %v1324_v17  ;;  %1334 = vst [vmem:[#allocation2 + $0x10] sm:$0xff] %v1326_v18  ;;  %v1328_v27 = vadd.f32 %v1233_v25, %v356_v15  ;;  %v1330_v28 = vadd.f32 %v1319_v26, %v358_v16  ;;  %v1235_v29 = vpop.f32.mrb[3].mxu0  ;;  %v1321_v30 = vpop.f32.mrb[3].mxu1 }
 0x188   : > { %1333 = vst [vmem:[#allocation2 + $0x8] sm:$0xff] %v1325_v23  ;;  %1335 = vst [vmem:[#allocation2 + $0x18] sm:$0xff] %v1327_v24  ;;  %v1329_v31 = vadd.f32 %v1235_v29, %v357_v21  ;;  %v1331_v32 = vadd.f32 %v1321_v30, %v359_v22 }
 0x189   : > { %1336 = vst [vmem:[#allocation2 + $0x20] sm:$0x1] %v1328_v27  ;;  %1338 = vst [vmem:[#allocation2 + $0x30] sm:$0x1] %v1330_v28 }
 0x18a   : > { %1337 = vst [vmem:[#allocation2 + $0x28] sm:$0x1] %v1329_v31  ;;  %1339 = vst [vmem:[#allocation2 + $0x38] sm:$0x1] %v1331_v32 }
 0x18e   : > { %v1344_v38 = vld [vmem:[#allocation2] sm:$0xff]  ;;  %v1346_v44 = vld [vmem:[#allocation2 + $0x10] sm:$0xff] }
 0x18f   : > { %v1345_v40 = vld [vmem:[#allocation2 + $0x8] sm:$0xff]  ;;  %v1347_v45 = vld [vmem:[#allocation2 + $0x18] sm:$0xff]  ;;  %v1374_v57 = vadd.f32 %v1357_v49, %v1344_v38  ;;  %v1376_v59 = vadd.f32 %v1365_v51, %v1346_v44 }
 0x190   : > { %v1348_v46 = vld [vmem:[#allocation2 + $0x20] sm:$0x1]  ;;  %v1350_v54 = vld [vmem:[#allocation2 + $0x30] sm:$0x1]  ;;  %v1375_v58 = vadd.f32 %v1361_v50, %v1345_v40  ;;  %v1377_v60 = vadd.f32 %v1369_v52, %v1347_v45 }
 0x191   : > { %v1349_v53 = vld [vmem:[#allocation2 + $0x28] sm:$0x1]  ;;  %v1351_v55 = vld [vmem:[#allocation2 + $0x38] sm:$0x1]  ;;  %v1378_v61 = vadd.f32 %v1357_v49, %v1348_v46  ;;  %v1380_v63 = vadd.f32 %v1365_v51, %v1350_v54  ;;  %1382 = vst [vmem:[%s2383_s12] sm:$0xff] %v1374_v57  ;;  %v1444_v1 = vmul.f32 %v1374_v57, %v1374_v57  ;;  %1384 = vst [vmem:[%s2383_s12 + $0x10] sm:$0xff] %v1376_v59 }
 0x192   : > { %v1379_v62 = vadd.f32 %v1361_v50, %v1349_v53  ;;  %v1381_v0 = vadd.f32 %v1369_v52, %v1351_v55  ;;  %1383 = vst [vmem:[%s2383_s12 + $0x8] sm:$0xff] %v1375_v58  ;;  %v1445_v2 = vmul.f32 %v1375_v58, %v1375_v58  ;;  %v1446_v3 = vmul.f32 %v1376_v59, %v1376_v59 }
 0x193   : > { %1385 = vst [vmem:[%s2383_s12 + $0x18] sm:$0xff] %v1377_v60  ;;  %v1447_v4 = vmul.f32 %v1377_v60, %v1377_v60  ;;  %1386 = vst [vmem:[%s2383_s12 + $0x20] sm:$0x1] %v1378_v61  ;;  %v1407_v5 = vsel %vm1398_vm0, %v1378_v61, 0.0  ;;  %v1409_v7 = vsel %vm1398_vm0, %v1380_v63, 0.0 }
 0x194   : > { %1387 = vst [vmem:[%s2383_s12 + $0x28] sm:$0x1] %v1379_v62  ;;  %v1408_v6 = vsel %vm1398_vm0, %v1379_v62, 0.0  ;;  %1388 = vst [vmem:[%s2383_s12 + $0x30] sm:$0x1] %v1380_v63  ;;  %v1410_v8 = vsel %vm1398_vm0, %v1381_v0, 0.0  ;;  %v1448_v10 = vmul.f32 %v1407_v5, %v1407_v5  ;;  %v1450_v16 = vmul.f32 %v1409_v7, %v1409_v7 }
 0x195   : > { %1389 = vst [vmem:[%s2383_s12 + $0x38] sm:$0x1] %v1381_v0  ;;  %v1412_v9 = vsel %vm1411_vm1, %v1407_v5, 0.0  ;;  %v1420_v11 = vsel %vm1411_vm1, %v1408_v6, 0.0  ;;  %v1449_v12 = vmul.f32 %v1408_v6, %v1408_v6  ;;  %v1428_v15 = vsel %vm1411_vm1, %v1409_v7, 0.0 }
 0x196   : > { %v1413_v13 = vadd.f32 %v1412_v9, %v1374_v57  ;;  %v1421_v14 = vadd.f32 %v1420_v11, %v1375_v58  ;;  %v1452_v17 = vsel %vm1411_vm1, %v1448_v10, 0.0  ;;  %v1429_v19 = vadd.f32 %v1428_v15, %v1376_v59 }
 0x197   : > { %v1460_v18 = vsel %vm1411_vm1, %v1449_v12, 0.0  ;;  %v1436_v20 = vsel %vm1411_vm1, %v1410_v8, 0.0  ;;  %v1453_v22 = vadd.f32 %v1452_v17, %v1444_v1  ;;  %v1468_v26 = vsel %vm1411_vm1, %v1450_v16, 0.0 }
 0x198   : > { %v1414_v21 = vrot.slane %v1413_v13, 4  ;;  %v1422_v23 = vrot.slane %v1421_v14, 4  ;;  %v1461_v24 = vadd.f32 %v1460_v18, %v1445_v2  ;;  %v1430_v25 = vrot.slane %v1429_v19, 4 }
 0x199   : > { %v1437_v27 = vadd.f32 %v1436_v20, %v1377_v60  ;;  %v1451_v28 = vmul.f32 %v1410_v8, %v1410_v8  ;;  %v1454_v30 = vrot.slane %v1453_v22, 4  ;;  %v1469_v35 = vadd.f32 %v1468_v26, %v1446_v3 }
 0x19a   : > { %v1415_v29 = vadd.f32 %v1414_v21, %v1413_v13  ;;  %v1423_v31 = vadd.f32 %v1422_v23, %v1421_v14  ;;  %v1462_v32 = vrot.slane %v1461_v24, 4  ;;  %v1431_v34 = vadd.f32 %v1430_v25, %v1429_v19 }
 0x19b   : > { %v1438_v36 = vrot.slane %v1437_v27, 4  ;;  %v1476_v37 = vsel %vm1411_vm1, %v1451_v28, 0.0  ;;  %v1455_v39 = vadd.f32 %v1454_v30, %v1453_v22  ;;  %v1470_v43 = vrot.slane %v1469_v35, 4 }
 0x19c   : > { %v1416_v38 = vrot.slane %v1415_v29, 2  ;;  %v1424_v40 = vrot.slane %v1423_v31, 2  ;;  %v1463_v41 = vadd.f32 %v1462_v32, %v1461_v24  ;;  %v1432_v42 = vrot.slane %v1431_v34, 2 }
 0x19d   : > { %v1439_v44 = vadd.f32 %v1438_v36, %v1437_v27  ;;  %v1477_v45 = vadd.f32 %v1476_v37, %v1447_v4  ;;  %v1456_v47 = vrot.slane %v1455_v39, 2  ;;  %v1471_v51 = vadd.f32 %v1470_v43, %v1469_v35 }
 0x19e   : > { %v1417_v46 = vadd.f32 %v1416_v38, %v1415_v29  ;;  %v1425_v48 = vadd.f32 %v1424_v40, %v1423_v31  ;;  %v1464_v49 = vrot.slane %v1463_v41, 2  ;;  %v1433_v50 = vadd.f32 %v1432_v42, %v1431_v34 }
 0x19f   : > { %v1440_v52 = vrot.slane %v1439_v44, 2  ;;  %v1478_v53 = vrot.slane %v1477_v45, 4  ;;  %v1457_v57 = vadd.f32 %v1456_v47, %v1455_v39  ;;  %v1472_v59 = vrot.slane %v1471_v51, 2 }
 0x1a0   : > { %v1418_v54 = vrot.slane %v1417_v46, 1  ;;  %v1426_v55 = vrot.slane %v1425_v48, 1  ;;  %v1465_v58 = vadd.f32 %v1464_v49, %v1463_v41  ;;  %v1434_v62 = vrot.slane %v1433_v50, 1 }
 0x1a1   : > { %v1441_v60 = vadd.f32 %v1440_v52, %v1439_v44  ;;  %v1479_v61 = vadd.f32 %v1478_v53, %v1477_v45  ;;  %v1458_v1 = vrot.slane %v1457_v57, 1  ;;  %v1473_v6 = vadd.f32 %v1472_v59, %v1471_v51 }
 0x1a2   : > { %v1419_v63 = vadd.f32 %v1418_v54, %v1417_v46  ;;  %v1427_v0 = vadd.f32 %v1426_v55, %v1425_v48  ;;  %v1466_v2 = vrot.slane %v1465_v58, 1  ;;  %v1435_v4 = vadd.f32 %v1434_v62, %v1433_v50 }
 0x1a3   : > { %v1480_v3 = vrot.slane %v1479_v61, 2  ;;  %v1442_v5 = vrot.slane %v1441_v60, 1  ;;  %v1459_v8 = vadd.f32 %v1458_v1, %v1457_v57  ;;  %v1474_v11 = vrot.slane %v1473_v6, 1 }
 0x1a4   : > { %v1492_v7 = vcombine.low %v1419_v63, %v1427_v0  ;;  %v1467_v9 = vadd.f32 %v1466_v2, %v1465_v58 }
 0x1a5   : > { %v1443_v10 = vadd.f32 %v1442_v5, %v1441_v60  ;;  %v1481_v12 = vadd.f32 %v1480_v3, %v1479_v61  ;;  %v1475_v15 = vadd.f32 %v1474_v11, %v1473_v6 }
 0x1a6   : > { %v1500_v13 = vrot.slane %v1492_v7, %v2535_v56  ;;  %v1526_v17 = vcombine.low %v1459_v8, %v1467_v9 }
 0x1a7   : > { %v1493_v14 = vcombine.low %v1435_v4, %v1443_v10  ;;  %v1482_v16 = vrot.slane %v1481_v12, 1 }
 0x1a8   : > { %v1534_v22 = vrot.slane %v1526_v17, %v2535_v56 }
 0x1a9   : > { %v1507_v18 = vrot.slane %v1493_v14, %v2535_v56  ;;  %v1483_v19 = vadd.f32 %v1482_v16, %v1481_v12 }
 0x1ab   : > { %v1508_v20 = vcombine.low %v1500_v13, %v1507_v18  ;;  %v1527_v21 = vcombine.low %v1475_v15, %v1483_v19 }
 0x1ad   : > { %v1515_v23 = vrot.slane %v1508_v20, %v2535_v56  ;;  %v1541_v24 = vrot.slane %v1527_v21, %v2535_v56 }
 0x1af   : > { %1521 = vst.msk [vmem:[%s2388_s15] sm:$0xf] %vm1519_vm2, %v1515_v23  ;;  %v1542_v25 = vcombine.low %v1534_v22, %v1541_v24 }
 0x1b1   : > { %v1549_v26 = vrot.slane %v1542_v25, %v2535_v56 }
 0x1b3   : > { %1551 = vst.msk [vmem:[%s2393_s27] sm:$0xf] %vm1519_vm2, %v1549_v26 }
 0x1b4 PF: > { %s16_s24 = sadd.s32 1, %s2275_s24   ;;  %s2593_s18 = smov %s2255_s19 }
 0x1b5   : > { %p13_p0 = scmp.ge.s32.totalorder %s16_s24, 18   ;;  %s2594_s19 = smov %s2360_s6 }
 0x1b6   : > { %s2595_s20 = smov %s2267_s22  ;;  %s2596_s21 = smov %s2271_s23 }
 0x1b7   : > { %s2597_s22 = smov %s2600_s25  ;;  %s2598_s23 = smov %s2604_s26 }
 0x1b8   :  { %15 = sbr.rel (!%p13_p0) target bundleno = 4 (0x4), region = 133 }

// kernel: discriminator_forward.15
= control target key start
LH: loop header
LB: loop body
LE: loop exit
PB: predicated region body
PF: predicated region fallthrough
CT: control target
= control target key end

     0   :  { %s930_s12 = smov 0   ;;  %s932_s13 = smov 0   ;;  %s1013_s0 = inlined_call_operand.vmem [shape: bf16[1,8,8192], index: 0, kind: input, shape index: {}]   ;;  %s1014_s1 = inlined_call_operand.vmem [shape: bf16[8192,128], index: 1, kind: input, shape index: {}]   ;;  %s1015_s2 = inlined_call_operand.vmem [shape: f32[1,128], index: 2, kind: input, shape index: {}]   ;;  %s1016_s3 = inlined_call_operand.vmem [shape: f32[1,8,128], index: 3, kind: output, shape index: {}]  }
   0x1   :  { %s934_s14 = smov 0  }
   0x2 LB: > { %s25_s15 = sadd.s32 1, %s903_s13  ;;  %p728_p0 = scmp.ge.s32.totalorder %s907_s14, 1  ;;  %s907_s14 = sphi %s934_s14, %s13_s14   ;;  %s903_s13 = sphi %s932_s13, %s1018_s13   ;;  %s899_s12 = sphi %s930_s12, %s1017_s12  }
   0x3   : > { %p26_p1 = scmp.ge.s32.totalorder %s25_s15, 16  ;;  %p182_p2 = scmp.lt.s32.totalorder %s907_s14, 17 }
   0x5   : > { %s1020_s15 = smov (%p26_p1, %s25_s15), 0  ;;  %p183_p3 = pnand %p728_p0, %p182_p2 }
   0x6   : > { %s729_s16 = sshll.u32 (!%p183_p3), %s899_s12, 2  ;;  %s731_s17 = sshll.u32 (!%p183_p3), %s899_s12, 6 }
   0x7   : > { %186 = sbr.rel (%p183_p3) target bundleno = 315 (0x13b), region = 32  ;;  %p226_p4 = scmp.lt.s32.totalorder (!%p183_p3), %s729_s16, 63 }
   0x8   : > { %p236_p5 = scmp.lt.s32.totalorder (!%p183_p3), %s731_s17, 1023  ;;  %p733_p6 = scmp.ne.s32.totalorder (!%p183_p3), %s899_s12, 0 }
   0xe   : > { %s1022_s16 = smov (!%p226_p4, %s729_s16), 63  ;;  %s1024_s17 = smov (!%p236_p5, %s731_s17), 1023 }
   0xf   : > { %s730_s18 = sshll.u32 %s1022_s16, 2  ;;  %s732_s22 = sshll.u32 %s1024_s17, 2  ;;  %v909_v0 = vmov (!%p733_p6), 0.0  }
  0x10   : > { %s955_s21 = scalar_lea.vmem %s1013_s0, %s730_s18  ;;  %s960_s25 = scalar_lea.vmem %s1014_s1, %s732_s22  ;;  %253 = vst [vmem:[#allocation2] sm:$0xff] (!%p733_p6), %v909_v0 }
  0x11   : > { %252 = sbr.rel (%p733_p6) target bundleno = 24 (0x18), region = 36 }
  0x18 PF: > { %v845_v1 = vld [vmem:[%s960_s25 + $0x40] sm:$0xff]   ;;  %v849_v5 = vld [vmem:[%s960_s25 + $0x48] sm:$0xff]   ;;  %v853_v9 = vld [vmem:[%s960_s25 + $0x50] sm:$0xff]   ;;  %p770_p7 = scmp.ne.s32.totalorder %s899_s12, 15 }
  0x19   : > { %v846_v2 = vld [vmem:[%s960_s25 + $0xc0] sm:$0xff]   ;;  %776 = vmatprep.subr.bf16.mxu0 %v845_v1  ;;  %v850_v6 = vld [vmem:[%s960_s25 + $0xc8] sm:$0xff]   ;;  %v854_v10 = vld [vmem:[%s960_s25 + $0xd0] sm:$0xff]  }
  0x1a   : > { %v847_v3 = vld [vmem:[%s960_s25] sm:$0xff]   ;;  %798 = vmatprep.subr.bf16.mxu1 %v846_v2  ;;  %v851_v7 = vld [vmem:[%s960_s25 + $0x8] sm:$0xff]   ;;  %v855_v11 = vld [vmem:[%s960_s25 + $0x10] sm:$0xff]  }
  0x1b   : > { %v848_v4 = vld [vmem:[%s960_s25 + $0x80] sm:$0xff]   ;;  %777 = vmatpush3.bf16.msra.mxu0 %v847_v3  ;;  %v852_v8 = vld [vmem:[%s960_s25 + $0x88] sm:$0xff]   ;;  %v856_v12 = vld [vmem:[%s960_s25 + $0x90] sm:$0xff]  }
  0x1c   : > { %799 = vmatpush3.bf16.msra.mxu1 %v848_v4  ;;  %778 = vmatprep.subr.bf16.mxu0 %v849_v5  ;;  %v857_v13 = vld [vmem:[%s960_s25 + $0x58] sm:$0xff]   ;;  %v861_v17 = vld [vmem:[%s960_s25 + $0x60] sm:$0xff]   ;;  %v865_v21 = vld [vmem:[%s960_s25 + $0x68] sm:$0xff]  }
  0x1d   : > { %800 = vmatprep.subr.bf16.mxu1 %v850_v6  ;;  %v858_v14 = vld [vmem:[%s960_s25 + $0xd8] sm:$0xff]   ;;  %v862_v18 = vld [vmem:[%s960_s25 + $0xe0] sm:$0xff]   ;;  %v866_v22 = vld [vmem:[%s960_s25 + $0xe8] sm:$0xff]  }
  0x1e   : > { %v859_v15 = vld [vmem:[%s960_s25 + $0x18] sm:$0xff]   ;;  %v863_v19 = vld [vmem:[%s960_s25 + $0x20] sm:$0xff]   ;;  %v867_v23 = vld [vmem:[%s960_s25 + $0x28] sm:$0xff]  }
  0x1f   : > { %779 = vmatpush3.bf16.msra.mxu0 %v851_v7  ;;  %v860_v16 = vld [vmem:[%s960_s25 + $0x98] sm:$0xff]   ;;  %v864_v20 = vld [vmem:[%s960_s25 + $0xa0] sm:$0xff]   ;;  %v868_v24 = vld [vmem:[%s960_s25 + $0xa8] sm:$0xff]  }
  0x20   : > { %801 = vmatpush3.bf16.msra.mxu1 %v852_v8  ;;  %780 = vmatprep.subr.bf16.mxu0 %v853_v9  ;;  %v869_v25 = vld [vmem:[%s960_s25 + $0x70] sm:$0xff]   ;;  %v873_v29 = vld [vmem:[%s960_s25 + $0x78] sm:$0xff]   ;;  %v255_v33 = vld [vmem:[%s955_s21] sm:$0xff] }
  0x21   : > { %802 = vmatprep.subr.bf16.mxu1 %v854_v10  ;;  %v870_v26 = vld [vmem:[%s960_s25 + $0xf0] sm:$0xff]   ;;  %v874_v30 = vld [vmem:[%s960_s25 + $0xf8] sm:$0xff]   ;;  %v256_v34 = vld [vmem:[%s955_s21 + $0x8] sm:$0xff]  ;;  %v734_v35 = vcombine.low %v255_v33, %v255_v33  ;;  %v735_v36 = vcombine.high %v255_v33, %v255_v33 }
  0x22   : > { %v871_v27 = vld [vmem:[%s960_s25 + $0x30] sm:$0xff]   ;;  %v875_v31 = vld [vmem:[%s960_s25 + $0x38] sm:$0xff]   ;;  %v736_v37 = vcombine.low %v256_v34, %v256_v34  ;;  %v737_v38 = vcombine.high %v256_v34, %v256_v34  ;;  %v254_v47 = vld [vmem:[#allocation2] sm:$0xff] }
  0x23   : > { %781 = vmatpush3.bf16.msra.mxu0 %v855_v11  ;;  %v872_v28 = vld [vmem:[%s960_s25 + $0xb0] sm:$0xff]   ;;  %v876_v32 = vld [vmem:[%s960_s25 + $0xb8] sm:$0xff]   ;;  %559 = vmatprep.mubr.bf16.mxu0 %v735_v36  ;;  %v771_v53 = vld [vmem:[%s1015_s2] ss:$0 sm:$0xff] (!%p770_p7) }
  0x24   : > { %803 = vmatpush3.bf16.msra.mxu1 %v856_v12  ;;  %782 = vmatprep.subr.bf16.mxu0 %v857_v13 }
  0x25   : > { %804 = vmatprep.subr.bf16.mxu1 %v858_v14  ;;  %599 = vmatprep.mubr.bf16.mxu1 %v737_v38 }
  0x27   : > { %783 = vmatpush3.bf16.msra.mxu0 %v859_v15 }
  0x28   : > { %805 = vmatpush3.bf16.msra.mxu1 %v860_v16  ;;  %784 = vmatprep.subr.bf16.mxu0 %v861_v17 }
  0x29   : > { %806 = vmatprep.subr.bf16.mxu1 %v862_v18 }
  0x2b   : > { %785 = vmatpush3.bf16.msra.mxu0 %v863_v19 }
  0x2c   : > { %807 = vmatpush3.bf16.msra.mxu1 %v864_v20  ;;  %786 = vmatprep.subr.bf16.mxu0 %v865_v21 }
  0x2d   : > { %808 = vmatprep.subr.bf16.mxu1 %v866_v22 }
  0x2f   : > { %787 = vmatpush3.bf16.msra.mxu0 %v867_v23 }
  0x30   : > { %809 = vmatpush3.bf16.msra.mxu1 %v868_v24  ;;  %788 = vmatprep.subr.bf16.mxu0 %v869_v25 }
  0x31   : > { %810 = vmatprep.subr.bf16.mxu1 %v870_v26 }
  0x33   : > { %789 = vmatpush3.bf16.msra.mxu0 %v871_v27 }
  0x34   : > { %811 = vmatpush3.bf16.msra.mxu1 %v872_v28  ;;  %790 = vmatprep.subr.bf16.mxu0 %v873_v29 }
  0x35   : > { %812 = vmatprep.subr.bf16.mxu1 %v874_v30 }
  0x37   : > { %791 = vmatpush3.bf16.msra.mxu0 %v875_v31 }
  0x38   : > { %813 = vmatpush3.bf16.msra.mxu1 %v876_v32 }
  0x3a   : > { %560 = vmatmul.mubr.bf16.vlgmr.msra.gmra.mrb[0].mxu0 %v734_v35 }
  0x3b   : > { %600 = vmatmul.mubr.bf16.vlgmr.msra.gmra.mrb[0].mxu1 %v736_v37 }
 0x10d   : > { %v792_v39 = vpop.f32.mrb[0].mxu0 }
 0x10e   : > { %v814_v40 = vpop.f32.mrb[0].mxu1  ;;  %v793_v41 = vpop.f32.mrb[1].mxu0 }
 0x10f   : > { %v815_v42 = vpop.f32.mrb[1].mxu1  ;;  %v794_v43 = vadd.f32 %v793_v41, %v792_v39  ;;  %v795_v45 = vpop.f32.mrb[2].mxu0 }
 0x110   : > { %v816_v44 = vadd.f32 %v815_v42, %v814_v40  ;;  %v817_v46 = vpop.f32.mrb[2].mxu1  ;;  %v796_v48 = vpop.f32.mrb[3].mxu0  ;;  %612 = sbr.rel (%p770_p7) target bundleno = 315 (0x13b), region = 40 }
 0x111   : > { %v818_v49 = vpop.f32.mrb[3].mxu1 }
 0x112   : > { %v602_v50 = vadd.f32 %v816_v44, %v794_v43 }
 0x114   : > { %v607_v51 = vadd.f32 %v602_v50, %v254_v47 }
 0x116   : > { %608 = vst [vmem:[#allocation2] sm:$0xff] %v607_v51 }
 0x11d   : > { %v613_v52 = vld [vmem:[#allocation2] sm:$0xff] }
 0x11e   : > { %v621_v54 = vadd.f32 %v771_v53, %v613_v52 }
 0x120   : > { %v772_v55 = vmul.f32 -1.442695, %v621_v54 }
 0x122   : > { %881 = vpow2.f32 %v772_v55 }
 0x12c   : > { %v882_v56 = vpop.eup %881 }
 0x12d   : > { %v625_v57 = vadd.f32 1.0, %v882_v56 }
 0x12f   : > { %883 = vrcp.f32 %v625_v57 }
 0x139   : > { %v884_v58 = vpop.eup %883 }
 0x13a   : > { %628 = vst [vmem:[%s1016_s3] sm:$0xff] %v884_v58 }
 0x13b PF: > { %s13_s14 = sadd.s32 1, %s907_s14   ;;  %s1017_s12 = smov %s903_s13 }
 0x13c   : > { %p10_p8 = scmp.ge.s32.totalorder %s13_s14, 18   ;;  %s1018_s13 = smov %s1020_s15 }
 0x13e   :  { %12 = sbr.rel (!%p10_p8) target bundleno = 2 (0x2), region = 73 }

</bundles_post_ra>
